<compile_context>
chip_gen: v7x
topology: tpu7x:2x2x1
jax: 0.10.0
libtpu: 0.0.40
codegen_flags: <defaults>
</compile_context>

<pallas_src>
import math
import functools

import jax
import jax.numpy as jnp
from jax.experimental import pallas as pl
from jax.experimental.pallas import tpu as pltpu


def _round_up(x, m):
    return ((x + m - 1) // m) * m


def _rff_kernel(x_ref, w_ref, b_ref, o_ref, *, feat_scale):
    # Fused: MXU matmul (f32 accumulate) + bias + cos + feature scale.
    acc = jnp.dot(x_ref[...], w_ref[...], preferred_element_type=jnp.float32)
    o_ref[...] = (feat_scale * jnp.cos(acc + b_ref[...])).astype(o_ref.dtype)


def prepare_rff_params(W, b, *, kernel_scale=1.0):
    """Init-time parameter prep: fold input_scale into the (frozen) weights.

    W: (num_inducing, in_features), b: (num_inducing,).
    Returns (w_t_scaled, b) with w_t_scaled of shape (in_features, num_inducing),
    i.e. already transposed so the kernel does a plain (M,K)@(K,N) matmul with
    N on the fast (lane) axis.
    """
    input_scale = 1.0 / math.sqrt(kernel_scale)
    w_t_scaled = (W.T * input_scale).astype(jnp.float32)
    return w_t_scaled, b.astype(jnp.float32)


def random_fourier_features(x, w_t_scaled, b, *, scale_features=True, tm=256):
    """x: (M, K) f32; w_t_scaled: (K, N) f32 (= input_scale * W.T); b: (N,) f32."""
    M, K = x.shape
    Kw, N = w_t_scaled.shape
    assert K == Kw and b.shape == (N,)

    feat_scale = math.sqrt(2.0 / float(N)) if scale_features else 1.0

    # Row tile: sublane/MXU aligned (multiple of 8), capped by the (padded) batch.
    tm = max(8, min(tm, _round_up(M, 8)))
    tm = _round_up(tm, 8)
    M_pad = _round_up(M, tm)
    if M_pad != M:
        x = jnp.pad(x, ((0, M_pad - M), (0, 0)))

    b2d = b.reshape(1, N)

    kernel = functools.partial(_rff_kernel, feat_scale=feat_scale)

    out = pl.pallas_call(
        kernel,
        out_shape=jax.ShapeDtypeStruct((M_pad, N), x.dtype),
        grid_spec=pltpu.PrefetchScalarGridSpec(
            num_scalar_prefetch=0,
            grid=(M_pad // tm,),
            in_specs=[
                # x tile: streams along the grid (full K per block).
                pl.BlockSpec((tm, K), lambda i: (i, 0)),
                # W.T: resident in VMEM across the whole grid.
                pl.BlockSpec((K, N), lambda i: (0, 0)),
                # bias: resident in VMEM across the whole grid.
                pl.BlockSpec((1, N), lambda i: (0, 0)),
            ],
            out_specs=pl.BlockSpec((tm, N), lambda i: (i, 0)),
        ),
        compiler_params=pltpu.CompilerParams(
            dimension_semantics=("parallel",)),
    )(x, w_t_scaled, b2d)

    return out[:M] if M_pad != M else out


if __name__ == "__main__":
    # Small shapes consistent with the module: batch=20 (non-multiple, exercises
    # the pad/slice edge path), in_features=32, num_inducing=1024 (module default).
    batch, in_features, num_inducing = 20, 32, 1024
    kernel_scale = 1.0
    scale_features = True

    key = jax.random.PRNGKey(0)
    kx, kw, kb = jax.random.split(key, 3)

    x = jax.random.normal(kx, (batch, in_features), dtype=jnp.float32)
    # nn.init.normal_(weight, std=1) -> W shape (num_inducing, in_features)
    W = jax.random.normal(kw, (num_inducing, in_features), dtype=jnp.float32)
    # nn.init.uniform_(bias, 0, 2*pi)
    b = jax.random.uniform(kb, (num_inducing,), dtype=jnp.float32,
                           minval=0.0, maxval=2.0 * math.pi)

    # Init-time prep: transpose + fold input_scale into the frozen weights.
    w_t_scaled, b_prep = prepare_rff_params(W, b, kernel_scale=kernel_scale)

    out = random_fourier_features(x, w_t_scaled, b_prep,
                                  scale_features=scale_features)
    out = jax.block_until_ready(out)

    # Reference check in plain JAX (mirrors the PyTorch forward exactly).
    input_scale = 1.0 / math.sqrt(kernel_scale)
    feat_scale = math.sqrt(2.0 / float(num_inducing))
    ref = feat_scale * jnp.cos((x * input_scale) @ W.T + b)

    assert out.shape == (batch, num_inducing)
    assert jnp.allclose(out, ref, atol=1e-4, rtol=1e-4)

    print("KERNEL_OK")
</pallas_src>

<mosaic_0001>
module attributes {stable_mosaic.version = 11 : i64} {
  func.func @_rff_kernel(%arg0: i32, %arg1: memref<24x32xf32, #tpu.memory_space<vmem>>, %arg2: memref<32x1024xf32, #tpu.memory_space<vmem>>, %arg3: memref<1x1024xf32, #tpu.memory_space<vmem>>, %arg4: memref<24x1024xf32, #tpu.memory_space<vmem>>) attributes {dimension_semantics = [#tpu.dimension_semantics<parallel>], iteration_bounds = array<i64: 1>, scalar_prefetch = 0 : i64, scratch_operands = 0 : i64, tpu.core_type = #tpu.core_type<tc>, window_params = [{transform_indices = @transform_0, window_bounds = array<i64: 24, 32>}, {pipeline_mode = #tpu.pipeline_mode<synchronous>, transform_indices = @transform_1, window_bounds = array<i64: 32, 1024>}, {pipeline_mode = #tpu.pipeline_mode<synchronous>, transform_indices = @transform_2, window_bounds = array<i64: 1, 1024>}, {transform_indices = @transform_3, window_bounds = array<i64: 24, 1024>}]} {
    %c0 = arith.constant 0 : index
    %c0_0 = arith.constant 0 : index
    %0 = vector.load %arg1[%c0, %c0_0] : memref<24x32xf32, #tpu.memory_space<vmem>>, vector<24x32xf32>
    %c0_1 = arith.constant 0 : index
    %c0_2 = arith.constant 0 : index
    %1 = vector.load %arg2[%c0_1, %c0_2] : memref<32x1024xf32, #tpu.memory_space<vmem>>, vector<32x1024xf32>
    %cst = arith.constant dense<0.000000e+00> : vector<24x1024xf32>
    %2 = tpu.matmul %0, %1, %cst {dimension_numbers = #tpu.dot_dimension_numbers<[1], [0], [0], [1], [0, 0, 1, 1], [], []>} : vector<24x32xf32>, vector<32x1024xf32>, vector<24x1024xf32> -> vector<24x1024xf32>
    %c0_3 = arith.constant 0 : index
    %c0_4 = arith.constant 0 : index
    %3 = vector.load %arg3[%c0_3, %c0_4] : memref<1x1024xf32, #tpu.memory_space<vmem>>, vector<1x1024xf32>
    %4 = vector.broadcast %3 : vector<1x1024xf32> to vector<24x1024xf32>
    %5 = arith.addf %2, %4 : vector<24x1024xf32>
    %6 = math.cos %5 : vector<24x1024xf32>
    %cst_5 = arith.constant 0.0441941731 : f32
    %7 = vector.broadcast %cst_5 : f32 to vector<24x1024xf32>
    %8 = arith.mulf %7, %6 : vector<24x1024xf32>
    %c0_6 = arith.constant 0 : index
    %c0_7 = arith.constant 0 : index
    %9 = vector.load %arg4[%c0_6, %c0_7] : memref<24x1024xf32, #tpu.memory_space<vmem>>, vector<24x1024xf32>
    tpu.vector_store %arg4[%c0_6, %c0_7], %8 {strides = array<i32>} : memref<24x1024xf32, #tpu.memory_space<vmem>>, vector<24x1024xf32>,
    return
  }
  func.func @transform_0(%arg0: i32) -> (i32, i32) {
    %c0_i32 = arith.constant 0 : i32
    %c0_i32_0 = arith.constant 0 : i32
    return %arg0, %c0_i32 : i32, i32
  }
  func.func @transform_1(%arg0: i32) -> (i32, i32) {
    %c0_i32 = arith.constant 0 : i32
    %c0_i32_0 = arith.constant 0 : i32
    %c0_i32_1 = arith.constant 0 : i32
    return %c0_i32, %c0_i32_0 : i32, i32
  }
  func.func @transform_2(%arg0: i32) -> (i32, i32) {
    %c0_i32 = arith.constant 0 : i32
    %c0_i32_0 = arith.constant 0 : i32
    %c0_i32_1 = arith.constant 0 : i32
    return %c0_i32, %c0_i32_0 : i32, i32
  }
  func.func @transform_3(%arg0: i32) -> (i32, i32) {
    %c0_i32 = arith.constant 0 : i32
    %c0_i32_0 = arith.constant 0 : i32
    return %arg0, %c0_i32 : i32, i32
  }
}

</mosaic_0001>

<bundles_post_ra>
// kernel: tpu_custom_call.1
= control target key start
LH: loop header
LB: loop body
LE: loop exit
PB: predicated region body
PF: predicated region fallthrough
CT: control target
= control target key end

     0   :  { %8 = vsyncpa [#allocation3], 0  ;;  %s5528_s0 = inlined_call_operand.hbm [shape: f32[24,32], index: 0, kind: input, shape index: {}]   ;;  %s5529_s1 = inlined_call_operand.hbm [shape: f32[32,1024], index: 1, kind: input, shape index: {}]   ;;  %s5530_s2 = inlined_call_operand.hbm [shape: f32[1,1024], index: 2, kind: input, shape index: {}]   ;;  %s5531_s3 = inlined_call_operand.hbm [shape: f32[24,1024], index: 3, kind: output, shape index: {}]  }
   0x1   :  { %9 = vsyncpa [#allocation6], 0 }
   0x2   :  { %10 = vsyncpa [#allocation4], 0  ;;  %s3453_s12 = smov [#allocation5]   ;;  %s3359_s16 = scalar_lea.hbm %s5529_s1, 4096 }
   0x3   :  { %s28_s13 = sshll.u32 %s3453_s12, 4  ;;  %p3360_p0 = scmp.ne.s32.totalorder %s5529_s1, %s3359_s16  ;;  %s29_s13 = int_to_ptr.vmem [resolvable:$true] %s28_s13 }
   0x4   :  { %p3363_p1 = scmp.lt.u32.totalorder %s3359_s16, %s5529_s1 }
   0x6   :  { %p3365_p2 = pnand %p3363_p1, %p3360_p0 }
   0x8   :  { %3368 = shalt.err (!%p3365_p2)
}
   0x9   :  { %s3369_s21 = scalar_lea.vmem %s29_s13, 4096  ;;  %p3374_p4 = scmp.lt.s32.totalorder %s29_s13, %s29_s13 }
   0xa   :  { %p3370_p3 = scmp.ne.s32.totalorder %s29_s13, %s3369_s21  ;;  %p3375_p5 = scmp.lt.s32.totalorder %s3369_s21, %s3369_s21 }
   0xc   :  { %p3376_p6 = por %p3375_p5, %p3374_p4 }
   0xe   :  { %p3377_p7 = pnand %p3376_p6, %p3370_p3 }
  0x10   :  { %3380 = shalt.err (!%p3377_p7)
}
  0x11   :  { %s3454_s22 = smov 1024   ;;  %s3455_s23 = smov 64  }
  0x12   :  { %34 = dma.hbm_to_vmem [thread:$0]  %s5529_s1, 4096, %s29_s13, [#allocation6], %s3454_s22, %s3454_s22, %s3455_s23  }
  0x13   :  { %s3456_s26 = smov [#allocation2]   ;;  %s3381_s30 = scalar_lea.hbm %s5528_s0, 384 }
  0x14   :  { %s16_s27 = sshll.u32 %s3456_s26, 4  ;;  %p3382_p8 = scmp.ne.s32.totalorder %s5528_s0, %s3381_s30  ;;  %s17_s27 = int_to_ptr.vmem [resolvable:$true] %s16_s27 }
  0x15   :  { %p3385_p9 = scmp.lt.u32.totalorder %s3381_s30, %s5528_s0 }
  0x17   :  { %p3387_p10 = pnand %p3385_p9, %p3382_p8 }
  0x19   :  { %3390 = shalt.err (!%p3387_p10)
}
  0x1a   :  { %s3391_s8 = scalar_lea.vmem %s17_s27, 384  ;;  %p3396_p12 = scmp.lt.s32.totalorder %s17_s27, %s17_s27 }
  0x1b   :  { %p3392_p11 = scmp.ne.s32.totalorder %s17_s27, %s3391_s8  ;;  %p3397_p13 = scmp.lt.s32.totalorder %s3391_s8, %s3391_s8 }
  0x1d   :  { %p3398_p0 = por %p3397_p13, %p3396_p12 }
  0x1f   :  { %p3399_p1 = pnand %p3398_p0, %p3392_p11 }
  0x21   :  { %3402 = shalt.err (!%p3399_p1)
}
  0x22   :  { %s3457_s1 = smov 128   ;;  %s3458_s9 = smov 8  }
  0x23   :  { %22 = dma.hbm_to_vmem [thread:$0]  %s5528_s0, 384, %s17_s27, [#allocation3], %s3457_s1, %s3457_s1, %s3458_s9  }
  0x24   :  { %s3459_s12 = smov [#allocation7]   ;;  %s3403_s16 = scalar_lea.hbm %s5530_s2, 128 }
  0x25   :  { %s41_s13 = sshll.u32 %s3459_s12, 4  ;;  %p3404_p2 = scmp.ne.s32.totalorder %s5530_s2, %s3403_s16  ;;  %s42_s13 = int_to_ptr.vmem [resolvable:$true] %s41_s13 }
  0x26   :  { %p3407_p3 = scmp.lt.u32.totalorder %s3403_s16, %s5530_s2 }
  0x28   :  { %p3409_p4 = pnand %p3407_p3, %p3404_p2 }
  0x2a   :  { %3412 = shalt.err (!%p3409_p4)
}
  0x2b   :  { %s3413_s21 = scalar_lea.vmem %s42_s13, 128  ;;  %p3418_p6 = scmp.lt.s32.totalorder %s42_s13, %s42_s13 }
  0x2c   :  { %p3414_p5 = scmp.ne.s32.totalorder %s42_s13, %s3413_s21  ;;  %p3419_p7 = scmp.lt.s32.totalorder %s3413_s21, %s3413_s21 }
  0x2e   :  { %p3420_p8 = por %p3419_p7, %p3418_p6 }
  0x30   :  { %p3421_p9 = pnand %p3420_p8, %p3414_p5 }
  0x32   :  { %3424 = shalt.err (!%p3421_p9)
}
  0x33   :  { %44 = dma.hbm_to_vmem [thread:$0]  %s5530_s2, 128, %s42_s13, [#allocation6]  }
  0x34   :  { %3447 = dma.done.wait [#allocation3], 384  }
  0x35   :  { %3448 = vsyncadd [#allocation3], 4294966912 }
  0x36   :  { %3449 = dma.done.wait [#allocation6], 4224  }
  0x37   :  { %3450 = vsyncadd [#allocation6], 4294963072  ;;  %v3460_v0 = vmov 0.0   ;;  %v58_v1 = vld [vmem:[#allocation5 + $0x8] sm:$0xff]  ;;  %v60_v3 = vld [vmem:[#allocation5 + $0x18] sm:$0xff]  ;;  %vm131_vm0 = vcmask 261120   ;;  %v91_v52 = vlaneseq }
  0x38   :  { %205 = vmatprep.mubr.f32.mxu0 %v3460_v0  ;;  %288 = vmatprep.mubr.f32.mxu1 %v3460_v0  ;;  %v66_v2 = vld [vmem:[#allocation5 + $0x48] sm:$0xff]  ;;  %v68_v5 = vld [vmem:[#allocation5 + $0x58] sm:$0xff]  ;;  %v57_v6 = vld [vmem:[#allocation5] sm:$0xff]  ;;  %s3467_s2 = smov [#allocation8]  }
  0x39   :  { %v3119_v4 = vpack.c.bf16 %v66_v2, %v58_v1  ;;  %v65_v7 = vld [vmem:[#allocation5 + $0x40] sm:$0xff]  ;;  %v3127_v8 = vpack.c.bf16 %v68_v5, %v60_v3  ;;  %v59_v10 = vld [vmem:[#allocation5 + $0x10] sm:$0xff]  ;;  %v74_v12 = vld [vmem:[#allocation5 + $0x88] sm:$0xff]  ;;  %v3551_v53 = vshrl.u32 %v91_v52, 7  ;;  %s2998_s25 = sshll.u32 %s3467_s2, 4  ;;  %s2999_s25 = int_to_ptr.vmem [resolvable:$true] %s2998_s25 }
  0x3a   :  { %v3121_v9 = vpack.c.bf16 %v65_v7, %v57_v6  ;;  %v67_v11 = vld [vmem:[#allocation5 + $0x50] sm:$0xff]  ;;  %v82_v14 = vld [vmem:[#allocation5 + $0xc8] sm:$0xff]  ;;  %v76_v15 = vld [vmem:[#allocation5 + $0x98] sm:$0xff]  ;;  %s3425_s26 = scalar_lea.vmem %s2999_s25, 3072  ;;  %p3430_p11 = scmp.lt.s32.totalorder %s2999_s25, %s2999_s25 }
  0x3b   :  { %3120 = vmatprep.subr.bf16.mxu0 %v3119_v4  ;;  %v3129_v13 = vpack.c.bf16 %v67_v11, %v59_v10  ;;  %v84_v16 = vld [vmem:[#allocation5 + $0xd8] sm:$0xff]  ;;  %3128 = vmatprep.subr.bf16.mxu1 %v3127_v8  ;;  %v3123_v17 = vpack.c.bf16 %v82_v14, %v74_v12  ;;  %v73_v19 = vld [vmem:[#allocation5 + $0x80] sm:$0xff]  ;;  %v75_v21 = vld [vmem:[#allocation5 + $0x90] sm:$0xff]  ;;  %v93_v54 = vsub.s32 0, %v3551_v53  ;;  %v101_v56 = vsub.s32 2, %v3551_v53  ;;  %p3426_p10 = scmp.ne.s32.totalorder %s2999_s25, %s3425_s26  ;;  %p3431_p12 = scmp.lt.s32.totalorder %s3425_s26, %s3425_s26 }
  0x3c   :  { %3122 = vmatpush1.bf16.msra.mxu0 %v3121_v9  ;;  %v3131_v18 = vpack.c.bf16 %v84_v16, %v76_v15  ;;  %v81_v20 = vld [vmem:[#allocation5 + $0xc0] sm:$0xff]  ;;  %v83_v23 = vld [vmem:[#allocation5 + $0xd0] sm:$0xff]  ;;  %v62_v24 = vld [vmem:[#allocation5 + $0x28] sm:$0xff]  ;;  %v97_v57 = vsub.s32 1, %v3551_v53 }
  0x3d   :  { %3130 = vmatpush1.bf16.msra.mxu1 %v3129_v13  ;;  %v3125_v22 = vpack.c.bf16 %v81_v20, %v73_v19  ;;  %3124 = vmatprep.subr.bf16.mxu0 %v3123_v17  ;;  %v3133_v25 = vpack.c.bf16 %v83_v23, %v75_v21  ;;  %v70_v26 = vld [vmem:[#allocation5 + $0x68] sm:$0xff]  ;;  %v64_v27 = vld [vmem:[#allocation5 + $0x38] sm:$0xff]  ;;  %v61_v31 = vld [vmem:[#allocation5 + $0x20] sm:$0xff]  ;;  %v105_v20 = vsub.s32 3, %v3551_v53  ;;  %p3432_p13 = por %p3431_p12, %p3430_p11 }
  0x3e   :  { %3132 = vmatprep.subr.bf16.mxu1 %v3131_v18  ;;  %v72_v28 = vld [vmem:[#allocation5 + $0x78] sm:$0xff]  ;;  %v3135_v29 = vpack.c.bf16 %v70_v26, %v62_v24  ;;  %v69_v32 = vld [vmem:[#allocation5 + $0x60] sm:$0xff]  ;;  %v63_v33 = vld [vmem:[#allocation5 + $0x30] sm:$0xff] }
  0x3f   :  { %v3143_v30 = vpack.c.bf16 %v72_v28, %v64_v27  ;;  %v54_v34 = vld [vmem:[#allocation2] sm:$0xff]  ;;  %v3137_v35 = vpack.c.bf16 %v69_v32, %v61_v31  ;;  %v71_v36 = vld [vmem:[#allocation5 + $0x70] sm:$0xff]  ;;  %v80_v40 = vld [vmem:[#allocation5 + $0xb8] sm:$0xff]  ;;  %p3433_p0 = pnand %p3432_p13, %p3426_p10 }
  0x40   :  { %3126 = vmatpush1.bf16.msra.mxu0 %v3125_v22  ;;  %v78_v37 = vld [vmem:[#allocation5 + $0xa8] sm:$0xff]  ;;  %v3145_v38 = vpack.c.bf16 %v71_v36, %v63_v33  ;;  %v88_v41 = vld [vmem:[#allocation5 + $0xf8] sm:$0xff]  ;;  %v77_v43 = vld [vmem:[#allocation5 + $0xa0] sm:$0xff]  ;;  %v3461_v36 = vmov 683565275  }
  0x41   :  { %3134 = vmatpush1.bf16.msra.mxu1 %v3133_v25  ;;  %3136 = vmatprep.subr.bf16.mxu0 %v3135_v29  ;;  %v86_v39 = vld [vmem:[#allocation5 + $0xe8] sm:$0xff]  ;;  %v85_v44 = vld [vmem:[#allocation5 + $0xe0] sm:$0xff]  ;;  %v3147_v45 = vpack.c.bf16 %v88_v41, %v80_v40  ;;  %v79_v46 = vld [vmem:[#allocation5 + $0xb0] sm:$0xff]  ;;  %v3462_v40 = vmov 2475754826  }
  0x42   :  { %3144 = vmatprep.subr.bf16.mxu1 %v3143_v30  ;;  %v3139_v42 = vpack.c.bf16 %v86_v39, %v78_v37  ;;  %v87_v47 = vld [vmem:[#allocation5 + $0xf0] sm:$0xff]  ;;  %v3141_v49 = vpack.c.bf16 %v85_v44, %v77_v43  ;;  %v56_v51 = vld [vmem:[#allocation2 + $0x10] sm:$0xff]  ;;  %v89_v55 = vld [vmem:[#allocation7] sm:$0xff]  ;;  %v3464_v44 = vmov 2102212464  }
  0x43   :  { %3011 = vmatmul.mubr.msk.f32.vlgmr.msra.gmra.mrb[0].mxu0 %vm131_vm0, %v54_v34  ;;  %v55_v48 = vld [vmem:[#allocation2 + $0x8] sm:$0xff]  ;;  %v3149_v50 = vpack.c.bf16 %v87_v47, %v79_v46  ;;  %v3556_v58 = vrot.slane %v89_v55, %v93_v54  ;;  %v3558_v59 = vrot.slane %v89_v55, %v101_v56  ;;  %v3560_v60 = vrot.slane %v89_v55, %v97_v57 }
  0x44   :  { %3014 = vmatmul.mubr.msk.f32.vlgmr.msra.gmra.mrb[0].mxu1 %vm131_vm0, %v54_v34  ;;  %3138 = vmatpush1.bf16.msra.mxu0 %v3137_v35  ;;  %v3591_v30 = vrot.slane %v89_v55, %v105_v20  ;;  %v3465_v46 = vmov 920167782   ;;  %v3466_v54 = vmov 1326507024  }
  0x45   :  { %3146 = vmatpush1.bf16.msra.mxu1 %v3145_v38  ;;  %211 = vmatprep.mubr.f32.mxu0 %v3460_v0 }
  0x46   :  { %294 = vmatprep.mubr.f32.mxu1 %v3460_v0  ;;  %3140 = vmatprep.subr.bf16.mxu0 %v3139_v42  ;;  %v3463_v42 = vmov 2131351028  }
  0x47   :  { %3012 = vmatmul.mubr.msk.f32.gmra.mrb[2].mxu0 %vm131_vm0, %v55_v48  ;;  %3148 = vmatprep.subr.bf16.mxu1 %v3147_v45 }
  0x48   :  { %3015 = vmatmul.mubr.msk.f32.gmra.mrb[2].mxu1 %vm131_vm0, %v55_v48  ;;  %217 = vmatprep.mubr.f32.mxu0 %v3460_v0 }
  0x49   :  { %300 = vmatprep.mubr.f32.mxu1 %v3460_v0  ;;  %3142 = vmatpush1.bf16.msra.mxu0 %v3141_v49 }
  0x4a   :  { %3150 = vmatpush1.bf16.msra.mxu1 %v3149_v50 }
  0x4b   :  { %3013 = vmatmul.mubr.msk.f32.gmra.mrb[4].mxu0 %vm131_vm0, %v56_v51 }
  0x4c   :  { %3016 = vmatmul.mubr.msk.f32.gmra.mrb[4].mxu1 %vm131_vm0, %v56_v51  ;;  %371 = vmatprep.mubr.f32.mxu0 %v3460_v0 }
  0x4d   :  { %454 = vmatprep.mubr.f32.mxu1 %v3460_v0 }
  0x4f   :  { %3017 = vmatmul.mubr.msk.f32.vlgmr.msra.gmra.mrb[6].mxu0 %vm131_vm0, %v54_v34 }
  0x50   :  { %3020 = vmatmul.mubr.msk.f32.vlgmr.msra.gmra.mrb[6].mxu1 %vm131_vm0, %v54_v34  ;;  %377 = vmatprep.mubr.f32.mxu0 %v3460_v0 }
  0x51   :  { %460 = vmatprep.mubr.f32.mxu1 %v3460_v0 }
  0x53   :  { %3018 = vmatmul.mubr.msk.f32.gmra.mrb[8].mxu0 %vm131_vm0, %v55_v48 }
  0x54   :  { %3021 = vmatmul.mubr.msk.f32.gmra.mrb[8].mxu1 %vm131_vm0, %v55_v48  ;;  %383 = vmatprep.mubr.f32.mxu0 %v3460_v0 }
  0x55   :  { %466 = vmatprep.mubr.f32.mxu1 %v3460_v0 }
  0x57   :  { %3019 = vmatmul.mubr.msk.f32.gmra.mrb[10].mxu0 %vm131_vm0, %v56_v51 }
  0x58   :  { %3022 = vmatmul.mubr.msk.f32.gmra.mrb[10].mxu1 %vm131_vm0, %v56_v51 }
 0x116   :  { %v207_v61 = vpop.f32.mrb[0].mxu0 }
 0x117   :  { %v3563_v62 = vadd.f32 %v207_v61, %v3556_v58  ;;  %v290_v63 = vpop.f32.mrb[0].mxu1  ;;  %v209_v0 = vpop.f32.mrb[1].mxu0 }
 0x118   :  { %v3566_v1 = vadd.f32 %v290_v63, %v3558_v59  ;;  %v3569_v2 = vadd.f32 %v209_v0, %v3560_v60  ;;  %v3571_v3 = vpop.f32.mrb[1].mxu1 }
 0x119   :  { %v473_v4 = vand.u32 2147483647, %v3563_v62  ;;  %v476_v5 = vand.u32 2139095040, %v3563_v62  ;;  %vm475_vm0 = vcmp.lt.s32.totalorder %v3563_v62, 0 }
 0x11a   :  { %v679_v6 = vand.u32 2147483647, %v3566_v1  ;;  %v682_v7 = vand.u32 2139095040, %v3566_v1  ;;  %v3577_v8 = vpop.f32.mrb[2].mxu0  ;;  %v579_v13 = vand.u32 2139095040, %v3569_v2 }
 0x11b   :  { %v477_v9 = vshrl.u32 %v476_v5, 23  ;;  %v480_v10 = vand.u32 8388607, %v473_v4  ;;  %v3584_v15 = vpop.f32.mrb[2].mxu1  ;;  %v3586_v16 = vpop.f32.mrb[3].mxu0 }
 0x11c   :  { %v683_v11 = vshrl.u32 %v682_v7, 23  ;;  %v686_v12 = vand.u32 8388607, %v679_v6  ;;  %v580_v18 = vshrl.u32 %v579_v13, 23  ;;  %v3589_v25 = vpop.f32.mrb[3].mxu1 }
 0x11d   :  { %v3023_v14 = vadd.s32 4294967169, %v477_v9  ;;  %v481_v21 = vor.u32 8388608, %v480_v10  ;;  %v576_v33 = vand.u32 2147483647, %v3569_v2 }
 0x11e   :  { %v3031_v17 = vadd.s32 4294967169, %v683_v11  ;;  %v687_v22 = vor.u32 8388608, %v686_v12  ;;  %v3027_v24 = vadd.s32 4294967169, %v580_v18 }
 0x11f   :  { %v483_v19 = vadd.s32 1, %v3023_v14  ;;  %v3593_v31 = vshll.u32 %v481_v21, 8 }
 0x120   :  { %v689_v23 = vadd.s32 1, %v3031_v17  ;;  %v3595_v32 = vshll.u32 %v687_v22, 8  ;;  %v3598_v34 = vadd.s32 1, %v3027_v24 }
 0x121   :  { %vm484_vm1 = vcmp.gt.s32.totalorder %v483_v19, 0 }
 0x122   :  { %v485_v26 = vsel %vm484_vm1, %v483_v19, 0  ;;  %vm690_vm2 = vcmp.gt.s32.totalorder %v689_v23, 0  ;;  %vm587_vm7 = vcmp.gt.s32.totalorder %v3598_v34, 0 }
 0x123   :  { %v486_v27 = vshrl.u32 %v485_v26, 5  ;;  %v487_v28 = vand.u32 31, %v485_v26  ;;  %v691_v29 = vsel %vm690_vm2, %v689_v23, 0 }
 0x124   :  { %v3601_v38 = vshrl.u32 %v691_v29, 5  ;;  %v693_v39 = vand.u32 31, %v691_v29 }
 0x125   :  { %v488_v35 = vsub.s32 32, %v487_v28  ;;  %v490_v37 = vshll.u32 %v3461_v36, %v487_v28  ;;  %v493_v41 = vshll.u32 %v3462_v40, %v487_v28  ;;  %v496_v43 = vshll.u32 %v3463_v42, %v487_v28 }
 0x126   :  { %v499_v45 = vshll.u32 %v3464_v44, %v487_v28  ;;  %v502_v47 = vshll.u32 %v3465_v46, %v487_v28  ;;  %vm505_vm3 = vcmp.lt.s32.totalorder %v486_v27, 1  ;;  %vm506_vm4 = vcmp.lt.s32.totalorder %v486_v27, 2 }
 0x127   :  { %v491_v48 = vshrl.u32 %v3462_v40, %v488_v35  ;;  %v494_v49 = vshrl.u32 %v3463_v42, %v488_v35  ;;  %v497_v50 = vshrl.u32 %v3464_v44, %v488_v35  ;;  %v489_v51 = vshrl.u32 %v3461_v36, %v488_v35 }
 0x128   :  { %v500_v52 = vshrl.u32 %v3465_v46, %v488_v35  ;;  %v503_v55 = vshrl.u32 %v3466_v54, %v488_v35  ;;  %v694_v63 = vsub.s32 32, %v693_v39  ;;  %vm507_vm5 = vcmp.lt.s32.totalorder %v486_v27, 3 }
 0x129   :  { %v492_v56 = vor.u32 %v491_v48, %v490_v37  ;;  %v495_v57 = vor.u32 %v494_v49, %v493_v41  ;;  %v498_v61 = vor.u32 %v497_v50, %v496_v43  ;;  %vm508_vm6 = vcmp.lt.s32.totalorder %v486_v27, 4 }
 0x12a   :  { %v501_v0 = vor.u32 %v500_v52, %v499_v45  ;;  %v504_v5 = vor.u32 %v503_v55, %v502_v47  ;;  %v696_v17 = vshll.u32 %v3461_v36, %v693_v39  ;;  %v697_v20 = vshrl.u32 %v3462_v40, %v694_v63 }
 0x12b   :  { %v509_v7 = vsel %vm505_vm3, %v489_v51, %v492_v56  ;;  %v510_v9 = vsel %vm508_vm6, %v498_v61, 2102212464  ;;  %v513_v10 = vsel %vm505_vm3, %v492_v56, %v495_v57  ;;  %v517_v11 = vsel %vm505_vm3, %v495_v57, %v498_v61 }
 0x12c   :  { %v511_v12 = vsel %vm507_vm5, %v495_v57, %v510_v9  ;;  %v514_v13 = vsel %vm508_vm6, %v501_v0, 920167782  ;;  %v518_v14 = vsel %vm508_vm6, %v504_v5, 1326507024  ;;  %v699_v21 = vshll.u32 %v3462_v40, %v693_v39 }
 0x12d   :  { %v515_v18 = vsel %vm507_vm5, %v498_v61, %v514_v13  ;;  %v519_v19 = vsel %vm507_vm5, %v501_v0, %v518_v14  ;;  %v512_v22 = vsel %vm506_vm4, %v509_v7, %v511_v12  ;;  %v700_v26 = vshrl.u32 %v3463_v42, %v694_v63 }
 0x12e   :  { %v516_v23 = vsel %vm506_vm4, %v513_v10, %v515_v18  ;;  %v520_v24 = vsel %vm506_vm4, %v517_v11, %v519_v19  ;;  %v698_v41 = vor.u32 %v697_v20, %v696_v17  ;;  %v702_v45 = vshll.u32 %v3463_v42, %v693_v39 }
 0x12f   :  { %v3625_v28 = vmul.u32.u64.low %v3593_v31, %v520_v24  ;;  %v3626_v29 = vmul.u32.u64.high %v3593_v31, %v520_v24, %v3625_v28  ;;  %v3629_v35 = vmul.u32.u64.low %v3593_v31, %v516_v23  ;;  %v3630_v37 = vmul.u32.u64.high %v3593_v31, %v516_v23, %v3629_v35 }
 0x130   :  { %v701_v43 = vor.u32 %v700_v26, %v699_v21  ;;  %v703_v47 = vshrl.u32 %v3464_v44, %v694_v63  ;;  %v695_v27 = vshrl.u32 %v3461_v36, %v694_v63  ;;  %v705_v48 = vshll.u32 %v3464_v44, %v693_v39 }
 0x131   :  { %v706_v49 = vshrl.u32 %v3465_v46, %v694_v63  ;;  %v709_v50 = vshrl.u32 %v3466_v54, %v694_v63  ;;  %v528_v51 = vmul.u32 %v3593_v31, %v512_v22  ;;  %v708_v55 = vshll.u32 %v3465_v46, %v693_v39 }
 0x132   :  { %v704_v52 = vor.u32 %v703_v47, %v702_v45  ;;  %vm711_vm8 = vcmp.lt.s32.totalorder %v3601_v38, 1  ;;  %vm530_vm9 = vc.u32 %v3626_v29, %v3629_v35  ;;  %v531_v56 = vadd.s32 1, %v3630_v37 }
 0x133   :  { %v707_v57 = vor.u32 %v706_v49, %v705_v48  ;;  %vm712_vm10 = vcmp.lt.s32.totalorder %v3601_v38, 2  ;;  %v710_v61 = vor.u32 %v709_v50, %v708_v55  ;;  %vm713_vm11 = vcmp.lt.s32.totalorder %v3601_v38, 3 }
 0x134   :  { %vm714_vm12 = vcmp.lt.s32.totalorder %v3601_v38, 4  ;;  %v719_v63 = vsel %vm711_vm8, %v698_v41, %v701_v43  ;;  %v532_v31 = vsel %vm530_vm9, %v531_v56, %v3630_v37  ;;  %v723_v5 = vsel %vm711_vm8, %v701_v43, %v704_v52 }
 0x135   :  { %v716_v0 = vsel %vm714_vm12, %v704_v52, 2102212464  ;;  %v720_v39 = vsel %vm714_vm12, %v707_v57, 920167782  ;;  %v533_v7 = vadd.s32 %v532_v31, %v528_v51  ;;  %v715_v9 = vsel %vm711_vm8, %v695_v27, %v698_v41 }
 0x136   :  { %v721_v10 = vsel %vm713_vm11, %v704_v52, %v720_v39  ;;  %v724_v11 = vsel %vm714_vm12, %v710_v61, 1326507024  ;;  %v717_v12 = vsel %vm713_vm11, %v701_v43, %v716_v0  ;;  %v588_v17 = vsel %vm587_vm7, %v3598_v34, 0  ;;  %v3671_v34 = vpop.f32.mrb[4].mxu0 }
 0x137   :  { %v722_v13 = vsel %vm712_vm10, %v719_v63, %v721_v10  ;;  %v725_v14 = vsel %vm713_vm11, %v707_v57, %v724_v11  ;;  %v534_v18 = vadd.s32 536870912, %v533_v7  ;;  %v583_v24 = vand.u32 8388607, %v576_v33 }
 0x138   :  { %v726_v19 = vsel %vm712_vm10, %v723_v5, %v725_v14  ;;  %v3657_v20 = vmul.u32.u64.low %v3595_v32, %v722_v13  ;;  %v3658_v21 = vmul.u32.u64.high %v3595_v32, %v722_v13, %v3657_v20  ;;  %v3669_v26 = vadd.f32 %v3571_v3, %v3591_v30 }
 0x139   :  { %v3662_v22 = vmul.u32.u64.low %v3595_v32, %v726_v19  ;;  %v3663_v23 = vmul.u32.u64.high %v3595_v32, %v726_v19, %v3662_v22  ;;  %v3673_v28 = vshrl.u32 %v534_v18, 30  ;;  %v718_v37 = vsel %vm712_vm10, %v715_v9, %v717_v12 }
 0x13a   :  { %v590_v41 = vand.u32 31, %v588_v17  ;;  %v737_v45 = vadd.s32 1, %v3658_v21  ;;  %v734_v27 = vmul.u32 %v3595_v32, %v718_v37  ;;  %v584_v3 = vor.u32 8388608, %v583_v24 }
 0x13b   :  { %v536_v43 = vshll.u32 %v3673_v28, 30  ;;  %vm736_vm13 = vc.u32 %v3663_v23, %v3657_v20  ;;  %v785_v48 = vand.u32 2139095040, %v3669_v26  ;;  %v782_v57 = vand.u32 2147483647, %v3669_v26 }
 0x13c   :  { %v591_v47 = vsub.s32 32, %v590_v41  ;;  %v738_v50 = vsel %vm736_vm13, %v737_v45, %v3658_v21  ;;  %v593_v56 = vshll.u32 %v3461_v36, %v590_v41  ;;  %v596_v63 = vshll.u32 %v3462_v40, %v590_v41 }
 0x13d   :  { %v3683_v49 = vsub.s32 %v533_v7, %v536_v43  ;;  %v739_v38 = vadd.s32 %v738_v50, %v734_v27  ;;  %v3693_v31 = vshll.u32 %v584_v3, 8  ;;  %v786_v0 = vshrl.u32 %v785_v48, 23 }
 0x13e   :  { %v594_v51 = vshrl.u32 %v3462_v40, %v591_v47  ;;  %v597_v52 = vshrl.u32 %v3463_v42, %v591_v47  ;;  %v600_v32 = vshrl.u32 %v3464_v44, %v591_v47  ;;  %v589_v5 = vshrl.u32 %v588_v17, 5 }
 0x13f   :  { %v539_v55 = vsub.s32 0, %v3683_v49  ;;  %v740_v61 = vadd.s32 536870912, %v739_v38  ;;  %v599_v9 = vshll.u32 %v3463_v42, %v590_v41  ;;  %v602_v12 = vshll.u32 %v3464_v44, %v590_v41 }
 0x140   :  { %v595_v7 = vor.u32 %v594_v51, %v593_v56  ;;  %v598_v11 = vor.u32 %v597_v52, %v596_v63  ;;  %v603_v13 = vshrl.u32 %v3465_v46, %v591_v47  ;;  %v605_v19 = vshll.u32 %v3465_v46, %v590_v41 }
 0x141   :  { %v3024_v39 = vmin.u32 %v539_v55, %v3683_v49  ;;  %v3697_v10 = vshrl.u32 %v740_v61, 30  ;;  %v601_v18 = vor.u32 %v600_v32, %v599_v9  ;;  %v606_v21 = vshrl.u32 %v3466_v54, %v591_v47 }
 0x142   :  { %v529_v22 = vadd.s32 %v3629_v35, %v3626_v29  ;;  %v604_v24 = vor.u32 %v603_v13, %v602_v12  ;;  %v3035_v37 = vadd.s32 4294967169, %v786_v0  ;;  %vm608_vm14 = vcmp.lt.s32.totalorder %v589_v5, 1 }
 0x143   :  { %v541_v14 = vclz %v3024_v39  ;;  %v742_v17 = vshll.u32 %v3697_v10, 30  ;;  %v607_v45 = vor.u32 %v606_v21, %v605_v19  ;;  %vm611_vm15 = vcmp.lt.s32.totalorder %v589_v5, 4 }
 0x144   :  { %vm609_vm1 = vcmp.lt.s32.totalorder %v589_v5, 2  ;;  %vm610_vm2 = vcmp.lt.s32.totalorder %v589_v5, 3  ;;  %v617_v41 = vsel %vm611_vm15, %v604_v24, 920167782  ;;  %v616_v3 = vsel %vm608_vm14, %v595_v7, %v598_v11 }
 0x145   :  { %v3025_v43 = vadd.s32 4294967294, %v541_v14  ;;  %v3707_v27 = vsub.s32 %v739_v38, %v742_v17  ;;  %v618_v29 = vsel %vm610_vm2, %v601_v18, %v617_v41  ;;  %v621_v35 = vsel %vm611_vm15, %v607_v45, 1326507024 }
 0x146   :  { %v592_v51 = vshrl.u32 %v3461_v36, %v591_v47  ;;  %v620_v52 = vsel %vm608_vm14, %v598_v11, %v601_v18  ;;  %vm3718_vm4 = vcmp.le.f32.partialorder %v473_v4, 0.7853982  ;;  %v613_v32 = vsel %vm611_vm15, %v601_v18, 2102212464 }
 0x147   :  { %vm3026_vm3 = vcmp.lt.s32.totalorder %v3025_v43, 0  ;;  %v745_v50 = vsub.s32 0, %v3707_v27  ;;  %v622_v61 = vsel %vm610_vm2, %v604_v24, %v621_v35  ;;  %v559_v63 = vsub.s32 4, %v3673_v28 }
 0x148   :  { %v544_v48 = vsel %vm3026_vm3, 0, %v3025_v43  ;;  %vm681_vm5 = vcmp.lt.s32.totalorder %v3566_v1, 0  ;;  %v612_v0 = vsel %vm608_vm14, %v592_v51, %v595_v7  ;;  %v619_v39 = vsel %vm609_vm1, %v616_v3, %v618_v29  ;;  %v3755_v51 = vpop.f32.mrb[4].mxu1 }
 0x149   :  { %v545_v55 = vsub.s32 32, %v544_v48  ;;  %v549_v56 = vsub.s32 4294967266, %v544_v48  ;;  %v3032_v47 = vmin.u32 %v745_v50, %v3707_v27  ;;  %v546_v4 = vshll.u32 %v3683_v49, %v544_v48 }
 0x14a   :  { %v623_v13 = vsel %vm609_vm1, %v620_v52, %v622_v61  ;;  %v614_v18 = vsel %vm610_vm2, %v598_v11, %v613_v32  ;;  %v3737_v43 = vmul.u32.u64.low %v3693_v31, %v619_v39  ;;  %v3738_v7 = vmul.u32.u64.high %v3693_v31, %v619_v39, %v3737_v43 }
 0x14b   :  { %v547_v9 = vshrl.u32 %v529_v22, %v545_v55  ;;  %v550_v12 = vadd.s32 127, %v549_v56  ;;  %v747_v14 = vclz %v3032_v47  ;;  %v735_v49 = vadd.s32 %v3657_v20, %v3663_v23 }
 0x14c   :  { %v3733_v19 = vmul.u32.u64.low %v3693_v31, %v623_v13  ;;  %v3734_v21 = vmul.u32.u64.high %v3693_v31, %v623_v13, %v3733_v19  ;;  %v3745_v45 = vand.u32 8388607, %v782_v57  ;;  %v792_v11 = vadd.s32 1, %v3035_v37 }
 0x14d   :  { %v548_v17 = vor.u32 %v547_v9, %v546_v4  ;;  %v551_v24 = vshll.u32 %v550_v12, 23  ;;  %v3033_v22 = vadd.s32 4294967294, %v747_v14  ;;  %v560_v3 = vsel %vm475_vm0, %v559_v63, %v3673_v28 }
 0x14e   :  { %v765_v29 = vsub.s32 4, %v3697_v10  ;;  %v615_v35 = vsel %vm609_vm1, %v612_v0, %v614_v18  ;;  %vm633_vm7 = vc.u32 %v3734_v21, %v3737_v43  ;;  %vm793_vm8 = vcmp.gt.s32.totalorder %v792_v11, 0 }
 0x14f   :  { %v552_v41 = vor.u32 4788187, %v551_v24  ;;  %v555_v48 = vcvt.s32.f32 %v548_v17  ;;  %vm3034_vm6 = vcmp.lt.s32.totalorder %v3033_v22, 0  ;;  %v634_v50 = vadd.s32 1, %v3738_v7 }
 0x150   :  { %v750_v23 = vsel %vm3034_vm6, 0, %v3033_v22  ;;  %v794_v37 = vsel %vm793_vm8, %v792_v11, 0  ;;  %v562_v28 = vsel %vm3718_vm4, 0, %v560_v3  ;;  %v631_v5 = vmul.u32 %v3693_v31, %v615_v35 }
 0x151   :  { %v553_v20 = vand.u32 2147483647, %v552_v41  ;;  %v751_v52 = vsub.s32 32, %v750_v23  ;;  %v755_v55 = vsub.s32 4294967266, %v750_v23  ;;  %v766_v32 = vsel %vm681_vm5, %v765_v29, %v3697_v10 }
 0x152   :  { %v635_v61 = vsel %vm633_vm7, %v634_v50, %v3738_v7  ;;  %v796_v63 = vand.u32 31, %v794_v37  ;;  %v752_v47 = vshll.u32 %v3707_v27, %v750_v23  ;;  %v3765_v12 = vand.u32 3, %v562_v28 }
 0x153   :  { %v556_v56 = vmul.f32 %v555_v48, %v553_v20  ;;  %v753_v0 = vshrl.u32 %v735_v49, %v751_v52  ;;  %v756_v39 = vadd.s32 127, %v755_v55  ;;  %v636_v4 = vadd.s32 %v635_v61, %v631_v5 }
 0x154   :  { %vm3769_vm9 = vcmp.le.f32.partialorder %v679_v6, 0.7853982  ;;  %v797_v13 = vsub.s32 32, %v796_v63  ;;  %v790_v17 = vor.u32 8388608, %v3745_v45  ;;  %v3778_v24 = vshrl.u32 %v794_v37, 5 }
 0x155   :  { %v557_v9 = vxor.u32 2147483648, %v556_v56  ;;  %v754_v14 = vor.u32 %v753_v0, %v752_v47  ;;  %v757_v10 = vshll.u32 %v756_v39, 23  ;;  %v768_v18 = vsel %vm3769_vm9, 0, %v766_v32 }
 0x156   :  { %v637_v19 = vadd.s32 536870912, %v636_v4  ;;  %v800_v7 = vshrl.u32 %v3462_v40, %v797_v13  ;;  %v803_v11 = vshrl.u32 %v3463_v42, %v797_v13  ;;  %v799_v41 = vshll.u32 %v3461_v36, %v796_v63 }
 0x157   :  { %v558_v27 = vsel %vm475_vm0, %v557_v9, %v556_v56  ;;  %v758_v49 = vor.u32 4788187, %v757_v10  ;;  %v802_v3 = vshll.u32 %v3462_v40, %v796_v63  ;;  %v806_v45 = vshrl.u32 %v3464_v44, %v797_v13 }
 0x158   :  { %v561_v6 = vsel %vm3718_vm4, %v3563_v62, %v558_v27  ;;  %v3784_v22 = vshrl.u32 %v637_v19, 30  ;;  %v761_v35 = vcvt.s32.f32 %v754_v14  ;;  %v801_v20 = vor.u32 %v800_v7, %v799_v41 }
 0x159   :  { %3262 = vcosq.f32 %v561_v6  ;;  %v759_v29 = vand.u32 2147483647, %v758_v49  ;;  %v805_v38 = vshll.u32 %v3463_v42, %v796_v63  ;;  %v808_v23 = vshll.u32 %v3464_v44, %v796_v63 }
 0x15a   :  { %3264 = vsinq.f32 %v561_v6  ;;  %v639_v48 = vshll.u32 %v3784_v22, 30  ;;  %v809_v50 = vshrl.u32 %v3465_v46, %v797_v13  ;;  %v804_v52 = vor.u32 %v803_v11, %v802_v3 }
 0x15b   :  { %v762_v37 = vmul.f32 %v761_v35, %v759_v29  ;;  %v812_v55 = vshrl.u32 %v3466_v54, %v797_v13  ;;  %vm571_vm10 = vcmp.eq.s32.totalorder %v3765_v12, 2  ;;  %v3798_v5 = vand.u32 3, %v768_v18 }
 0x15c   :  { %v3794_v28 = vsub.s32 %v636_v4, %v639_v48  ;;  %v807_v56 = vor.u32 %v806_v45, %v805_v38  ;;  %v810_v32 = vor.u32 %v809_v50, %v808_v23  ;;  %v811_v61 = vshll.u32 %v3465_v46, %v796_v63 }
 0x15d   :  { %vm568_vm11 = vcmp.eq.s32.totalorder %v3765_v12, 0  ;;  %v763_v47 = vxor.u32 2147483648, %v762_v37  ;;  %v3803_v39 = vshll.u32 %v790_v17, 8  ;;  %v3807_v4 = vadd.f32 %v3577_v8, %v3556_v58 }
 0x15e   :  { %v642_v0 = vsub.s32 0, %v3794_v28  ;;  %vm567_vm12 = vcmp.lt.s32.totalorder %v3765_v12, 2  ;;  %v798_v9 = vshrl.u32 %v3461_v36, %v797_v13  ;;  %v813_v14 = vor.u32 %v812_v55, %v811_v61 }
 0x15f   :  { %vm814_vm13 = vcmp.lt.s32.totalorder %v3778_v24, 1  ;;  %vm815_vm14 = vcmp.lt.s32.totalorder %v3778_v24, 2  ;;  %vm565_vm15 = vweird.f32 %v3563_v62  ;;  %v764_v63 = vsel %vm681_vm5, %v763_v47, %v762_v37 }
 0x160   :  { %v3028_v10 = vmin.u32 %v642_v0, %v3794_v28  ;;  %vm817_vm0 = vcmp.lt.s32.totalorder %v3778_v24, 4  ;;  %v822_v8 = vsel %vm814_vm13, %v801_v20, %v804_v52  ;;  %v767_v13 = vsel %vm3769_vm9, %v3566_v1, %v764_v63 }
 0x161   :  { %vm816_vm1 = vcmp.lt.s32.totalorder %v3778_v24, 3  ;;  %v819_v18 = vsel %vm817_vm0, %v807_v56, 2102212464  ;;  %v823_v19 = vsel %vm817_vm0, %v810_v32, 920167782  ;;  %3266 = vcosq.f32 %v767_v13 }
 0x162   :  { %v644_v27 = vclz %v3028_v10  ;;  %v824_v17 = vsel %vm816_vm1, %v807_v56, %v823_v19  ;;  %v826_v7 = vsel %vm814_vm13, %v804_v52, %v807_v56  ;;  %3268 = vsinq.f32 %v767_v13  ;;  %v3865_v10 = vpop.f32.mrb[5].mxu0 }
 0x163   :  { %v3263_v6 = vpop.eup %3262  ;;  %v818_v49 = vsel %vm814_vm13, %v798_v9, %v801_v20  ;;  %v825_v31 = vsel %vm815_vm14, %v822_v8, %v824_v17  ;;  %v827_v11 = vsel %vm817_vm0, %v813_v14, 1326507024  ;;  %vm578_vm2 = vcmp.lt.s32.totalorder %v3569_v2, 0 }
 0x164   :  { %v3265_v41 = vpop.eup %3264  ;;  %v572_v3 = vxor.u32 2147483648, %v3263_v6  ;;  %v3029_v45 = vadd.s32 4294967294, %v644_v27  ;;  %v820_v29 = vsel %vm816_vm1, %v804_v52, %v819_v18  ;;  %v828_v35 = vsel %vm816_vm1, %v810_v32, %v827_v11 }
 0x165   :  { %v569_v48 = vxor.u32 2147483648, %v3265_v41  ;;  %v829_v38 = vsel %vm815_vm14, %v826_v7, %v828_v35  ;;  %v3840_v20 = vmul.u32.u64.low %v3803_v39, %v825_v31  ;;  %v3841_v23 = vmul.u32.u64.high %v3803_v39, %v825_v31, %v3840_v20 }
 0x166   :  { %v573_v50 = vsel %vm571_vm10, %v572_v3, %v3265_v41  ;;  %vm3030_vm3 = vcmp.lt.s32.totalorder %v3029_v45, 0  ;;  %v3847_v37 = vmul.u32.u64.low %v3803_v39, %v829_v38  ;;  %v3848_v55 = vmul.u32.u64.high %v3803_v39, %v829_v38, %v3847_v37 }
 0x167   :  { %v570_v52 = vsel %vm568_vm11, %v3263_v6, %v569_v48  ;;  %vm3854_vm4 = vcmp.le.f32.partialorder %v576_v33, 0.7853982  ;;  %v632_v32 = vadd.s32 %v3737_v43, %v3734_v21  ;;  %v647_v61 = vsel %vm3030_vm3, 0, %v3029_v45 }
 0x168   :  { %v1297_v47 = vand.u32 2147483647, %v3807_v4  ;;  %v574_v0 = vsel %vm567_vm12, %v570_v52, %v573_v50  ;;  %v648_v9 = vsub.s32 32, %v647_v61  ;;  %v652_v14 = vsub.s32 4294967266, %v647_v61 }
 0x169   :  { %v821_v63 = vsel %vm815_vm14, %v818_v49, %v820_v29  ;;  %v575_v33 = vsel %vm565_vm15, nan, %v574_v0  ;;  %vm771_vm5 = vweird.f32 %v3566_v1  ;;  %v662_v21 = vsub.s32 4, %v3784_v22 }
 0x16a   :  { %v840_v43 = vadd.s32 1, %v3841_v23  ;;  %v1300_v8 = vand.u32 2139095040, %v3807_v4  ;;  %v2945_v12 = vmul.f32 0.044194173, %v575_v33  ;;  %v649_v13 = vshll.u32 %v3794_v28, %v647_v61 }
 0x16b   :  { %v650_v18 = vshrl.u32 %v632_v32, %v648_v9  ;;  %v653_v19 = vadd.s32 127, %v652_v14  ;;  %vm773_vm6 = vcmp.lt.s32.totalorder %v3798_v5, 2  ;;  %v837_v24 = vmul.u32 %v3803_v39, %v821_v63  ;;  %v3267_v27 = vpop.eup %3266 }
 0x16c   :  { %vm839_vm7 = vc.u32 %v3848_v55, %v3840_v20  ;;  %v1301_v62 = vshrl.u32 %v1300_v8, 23  ;;  %2969 = vst [vmem:[#allocation8] sm:$0xff] %v2945_v12  ;;  %v3881_v49 = vadd.f32 %v3584_v15, %v3558_v59  ;;  %v3269_v28 = vpop.eup %3268  ;;  %v778_v31 = vxor.u32 2147483648, %v3267_v27 }
 0x16d   :  { %v651_v17 = vor.u32 %v650_v18, %v649_v13  ;;  %v654_v7 = vshll.u32 %v653_v19, 23  ;;  %v841_v6 = vsel %vm839_vm7, %v840_v43, %v3841_v23  ;;  %v663_v39 = vsel %vm578_vm2, %v662_v21, %v3784_v22 }
 0x16e   :  { %v842_v11 = vadd.s32 %v841_v6, %v837_v24  ;;  %v3055_v41 = vadd.s32 4294967169, %v1301_v62  ;;  %v775_v3 = vxor.u32 2147483648, %v3269_v28  ;;  %vm777_vm8 = vcmp.eq.s32.totalorder %v3798_v5, 2 }
 0x16f   :  { %v655_v45 = vor.u32 4788187, %v654_v7  ;;  %v1304_v29 = vand.u32 8388607, %v1297_v47  ;;  %vm774_vm9 = vcmp.eq.s32.totalorder %v3798_v5, 0  ;;  %v779_v35 = vsel %vm777_vm8, %v778_v31, %v3269_v28 }
 0x170   :  { %v843_v15 = vadd.s32 536870912, %v842_v11  ;;  %v1307_v48 = vadd.s32 1, %v3055_v41  ;;  %v776_v38 = vsel %vm774_vm9, %v3267_v27, %v775_v3  ;;  %v658_v50 = vcvt.s32.f32 %v651_v17 }
 0x171   :  { %v656_v23 = vand.u32 2147483647, %v655_v45  ;;  %v665_v22 = vsel %vm3854_vm4, 0, %v663_v39  ;;  %v780_v37 = vsel %vm773_vm6, %v776_v38, %v779_v35  ;;  %v1506_v32 = vand.u32 2139095040, %v3881_v49 }
 0x172   :  { %v844_v52 = vshrl.u32 %v843_v15, 30  ;;  %vm1308_vm10 = vcmp.gt.s32.totalorder %v1307_v48, 0  ;;  %v781_v61 = vsel %vm771_vm5, nan, %v780_v37  ;;  %v1305_v9 = vor.u32 8388608, %v1304_v29 }
 0x173   :  { %v659_v0 = vmul.f32 %v658_v50, %v656_v23  ;;  %v1309_v14 = vsel %vm1308_vm10, %v1307_v48, 0  ;;  %v2947_v63 = vmul.f32 0.044194173, %v781_v61  ;;  %v1503_v21 = vand.u32 2147483647, %v3881_v49 }
 0x174   :  { %v845_v33 = vshll.u32 %v844_v52, 30  ;;  %v3898_v8 = vand.u32 3, %v665_v22  ;;  %vm784_vm11 = vcmp.lt.s32.totalorder %v3669_v26, 0  ;;  %v1311_v5 = vand.u32 31, %v1309_v14 }
 0x175   :  { %v660_v43 = vxor.u32 2147483648, %v659_v0  ;;  %2971 = vst [vmem:[#allocation8 + $0x10] sm:$0xff] %v2947_v63  ;;  %v3903_v12 = vadd.s32 %v3840_v20, %v3848_v55  ;;  %v868_v13 = vsub.s32 4, %v844_v52  ;;  %v1507_v18 = vshrl.u32 %v1506_v32, 23 }
 0x176   :  { %v3905_v1 = vsub.s32 %v842_v11, %v845_v33  ;;  %v3909_v24 = vshrl.u32 %v1309_v14, 5  ;;  %v1312_v62 = vsub.s32 32, %v1311_v5  ;;  %v3911_v27 = vshll.u32 %v1305_v9, 8 }
 0x177   :  { %v661_v19 = vsel %vm578_vm2, %v660_v43, %v659_v0  ;;  %v1314_v20 = vshll.u32 %v3461_v36, %v1311_v5  ;;  %v3920_v55 = vand.u32 8388607, %v1503_v21  ;;  %v1317_v28 = vshll.u32 %v3462_v40, %v1311_v5 }
 0x178   :  { %v664_v17 = vsel %vm3854_vm4, %v3569_v2, %v661_v19  ;;  %v848_v7 = vsub.s32 0, %v3905_v1  ;;  %v1315_v6 = vshrl.u32 %v3462_v40, %v1312_v62  ;;  %v1318_v31 = vshrl.u32 %v3463_v42, %v1312_v62  ;;  %v3960_v19 = vpop.f32.mrb[5].mxu1 }
 0x179   :  { %3270 = vcosq.f32 %v664_v17  ;;  %v3928_v56 = vsel %vm784_vm11, %v868_v13, %v844_v52  ;;  %v3063_v11 = vadd.s32 4294967169, %v1507_v18  ;;  %v1320_v45 = vshll.u32 %v3463_v42, %v1311_v5 }
 0x17a   :  { %3272 = vsinq.f32 %v664_v17  ;;  %v3036_v39 = vmin.u32 %v848_v7, %v3905_v1  ;;  %v1316_v41 = vor.u32 %v1315_v6, %v1314_v20  ;;  %v1319_v3 = vor.u32 %v1318_v31, %v1317_v28 }
 0x17b   :  { %vm1329_vm12 = vcmp.lt.s32.totalorder %v3909_v24, 1  ;;  %v1321_v35 = vshrl.u32 %v3464_v44, %v1312_v62  ;;  %v1323_v15 = vshll.u32 %v3464_v44, %v1311_v5  ;;  %v1324_v48 = vshrl.u32 %v3465_v46, %v1312_v62 }
 0x17c   :  { %v850_v29 = vclz %v3036_v39  ;;  %vm674_vm13 = vcmp.eq.s32.totalorder %v3898_v8, 2  ;;  %v1313_v38 = vshrl.u32 %v3461_v36, %v1312_v62  ;;  %v1326_v23 = vshll.u32 %v3465_v46, %v1311_v5 }
 0x17d   :  { %v1327_v50 = vshrl.u32 %v3466_v54, %v1312_v62  ;;  %vm1331_vm14 = vcmp.lt.s32.totalorder %v3909_v24, 3  ;;  %vm671_vm15 = vcmp.eq.s32.totalorder %v3898_v8, 0  ;;  %v1322_v37 = vor.u32 %v1321_v35, %v1320_v45 }
 0x17e   :  { %v3037_v22 = vadd.s32 4294967294, %v850_v29  ;;  %v1325_v52 = vor.u32 %v1324_v48, %v1323_v15  ;;  %vm1332_vm0 = vcmp.lt.s32.totalorder %v3909_v24, 4  ;;  %vm670_vm1 = vcmp.lt.s32.totalorder %v3898_v8, 2 }
 0x17f   :  { %vm3945_vm2 = vcmp.le.f32.partialorder %v782_v57, 0.7853982  ;;  %v1328_v61 = vor.u32 %v1327_v50, %v1326_v23  ;;  %v1333_v0 = vsel %vm1329_vm12, %v1313_v38, %v1316_v41  ;;  %v1337_v9 = vsel %vm1329_vm12, %v1316_v41, %v1319_v3 }
 0x180   :  { %v1513_v14 = vadd.s32 1, %v3063_v11  ;;  %vm668_vm3 = vweird.f32 %v3569_v2  ;;  %vm3038_vm4 = vcmp.lt.s32.totalorder %v3037_v22, 0  ;;  %v1334_v63 = vsel %vm1332_vm0, %v1322_v37, 2102212464 }
 0x181   :  { %v1338_v33 = vsel %vm1332_vm0, %v1325_v52, 920167782  ;;  %v1341_v43 = vsel %vm1329_vm12, %v1319_v3, %v1322_v37  ;;  %v853_v57 = vsel %vm3038_vm4, 0, %v3037_v22  ;;  %v1335_v5 = vsel %vm1331_vm14, %v1319_v3, %v1334_v63 }
 0x182   :  { %v1339_v13 = vsel %vm1331_vm14, %v1322_v37, %v1338_v33  ;;  %v1342_v18 = vsel %vm1332_vm0, %v1328_v61, 1326507024  ;;  %v854_v62 = vsub.s32 32, %v853_v57  ;;  %v855_v17 = vshll.u32 %v3905_v1, %v853_v57 }
 0x183   :  { %v858_v7 = vsub.s32 4294967266, %v853_v57  ;;  %vm1330_vm5 = vcmp.lt.s32.totalorder %v3909_v24, 2  ;;  %v3271_v20 = vpop.eup %3270  ;;  %v1343_v31 = vsel %vm1331_vm14, %v1325_v52, %v1342_v18  ;;  %vm1514_vm6 = vcmp.gt.s32.totalorder %v1513_v14, 0 }
 0x184   :  { %v1336_v6 = vsel %vm1330_vm5, %v1333_v0, %v1335_v5  ;;  %v1340_v28 = vsel %vm1330_vm5, %v1337_v9, %v1339_v13  ;;  %v3273_v39 = vpop.eup %3272  ;;  %v675_v11 = vxor.u32 2147483648, %v3271_v20  ;;  %v856_v41 = vshrl.u32 %v3903_v12, %v854_v62 }
 0x185   :  { %v859_v3 = vadd.s32 127, %v858_v7  ;;  %v1344_v45 = vsel %vm1330_vm5, %v1341_v43, %v1343_v31  ;;  %v672_v29 = vxor.u32 2147483648, %v3273_v39  ;;  %v1515_v15 = vsel %vm1514_vm6, %v1513_v14, 0 }
 0x186   :  { %v3968_v35 = vmul.u32.u64.low %v3911_v27, %v1344_v45  ;;  %v3969_v1 = vmul.u32.u64.high %v3911_v27, %v1344_v45, %v3968_v35  ;;  %v676_v48 = vsel %vm674_vm13, %v675_v11, %v3273_v39  ;;  %v857_v38 = vor.u32 %v856_v41, %v855_v17 }
 0x187   :  { %v860_v23 = vshll.u32 %v859_v3, 23  ;;  %v1511_v24 = vor.u32 8388608, %v3920_v55  ;;  %v673_v50 = vsel %vm671_vm15, %v3271_v20, %v672_v29  ;;  %v1517_v37 = vand.u32 31, %v1515_v15 }
 0x188   :  { %v3977_v12 = vmul.u32.u64.low %v3911_v27, %v1340_v28  ;;  %v3978_v22 = vmul.u32.u64.high %v3911_v27, %v1340_v28, %v3977_v12  ;;  %v677_v52 = vsel %vm670_vm1, %v673_v50, %v676_v48  ;;  %v871_v0 = vsel %vm3945_vm2, 0, %v3928_v56 }
 0x189   :  { %v861_v61 = vor.u32 4788187, %v860_v23  ;;  %v1352_v9 = vmul.u32 %v3911_v27, %v1336_v6  ;;  %v678_v55 = vsel %vm668_vm3, nan, %v677_v52  ;;  %v864_v14 = vcvt.s32.f32 %v857_v38 }
 0x18a   :  { %v1516_v63 = vshrl.u32 %v1515_v15, 5  ;;  %v1518_v33 = vsub.s32 32, %v1517_v37  ;;  %v2946_v43 = vmul.f32 0.044194173, %v678_v55  ;;  %vm1354_vm7 = vc.u32 %v3969_v1, %v3977_v12 }
 0x18b   :  { %v862_v57 = vand.u32 2147483647, %v861_v61  ;;  %v1520_v8 = vshll.u32 %v3461_v36, %v1517_v37  ;;  %v1355_v5 = vadd.s32 1, %v3978_v22  ;;  %v1523_v56 = vshll.u32 %v3462_v40, %v1517_v37 }
 0x18c   :  { %v1521_v13 = vshrl.u32 %v3462_v40, %v1518_v33  ;;  %v1524_v27 = vshrl.u32 %v3463_v42, %v1518_v33  ;;  %2970 = vst [vmem:[#allocation8 + $0x8] sm:$0xff] %v2946_v43  ;;  %v1526_v18 = vshll.u32 %v3463_v42, %v1517_v37  ;;  %v1527_v62 = vshrl.u32 %v3464_v44, %v1518_v33 }
 0x18d   :  { %v865_v2 = vmul.f32 %v864_v14, %v862_v57  ;;  %v1529_v17 = vshll.u32 %v3464_v44, %v1517_v37  ;;  %v1356_v7 = vsel %vm1354_vm7, %v1355_v5, %v3978_v22  ;;  %v1530_v28 = vshrl.u32 %v3465_v46, %v1518_v33 }
 0x18e   :  { %v1522_v20 = vor.u32 %v1521_v13, %v1520_v8  ;;  %v1525_v6 = vor.u32 %v1524_v27, %v1523_v56  ;;  %v1357_v39 = vadd.s32 %v1356_v7, %v1352_v9  ;;  %v1528_v11 = vor.u32 %v1527_v62, %v1526_v18 }
 0x18f   :  { %v866_v31 = vxor.u32 2147483648, %v865_v2  ;;  %v1551_v41 = vshll.u32 %v1511_v24, 8  ;;  %v1531_v3 = vor.u32 %v1530_v28, %v1529_v17  ;;  %v1532_v45 = vshll.u32 %v3465_v46, %v1517_v37 }
 0x190   :  { %v1533_v29 = vshrl.u32 %v3466_v54, %v1518_v33  ;;  %vm1535_vm8 = vcmp.lt.s32.totalorder %v1516_v63, 1  ;;  %v1358_v15 = vadd.s32 536870912, %v1357_v39  ;;  %v1519_v48 = vshrl.u32 %v3461_v36, %v1518_v33 }
 0x191   :  { %v867_v35 = vsel %vm784_vm11, %v866_v31, %v865_v2  ;;  %vm1537_vm9 = vcmp.lt.s32.totalorder %v1516_v63, 3  ;;  %vm1538_vm10 = vcmp.lt.s32.totalorder %v1516_v63, 4  ;;  %v1543_v24 = vsel %vm1535_vm8, %v1522_v20, %v1525_v6 }
 0x192   :  { %v870_v38 = vsel %vm3945_vm2, %v3669_v26, %v867_v35  ;;  %v1534_v23 = vor.u32 %v1533_v29, %v1532_v45  ;;  %v1359_v50 = vshrl.u32 %v1358_v15, 30  ;;  %v1540_v22 = vsel %vm1538_vm10, %v1528_v11, 2102212464 }
 0x193   :  { %3274 = vcosq.f32 %v870_v38  ;;  %v1544_v37 = vsel %vm1538_vm10, %v1531_v3, 920167782  ;;  %vm1536_vm12 = vcmp.lt.s32.totalorder %v1516_v63, 2  ;;  %v1547_v61 = vsel %vm1535_vm8, %v1525_v6, %v1528_v11 }
 0x194   :  { %3276 = vsinq.f32 %v870_v38  ;;  %v1545_v52 = vsel %vm1537_vm9, %v1528_v11, %v1544_v37  ;;  %v1360_v9 = vshll.u32 %v1359_v50, 30  ;;  %v1539_v55 = vsel %vm1535_vm8, %v1519_v48, %v1522_v20 }
 0x195   :  { %v1546_v32 = vsel %vm1536_vm12, %v1543_v24, %v1545_v52  ;;  %v1548_v14 = vsel %vm1538_vm10, %v1534_v23, 1326507024  ;;  %v1541_v33 = vsel %vm1537_vm9, %v1525_v6, %v1540_v22  ;;  %v4025_v56 = vadd.f32 %v3586_v16, %v3560_v60 }
 0x196   :  { %v1549_v43 = vsel %vm1537_vm9, %v1531_v3, %v1548_v14  ;;  %v4016_v57 = vmul.u32.u64.low %v1551_v41, %v1546_v32  ;;  %v4017_v8 = vmul.u32.u64.high %v1551_v41, %v1546_v32, %v4016_v57  ;;  %v4020_v5 = vsub.s32 %v1357_v39, %v1360_v9  ;;  %v4058_v9 = vpop.f32.mrb[6].mxu0 }
 0x197   :  { %v1550_v13 = vsel %vm1536_vm12, %v1547_v61, %v1549_v43  ;;  %v875_v18 = vand.u32 3, %v871_v0  ;;  %v1542_v17 = vsel %vm1536_vm12, %v1539_v55, %v1541_v33  ;;  %vm874_vm11 = vweird.f32 %v3669_v26 }
 0x198   :  { %v4027_v27 = vmul.u32.u64.low %v1551_v41, %v1550_v13  ;;  %v4028_v2 = vmul.u32.u64.high %v1551_v41, %v1550_v13, %v4027_v27  ;;  %v1363_v62 = vsub.s32 0, %v4020_v5  ;;  %v1561_v7 = vadd.s32 1, %v4017_v8 }
 0x199   :  { %v1403_v20 = vand.u32 2139095040, %v4025_v56  ;;  %vm4037_vm13 = vcmp.le.f32.partialorder %v1297_v47, 0.7853982  ;;  %vm1299_vm14 = vcmp.lt.s32.totalorder %v3807_v4, 0  ;;  %v1383_v0 = vsub.s32 4, %v1359_v50 }
 0x19a   :  { %v3056_v16 = vmin.u32 %v1363_v62, %v4020_v5  ;;  %v1558_v28 = vmul.u32 %v1551_v41, %v1542_v17  ;;  %vm1560_vm15 = vc.u32 %v4028_v2, %v4016_v57  ;;  %v1400_v63 = vand.u32 2147483647, %v4025_v56 }
 0x19b   :  { %v1404_v31 = vshrl.u32 %v1403_v20, 23  ;;  %vm876_vm0 = vcmp.lt.s32.totalorder %v875_v18, 2  ;;  %v1562_v47 = vsel %vm1560_vm15, %v1561_v7, %v4017_v8  ;;  %v4049_v3 = vadd.f32 %v3589_v25, %v3591_v30 }
 0x19c   :  { %v1365_v11 = vclz %v3056_v16  ;;  %vm877_vm1 = vcmp.eq.s32.totalorder %v875_v18, 0  ;;  %v1563_v35 = vadd.s32 %v1562_v47, %v1558_v28  ;;  %vm880_vm2 = vcmp.eq.s32.totalorder %v875_v18, 2 }
 0x19d   :  { %v3275_v39 = vpop.eup %3274  ;;  %v3059_v41 = vadd.s32 4294967169, %v1404_v31  ;;  %v1384_v38 = vsel %vm1299_vm14, %v1383_v0, %v1359_v50  ;;  %v1407_v22 = vand.u32 8388607, %v1400_v63  ;;  %v1353_v25 = vadd.s32 %v3977_v12, %v3969_v1 }
 0x19e   :  { %v3277_v45 = vpop.eup %3276  ;;  %v881_v29 = vxor.u32 2147483648, %v3275_v39  ;;  %v3057_v48 = vadd.s32 4294967294, %v1365_v11  ;;  %v1564_v24 = vadd.s32 536870912, %v1563_v35  ;;  %v1609_v61 = vand.u32 2139095040, %v4049_v3 }
 0x19f   :  { %v878_v15 = vxor.u32 2147483648, %v3277_v45  ;;  %v1410_v37 = vadd.s32 1, %v3059_v41  ;;  %v1386_v8 = vsel %vm4037_vm13, 0, %v1384_v38  ;;  %v1408_v12 = vor.u32 8388608, %v1407_v22 }
 0x1a0   :  { %v882_v23 = vsel %vm880_vm2, %v881_v29, %v3277_v45  ;;  %vm3058_vm3 = vcmp.lt.s32.totalorder %v3057_v48, 0  ;;  %v1565_v14 = vshrl.u32 %v1564_v24, 30  ;;  %v1610_v26 = vshrl.u32 %v1609_v61, 23 }
 0x1a1   :  { %v879_v52 = vsel %vm877_vm1, %v3275_v39, %v878_v15  ;;  %v1368_v32 = vsel %vm3058_vm3, 0, %v3057_v48  ;;  %vm1411_vm4 = vcmp.gt.s32.totalorder %v1410_v37, 0  ;;  %vm1505_vm5 = vcmp.lt.s32.totalorder %v3881_v49, 0 }
 0x1a2   :  { %v883_v55 = vsel %vm876_vm0, %v879_v52, %v882_v23  ;;  %v1369_v33 = vsub.s32 32, %v1368_v32  ;;  %v1373_v43 = vsub.s32 4294967266, %v1368_v32  ;;  %v1566_v1 = vshll.u32 %v1565_v14, 30 }
 0x1a3   :  { %v884_v50 = vsel %vm874_vm11, nan, %v883_v55  ;;  %v1412_v27 = vsel %vm1411_vm4, %v1410_v37, 0  ;;  %v1370_v62 = vshll.u32 %v4020_v5, %v1368_v32  ;;  %v1589_v16 = vsub.s32 4, %v1565_v14 }
 0x1a4   :  { %v2948_v13 = vmul.f32 0.044194173, %v884_v50  ;;  %v1371_v17 = vshrl.u32 %v1353_v25, %v1369_v33  ;;  %v1374_v18 = vadd.s32 127, %v1373_v43  ;;  %v1414_v7 = vand.u32 31, %v1412_v27 }
 0x1a5   :  { %v4066_v20 = vsub.s32 %v1563_v35, %v1566_v1  ;;  %v4069_v39 = vand.u32 3, %v1386_v8  ;;  %v1559_v11 = vadd.s32 %v4016_v57, %v4028_v2  ;;  %v1606_v47 = vand.u32 2147483647, %v4049_v3 }
 0x1a6   :  { %2972 = vst [vmem:[#allocation8 + $0x18] sm:$0xff] %v2948_v13  ;;  %v1372_v0 = vor.u32 %v1371_v17, %v1370_v62  ;;  %v1375_v28 = vshll.u32 %v1374_v18, 23  ;;  %v1415_v31 = vsub.s32 32, %v1414_v7  ;;  %v4075_v29 = vshrl.u32 %v1412_v27, 5 }
 0x1a7   :  { %v1569_v5 = vsub.s32 0, %v4066_v20  ;;  %v4078_v41 = vshll.u32 %v1408_v12, 8  ;;  %v4083_v48 = vsel %vm1505_vm5, %v1589_v16, %v1565_v14  ;;  %v1417_v38 = vshll.u32 %v3461_v36, %v1414_v7 }
 0x1a8   :  { %v1376_v45 = vor.u32 4788187, %v1375_v28  ;;  %v1418_v35 = vshrl.u32 %v3462_v40, %v1415_v31  ;;  %v3067_v57 = vadd.s32 4294967169, %v1610_v26  ;;  %v1379_v23 = vcvt.s32.f32 %v1372_v0 }
 0x1a9   :  { %v3064_v15 = vmin.u32 %v1569_v5, %v4066_v20  ;;  %v1420_v24 = vshll.u32 %v3462_v40, %v1414_v7  ;;  %v1421_v22 = vshrl.u32 %v3463_v42, %v1415_v31  ;;  %v1424_v52 = vshrl.u32 %v3464_v44, %v1415_v31 }
 0x1aa   :  { %v1377_v2 = vand.u32 2147483647, %v1376_v45  ;;  %v1426_v25 = vshll.u32 %v3464_v44, %v1414_v7  ;;  %v1427_v61 = vshrl.u32 %v3465_v46, %v1415_v31  ;;  %v1419_v32 = vor.u32 %v1418_v35, %v1417_v38  ;;  %v4121_v38 = vpop.f32.mrb[6].mxu1 }
 0x1ab   :  { %v1571_v37 = vclz %v3064_v15  ;;  %v1423_v14 = vshll.u32 %v3463_v42, %v1414_v7  ;;  %v1430_v50 = vshrl.u32 %v3466_v54, %v1415_v31  ;;  %v1422_v43 = vor.u32 %v1421_v22, %v1420_v24 }
 0x1ac   :  { %v1380_v55 = vmul.f32 %v1379_v23, %v1377_v2  ;;  %v1428_v8 = vor.u32 %v1427_v61, %v1426_v25  ;;  %v1429_v13 = vshll.u32 %v3465_v46, %v1414_v7  ;;  %vm4096_vm6 = vcmp.le.f32.partialorder %v1503_v21, 0.7853982 }
 0x1ad   :  { %v3065_v33 = vadd.s32 4294967294, %v1571_v37  ;;  %v1416_v27 = vshrl.u32 %v3461_v36, %v1415_v31  ;;  %v1425_v62 = vor.u32 %v1424_v52, %v1423_v14  ;;  %vm1432_vm7 = vcmp.lt.s32.totalorder %v4075_v29, 1 }
 0x1ae   :  { %v1381_v1 = vxor.u32 2147483648, %v1380_v55  ;;  %v1431_v17 = vor.u32 %v1430_v50, %v1429_v13  ;;  %vm1433_vm9 = vcmp.lt.s32.totalorder %v4075_v29, 2  ;;  %vm1435_vm10 = vcmp.lt.s32.totalorder %v4075_v29, 4 }
 0x1af   :  { %vm3066_vm8 = vcmp.lt.s32.totalorder %v3065_v33, 0  ;;  %vm1434_vm12 = vcmp.lt.s32.totalorder %v4075_v29, 3  ;;  %v1441_v21 = vsel %vm1435_vm10, %v1428_v8, 920167782  ;;  %v1440_v28 = vsel %vm1432_vm7, %v1419_v32, %v1422_v43 }
 0x1b0   :  { %v1382_v18 = vsel %vm1299_vm14, %v1381_v1, %v1380_v55  ;;  %v1574_v7 = vsel %vm3066_vm8, 0, %v3065_v33  ;;  %v1437_v5 = vsel %vm1435_vm10, %v1425_v62, 2102212464  ;;  %v1442_v45 = vsel %vm1434_vm12, %v1425_v62, %v1441_v21 }
 0x1b1   :  { %v1385_v16 = vsel %vm4037_vm13, %v3807_v4, %v1382_v18  ;;  %v1575_v26 = vsub.s32 32, %v1574_v7  ;;  %v1579_v0 = vsub.s32 4294967266, %v1574_v7  ;;  %v1576_v31 = vshll.u32 %v4066_v20, %v1574_v7 }
 0x1b2   :  { %3278 = vcosq.f32 %v1385_v16  ;;  %v1444_v6 = vsel %vm1432_vm7, %v1422_v43, %v1425_v62  ;;  %v1436_v2 = vsel %vm1432_vm7, %v1416_v27, %v1419_v32  ;;  %v1443_v20 = vsel %vm1433_vm9, %v1440_v28, %v1442_v45 }
 0x1b3   :  { %3280 = vsinq.f32 %v1385_v16  ;;  %v1577_v35 = vshrl.u32 %v1559_v11, %v1575_v26  ;;  %v1580_v15 = vadd.s32 127, %v1579_v0  ;;  %v1445_v23 = vsel %vm1435_vm10, %v1431_v17, 1326507024 }
 0x1b4   :  { %v1616_v24 = vadd.s32 1, %v3067_v57  ;;  %v1438_v11 = vsel %vm1434_vm12, %v1422_v43, %v1437_v5  ;;  %v1446_v52 = vsel %vm1434_vm12, %v1428_v8, %v1445_v23  ;;  %v1592_v57 = vsel %vm4096_vm6, 0, %v4083_v48 }
 0x1b5   :  { %v1578_v22 = vor.u32 %v1577_v35, %v1576_v31  ;;  %v1581_v37 = vshll.u32 %v1580_v15, 23  ;;  %v1447_v25 = vsel %vm1433_vm9, %v1444_v6, %v1446_v52  ;;  %vm1391_vm13 = vcmp.lt.s32.totalorder %v4069_v39, 2 }
 0x1b6   :  { %v4136_v61 = vmul.u32.u64.low %v4078_v41, %v1443_v20  ;;  %v4137_v55 = vmul.u32.u64.high %v4078_v41, %v1443_v20, %v4136_v61  ;;  %vm1617_vm11 = vcmp.gt.s32.totalorder %v1616_v24, 0  ;;  %v1439_v33 = vsel %vm1433_vm9, %v1436_v2, %v1438_v11 }
 0x1b7   :  { %v1582_v32 = vor.u32 4788187, %v1581_v37  ;;  %v4144_v14 = vmul.u32.u64.low %v4078_v41, %v1447_v25  ;;  %v4145_v50 = vmul.u32.u64.high %v4078_v41, %v1447_v25, %v4144_v14  ;;  %v1618_v43 = vsel %vm1617_vm11, %v1616_v24, 0 }
 0x1b8   :  { %vm1389_vm14 = vweird.f32 %v3807_v4  ;;  %vm1392_vm15 = vcmp.eq.s32.totalorder %v4069_v39, 0  ;;  %v1585_v13 = vcvt.s32.f32 %v1578_v22  ;;  %v1620_v1 = vand.u32 31, %v1618_v43 }
 0x1b9   :  { %v1583_v8 = vand.u32 2147483647, %v1582_v32  ;;  %vm1395_vm0 = vcmp.eq.s32.totalorder %v4069_v39, 2  ;;  %v4153_v48 = vand.u32 3, %v1592_v57  ;;  %v1458_v27 = vadd.s32 1, %v4137_v55 }
 0x1ba   :  { %v1613_v62 = vand.u32 8388607, %v1606_v47  ;;  %v1455_v29 = vmul.u32 %v4078_v41, %v1439_v33  ;;  %vm1457_vm1 = vc.u32 %v4145_v50, %v4136_v61  ;;  %v1621_v18 = vsub.s32 32, %v1620_v1 }
 0x1bb   :  { %v1586_v17 = vmul.f32 %v1585_v13, %v1583_v8  ;;  %v1459_v21 = vsel %vm1457_vm1, %v1458_v27, %v4137_v55  ;;  %v4162_v16 = vshrl.u32 %v1618_v43, 5  ;;  %v1623_v26 = vshll.u32 %v3461_v36, %v1620_v1 }
 0x1bc   :  { %v3279_v7 = vpop.eup %3278  ;;  %v4167_v0 = vadd.f32 %v3671_v34, %v3556_v58  ;;  %v1460_v45 = vadd.s32 %v1459_v21, %v1455_v29  ;;  %v1626_v41 = vshll.u32 %v3462_v40, %v1620_v1  ;;  %v1624_v15 = vshrl.u32 %v3462_v40, %v1621_v18 }
 0x1bd   :  { %v3281_v28 = vpop.eup %3280  ;;  %v1396_v31 = vxor.u32 2147483648, %v3279_v7  ;;  %v1587_v5 = vxor.u32 2147483648, %v1586_v17  ;;  %v1627_v6 = vshrl.u32 %v3463_v42, %v1621_v18  ;;  %v1630_v2 = vshrl.u32 %v3464_v44, %v1621_v18 }
 0x1be   :  { %v1393_v35 = vxor.u32 2147483648, %v3281_v28  ;;  %v1461_v34 = vadd.s32 536870912, %v1460_v45  ;;  %v1629_v23 = vshll.u32 %v3463_v42, %v1620_v1  ;;  %v1625_v37 = vor.u32 %v1624_v15, %v1623_v26 }
 0x1bf   :  { %v1397_v20 = vsel %vm1395_vm0, %v1396_v31, %v3281_v28  ;;  %v1588_v58 = vsel %vm1505_vm5, %v1587_v5, %v1586_v17  ;;  %v1632_v11 = vshll.u32 %v3464_v44, %v1620_v1  ;;  %v1628_v55 = vor.u32 %v1627_v6, %v1626_v41 }
 0x1c0   :  { %v1394_v24 = vsel %vm1392_vm15, %v3279_v7, %v1393_v35  ;;  %v1591_v22 = vsel %vm4096_vm6, %v3881_v49, %v1588_v58  ;;  %v4186_v25 = vshrl.u32 %v1461_v34, 30  ;;  %v1631_v57 = vor.u32 %v1630_v2, %v1629_v23 }
 0x1c1   :  { %v1398_v52 = vsel %vm1391_vm13, %v1394_v24, %v1397_v20  ;;  %3282 = vcosq.f32 %v1591_v22  ;;  %v1633_v14 = vshrl.u32 %v3465_v46, %v1621_v18  ;;  %v1635_v43 = vshll.u32 %v3465_v46, %v1620_v1 }
 0x1c2   :  { %v1399_v32 = vsel %vm1389_vm14, nan, %v1398_v52  ;;  %3284 = vsinq.f32 %v1591_v22  ;;  %v1463_v12 = vshll.u32 %v4186_v25, 30  ;;  %v1636_v8 = vshrl.u32 %v3466_v54, %v1621_v18 }
 0x1c3   :  { %v2953_v33 = vmul.f32 0.044194173, %v1399_v32  ;;  %v1634_v39 = vor.u32 %v1633_v14, %v1632_v11  ;;  %v1614_v27 = vor.u32 8388608, %v1613_v62  ;;  %vm1638_vm2 = vcmp.lt.s32.totalorder %v4162_v16, 1 }
 0x1c4   :  { %v4194_v13 = vsub.s32 %v1460_v45, %v1463_v12  ;;  %v1637_v17 = vor.u32 %v1636_v8, %v1635_v43  ;;  %vm1640_vm3 = vcmp.lt.s32.totalorder %v4162_v16, 3  ;;  %vm1641_vm4 = vcmp.lt.s32.totalorder %v4162_v16, 4 }
 0x1c5   :  { %2977 = vst [vmem:[#allocation8 + $0x40] sm:$0xff] %v2953_v33  ;;  %v2124_v4 = vand.u32 2139095040, %v4167_v0  ;;  %vm1597_vm5 = vcmp.lt.s32.totalorder %v4153_v48, 2  ;;  %vm1402_vm6 = vcmp.lt.s32.totalorder %v4025_v56, 0  ;;  %v1643_v29 = vsel %vm1641_vm4, %v1631_v57, 2102212464 }
 0x1c6   :  { %v1466_v1 = vsub.s32 0, %v4194_v13  ;;  %v1646_v7 = vsel %vm1638_vm2, %v1625_v37, %v1628_v55  ;;  %v1647_v62 = vsel %vm1641_vm4, %v1634_v39, 920167782  ;;  %vm1595_vm7 = vweird.f32 %v3881_v49 }
 0x1c7   :  { %v1622_v21 = vshrl.u32 %v3461_v36, %v1621_v18  ;;  %v1648_v26 = vsel %vm1640_vm3, %v1631_v57, %v1647_v62  ;;  %v1650_v28 = vsel %vm1638_vm2, %v1628_v55, %v1631_v57  ;;  %v1651_v31 = vsel %vm1641_vm4, %v1637_v17, 1326507024 }
 0x1c8   :  { %v3060_v5 = vmin.u32 %v1466_v1, %v4194_v13  ;;  %v1486_v45 = vsub.s32 4, %v4186_v25  ;;  %vm1639_vm8 = vcmp.lt.s32.totalorder %v4162_v16, 2  ;;  %v1654_v41 = vshll.u32 %v1614_v27, 8 }
 0x1c9   :  { %v1642_v35 = vsel %vm1638_vm2, %v1622_v21, %v1625_v37  ;;  %v1644_v18 = vsel %vm1640_vm3, %v1628_v55, %v1643_v29  ;;  %v1649_v15 = vsel %vm1639_vm8, %v1646_v7, %v1648_v26  ;;  %v1652_v6 = vsel %vm1640_vm3, %v1634_v39, %v1651_v31 }
 0x1ca   :  { %v1468_v20 = vclz %v3060_v5  ;;  %v1653_v58 = vsel %vm1639_vm8, %v1650_v28, %v1652_v6  ;;  %v4224_v34 = vmul.u32.u64.low %v1654_v41, %v1649_v15  ;;  %v4225_v23 = vmul.u32.u64.high %v1654_v41, %v1649_v15, %v4224_v34 }
 0x1cb   :  { %v3283_v2 = vpop.eup %3282  ;;  %v4228_v37 = vmul.u32.u64.low %v1654_v41, %v1653_v58  ;;  %v4229_v11 = vmul.u32.u64.high %v1654_v41, %v1653_v58, %v4228_v37  ;;  %v2125_v52 = vshrl.u32 %v2124_v4, 23  ;;  %vm1598_vm9 = vcmp.eq.s32.totalorder %v4153_v48, 0 }
 0x1cc   :  { %v3285_v24 = vpop.eup %3284  ;;  %v1602_v22 = vxor.u32 2147483648, %v3283_v2  ;;  %vm1601_vm10 = vcmp.eq.s32.totalorder %v4153_v48, 2  ;;  %v3061_v32 = vadd.s32 4294967294, %v1468_v20  ;;  %v1645_v14 = vsel %vm1639_vm8, %v1642_v35, %v1644_v18 }
 0x1cd   :  { %v1599_v55 = vxor.u32 2147483648, %v3285_v24  ;;  %v2121_v33 = vand.u32 2147483647, %v4167_v0  ;;  %v3087_v12 = vadd.s32 4294967169, %v2125_v52  ;;  %v1456_v8 = vadd.s32 %v4136_v61, %v4145_v50  ;;  %v4248_v50 = vpop.f32.mrb[7].mxu0 }
 0x1ce   :  { %v1603_v57 = vsel %vm1601_vm10, %v1602_v22, %v3285_v24  ;;  %vm3062_vm12 = vcmp.lt.s32.totalorder %v3061_v32, 0  ;;  %v1664_v39 = vadd.s32 1, %v4225_v23  ;;  %v1487_v4 = vsel %vm1402_vm6, %v1486_v45, %v4186_v25 }
 0x1cf   :  { %v1600_v43 = vsel %vm1598_vm9, %v3283_v2, %v1599_v55  ;;  %v1471_v17 = vsel %vm3062_vm12, 0, %v3061_v32  ;;  %vm1663_vm11 = vc.u32 %v4229_v11, %v4224_v34  ;;  %v1661_v61 = vmul.u32 %v1654_v41, %v1645_v14 }
 0x1d0   :  { %v1604_v27 = vsel %vm1597_vm5, %v1600_v43, %v1603_v57  ;;  %v1472_v1 = vsub.s32 32, %v1471_v17  ;;  %v1476_v29 = vsub.s32 4294967266, %v1471_v17  ;;  %vm4252_vm13 = vcmp.le.f32.partialorder %v1400_v63, 0.7853982 }
 0x1d1   :  { %v1605_v16 = vsel %vm1595_vm7, nan, %v1604_v27  ;;  %v1665_v25 = vsel %vm1663_vm11, %v1664_v39, %v4225_v23  ;;  %v2131_v62 = vadd.s32 1, %v3087_v12  ;;  %v1473_v21 = vshll.u32 %v4194_v13, %v1471_v17 }
 0x1d2   :  { %v2955_v7 = vmul.f32 0.044194173, %v1605_v16  ;;  %v1474_v26 = vshrl.u32 %v1456_v8, %v1472_v1  ;;  %v1477_v49 = vadd.s32 127, %v1476_v29  ;;  %v1666_v28 = vadd.s32 %v1665_v25, %v1661_v61 }
 0x1d3   :  { %v1489_v31 = vsel %vm4252_vm13, 0, %v1487_v4  ;;  %v2128_v5 = vand.u32 8388607, %v2121_v33  ;;  %vm2132_vm14 = vcmp.gt.s32.totalorder %v2131_v62, 0  ;;  %v4264_v63 = vadd.f32 %v3755_v51, %v3558_v59 }
 0x1d4   :  { %2979 = vst [vmem:[#allocation8 + $0x50] sm:$0xff] %v2955_v7  ;;  %v1475_v45 = vor.u32 %v1474_v26, %v1473_v21  ;;  %v1478_v41 = vshll.u32 %v1477_v49, 23  ;;  %v1667_v35 = vadd.s32 536870912, %v1666_v28  ;;  %v2133_v18 = vsel %vm2132_vm14, %v2131_v62, 0 }
 0x1d5   :  { %v2135_v13 = vand.u32 31, %v2133_v18  ;;  %v4268_v2 = vand.u32 3, %v1489_v31  ;;  %v2129_v20 = vor.u32 8388608, %v2128_v5  ;;  %v2327_v23 = vand.u32 2147483647, %v4264_v63 }
 0x1d6   :  { %v1479_v15 = vor.u32 4788187, %v1478_v41  ;;  %v4266_v6 = vshrl.u32 %v1667_v35, 30  ;;  %v1482_v22 = vcvt.s32.f32 %v1475_v45  ;;  %v2330_v59 = vand.u32 2139095040, %v4264_v63 }
 0x1d7   :  { %v2136_v58 = vsub.s32 32, %v2135_v13  ;;  %v2138_v51 = vshll.u32 %v3461_v36, %v2135_v13  ;;  %v2141_v12 = vshll.u32 %v3462_v40, %v2135_v13  ;;  %v2134_v8 = vshrl.u32 %v2133_v18, 5 }
 0x1d8   :  { %v1480_v24 = vand.u32 2147483647, %v1479_v15  ;;  %v1669_v37 = vshll.u32 %v4266_v6, 30  ;;  %v2144_v39 = vshll.u32 %v3463_v42, %v2135_v13  ;;  %v2147_v27 = vshll.u32 %v3464_v44, %v2135_v13 }
 0x1d9   :  { %v2139_v52 = vshrl.u32 %v3462_v40, %v2136_v58  ;;  %v2142_v55 = vshrl.u32 %v3463_v42, %v2136_v58  ;;  %v2145_v32 = vshrl.u32 %v3464_v44, %v2136_v58  ;;  %v2148_v43 = vshrl.u32 %v3465_v46, %v2136_v58 }
 0x1da   :  { %v1483_v57 = vmul.f32 %v1482_v22, %v1480_v24  ;;  %v4277_v14 = vsub.s32 %v1666_v28, %v1669_v37  ;;  %v4283_v17 = vshll.u32 %v2129_v20, 8  ;;  %v2150_v25 = vshll.u32 %v3465_v46, %v2135_v13 }
 0x1db   :  { %v2140_v1 = vor.u32 %v2139_v52, %v2138_v51  ;;  %v2143_v29 = vor.u32 %v2142_v55, %v2141_v12  ;;  %v2146_v61 = vor.u32 %v2145_v32, %v2144_v39  ;;  %v2149_v7 = vor.u32 %v2148_v43, %v2147_v27  ;;  %v4310_v39 = vpop.f32.mrb[7].mxu1 }
 0x1dc   :  { %v1484_v4 = vxor.u32 2147483648, %v1483_v57  ;;  %v1672_v16 = vsub.s32 0, %v4277_v14  ;;  %v2151_v62 = vshrl.u32 %v3466_v54, %v2136_v58  ;;  %v2137_v49 = vshrl.u32 %v3461_v36, %v2136_v58 }
 0x1dd   :  { %v2331_v28 = vshrl.u32 %v2330_v59, 23  ;;  %vm2153_vm15 = vcmp.lt.s32.totalorder %v2134_v8, 1  ;;  %vm2154_vm0 = vcmp.lt.s32.totalorder %v2134_v8, 2  ;;  %vm2155_vm1 = vcmp.lt.s32.totalorder %v2134_v8, 3 }
 0x1de   :  { %v1485_v21 = vsel %vm1402_vm6, %v1484_v4, %v1483_v57  ;;  %v3068_v26 = vmin.u32 %v1672_v16, %v4277_v14  ;;  %v2152_v5 = vor.u32 %v2151_v62, %v2150_v25  ;;  %vm2156_vm2 = vcmp.lt.s32.totalorder %v2134_v8, 4 }
 0x1df   :  { %v1488_v31 = vsel %vm4252_vm13, %v4025_v56, %v1485_v21  ;;  %v2158_v41 = vsel %vm2156_vm2, %v2146_v61, 2102212464  ;;  %v2161_v35 = vsel %vm2153_vm15, %v2140_v1, %v2143_v29  ;;  %v2162_v18 = vsel %vm2156_vm2, %v2149_v7, 920167782 }
 0x1e0   :  { %3286 = vcosq.f32 %v1488_v31  ;;  %v1674_v45 = vclz %v3068_v26  ;;  %v2157_v15 = vsel %vm2153_vm15, %v2137_v49, %v2140_v1  ;;  %v2163_v20 = vsel %vm2155_vm1, %v2146_v61, %v2162_v18 }
 0x1e1   :  { %3288 = vsinq.f32 %v1488_v31  ;;  %v2165_v58 = vsel %vm2153_vm15, %v2143_v29, %v2146_v61  ;;  %v2159_v24 = vsel %vm2155_vm1, %v2143_v29, %v2158_v41  ;;  %v2164_v22 = vsel %vm2154_vm0, %v2161_v35, %v2163_v20 }
 0x1e2   :  { %v3069_v13 = vadd.s32 4294967294, %v1674_v45  ;;  %v2166_v48 = vsel %vm2156_vm2, %v2152_v5, 1326507024  ;;  %v3095_v37 = vadd.s32 4294967169, %v2331_v28  ;;  %vm4303_vm4 = vcmp.le.f32.partialorder %v1606_v47, 0.7853982 }
 0x1e3   :  { %v2167_v59 = vsel %vm2155_vm1, %v2149_v7, %v2166_v48  ;;  %v4297_v51 = vmul.u32.u64.low %v4283_v17, %v2164_v22  ;;  %v4298_v52 = vmul.u32.u64.high %v4283_v17, %v2164_v22, %v4297_v51  ;;  %v1662_v32 = vadd.s32 %v4224_v34, %v4229_v11 }
 0x1e4   :  { %vm3070_vm3 = vcmp.lt.s32.totalorder %v3069_v13, 0  ;;  %v2168_v12 = vsel %vm2154_vm0, %v2165_v58, %v2167_v59  ;;  %v2337_v43 = vadd.s32 1, %v3095_v37  ;;  %v1692_v16 = vsub.s32 4, %v4266_v6 }
 0x1e5   :  { %v1677_v57 = vsel %vm3070_vm3, 0, %v3069_v13  ;;  %v2160_v1 = vsel %vm2154_vm0, %v2157_v15, %v2159_v24  ;;  %vm1492_vm5 = vweird.f32 %v4025_v56  ;;  %v2179_v7 = vadd.s32 1, %v4298_v52 }
 0x1e6   :  { %v1678_v27 = vsub.s32 32, %v1677_v57  ;;  %v1682_v4 = vsub.s32 4294967266, %v1677_v57  ;;  %v1679_v47 = vshll.u32 %v4277_v14, %v1677_v57  ;;  %vm2338_vm6 = vcmp.gt.s32.totalorder %v2337_v43, 0 }
 0x1e7   :  { %v4317_v29 = vmul.u32.u64.low %v4283_v17, %v2168_v12  ;;  %v4318_v61 = vmul.u32.u64.high %v4283_v17, %v2168_v12, %v4317_v29  ;;  %v2339_v25 = vsel %vm2338_vm6, %v2337_v43, 0  ;;  %vm1608_vm7 = vcmp.lt.s32.totalorder %v4049_v3, 0 }
 0x1e8   :  { %v1680_v34 = vshrl.u32 %v1662_v32, %v1678_v27  ;;  %v1683_v11 = vadd.s32 127, %v1682_v4  ;;  %v2334_v8 = vand.u32 8388607, %v2327_v23  ;;  %v2341_v62 = vand.u32 31, %v2339_v25 }
 0x1e9   :  { %v4326_v21 = vadd.f32 %v3865_v10, %v3560_v60  ;;  %vm1494_vm8 = vcmp.lt.s32.totalorder %v4268_v2, 2  ;;  %v1693_v28 = vsel %vm1608_vm7, %v1692_v16, %v4266_v6  ;;  %v2176_v45 = vmul.u32 %v4283_v17, %v2160_v1 }
 0x1ea   :  { %v3287_v14 = vpop.eup %3286  ;;  %v1681_v26 = vor.u32 %v1680_v34, %v1679_v47  ;;  %v1684_v49 = vshll.u32 %v1683_v11, 23  ;;  %vm2178_vm9 = vc.u32 %v4318_v61, %v4297_v51  ;;  %v2342_v41 = vsub.s32 32, %v2341_v62 }
 0x1eb   :  { %v3289_v31 = vpop.eup %3288  ;;  %v1499_v5 = vxor.u32 2147483648, %v3287_v14  ;;  %vm1498_vm10 = vcmp.eq.s32.totalorder %v4268_v2, 2  ;;  %v2180_v10 = vsel %vm2178_vm9, %v2179_v7, %v4298_v52  ;;  %vm1495_vm12 = vcmp.eq.s32.totalorder %v4268_v2, 0 }
 0x1ec   :  { %v1496_v35 = vxor.u32 2147483648, %v3289_v31  ;;  %v1685_v60 = vor.u32 4788187, %v1684_v49  ;;  %v2181_v13 = vadd.s32 %v2180_v10, %v2176_v45  ;;  %v2335_v15 = vor.u32 8388608, %v2334_v8 }
 0x1ed   :  { %v1500_v18 = vsel %vm1498_vm10, %v1499_v5, %v3289_v31  ;;  %v1688_v58 = vcvt.s32.f32 %v1681_v26  ;;  %v1695_v17 = vsel %vm4303_vm4, 0, %v1693_v28  ;;  %v2345_v48 = vshrl.u32 %v3462_v40, %v2342_v41 }
 0x1ee   :  { %v1497_v6 = vsel %vm1495_vm12, %v3287_v14, %v1496_v35  ;;  %v1686_v20 = vand.u32 2147483647, %v1685_v60  ;;  %v2182_v22 = vadd.s32 536870912, %v2181_v13  ;;  %v2348_v37 = vshrl.u32 %v3463_v42, %v2342_v41 }
 0x1ef   :  { %v1501_v24 = vsel %vm1494_vm8, %v1497_v6, %v1500_v18  ;;  %v2340_v32 = vshrl.u32 %v2339_v25, 5  ;;  %v2351_v57 = vshrl.u32 %v3464_v44, %v2342_v41  ;;  %v2344_v27 = vshll.u32 %v3461_v36, %v2341_v62 }
 0x1f0   :  { %v1502_v59 = vsel %vm1492_vm5, nan, %v1501_v24  ;;  %v1689_v52 = vmul.f32 %v1688_v58, %v1686_v20  ;;  %v4347_v43 = vshrl.u32 %v2182_v22, 30  ;;  %v2347_v2 = vshll.u32 %v3462_v40, %v2341_v62 }
 0x1f1   :  { %v2954_v12 = vmul.f32 0.044194173, %v1502_v59  ;;  %v2350_v16 = vshll.u32 %v3463_v42, %v2341_v62  ;;  %v2353_v1 = vshll.u32 %v3464_v44, %v2341_v62  ;;  %v2354_v47 = vshrl.u32 %v3465_v46, %v2342_v41 }
 0x1f2   :  { %v1690_v4 = vxor.u32 2147483648, %v1689_v52  ;;  %v2184_v56 = vshll.u32 %v4347_v43, 30  ;;  %v2346_v29 = vor.u32 %v2345_v48, %v2344_v27  ;;  %v2349_v34 = vor.u32 %v2348_v37, %v2347_v2 }
 0x1f3   :  { %2978 = vst [vmem:[#allocation8 + $0x48] sm:$0xff] %v2954_v12  ;;  %v2357_v11 = vshrl.u32 %v3466_v54, %v2342_v41  ;;  %v2352_v25 = vor.u32 %v2351_v57, %v2350_v16  ;;  %v2355_v8 = vor.u32 %v2354_v47, %v2353_v1  ;;  %v2356_v14 = vshll.u32 %v3465_v46, %v2341_v62 }
 0x1f4   :  { %v1691_v7 = vsel %vm1608_vm7, %v1690_v4, %v1689_v52  ;;  %v4362_v49 = vand.u32 3, %v1695_v17  ;;  %v4364_v28 = vsub.s32 %v2181_v13, %v2184_v56  ;;  %v2375_v5 = vshll.u32 %v2335_v15, 8 }
 0x1f5   :  { %v1694_v26 = vsel %vm4303_vm4, %v4049_v3, %v1691_v7  ;;  %v2358_v31 = vor.u32 %v2357_v11, %v2356_v14  ;;  %v2227_v45 = vand.u32 2139095040, %v4326_v21  ;;  %vm2359_vm11 = vcmp.lt.s32.totalorder %v2340_v32, 1  ;;  %v4390_v14 = vpop.f32.mrb[8].mxu0 }
 0x1f6   :  { %3290 = vcosq.f32 %v1694_v26  ;;  %v2187_v35 = vsub.s32 0, %v4364_v28  ;;  %vm2362_vm13 = vcmp.lt.s32.totalorder %v2340_v32, 4  ;;  %v2343_v62 = vshrl.u32 %v3461_v36, %v2342_v41 }
 0x1f7   :  { %3292 = vsinq.f32 %v1694_v26  ;;  %v2364_v60 = vsel %vm2362_vm13, %v2352_v25, 2102212464  ;;  %v2367_v10 = vsel %vm2359_vm11, %v2346_v29, %v2349_v34  ;;  %v2368_v55 = vsel %vm2362_vm13, %v2355_v8, 920167782 }
 0x1f8   :  { %v3088_v18 = vmin.u32 %v2187_v35, %v4364_v28  ;;  %vm2360_vm14 = vcmp.lt.s32.totalorder %v2340_v32, 2  ;;  %vm2361_vm15 = vcmp.lt.s32.totalorder %v2340_v32, 3  ;;  %v2371_v13 = vsel %vm2359_vm11, %v2349_v34, %v2352_v25 }
 0x1f9   :  { %v2363_v6 = vsel %vm2359_vm11, %v2343_v62, %v2346_v29  ;;  %v2369_v20 = vsel %vm2361_vm15, %v2352_v25, %v2368_v55  ;;  %v2372_v15 = vsel %vm2362_vm13, %v2358_v31, 1326507024  ;;  %v2228_v58 = vshrl.u32 %v2227_v45, 23 }
 0x1fa   :  { %v2189_v17 = vclz %v3088_v18  ;;  %v2365_v24 = vsel %vm2361_vm15, %v2349_v34, %v2364_v60  ;;  %v2370_v22 = vsel %vm2360_vm14, %v2367_v10, %v2369_v20  ;;  %v2373_v48 = vsel %vm2361_vm15, %v2355_v8, %v2372_v15 }
 0x1fb   :  { %v2374_v37 = vsel %vm2360_vm14, %v2371_v13, %v2373_v48  ;;  %v4372_v41 = vmul.u32.u64.low %v2375_v5, %v2370_v22  ;;  %v4373_v59 = vmul.u32.u64.high %v2375_v5, %v2370_v22, %v4372_v41  ;;  %v3091_v52 = vadd.s32 4294967169, %v2228_v58 }
 0x1fc   :  { %vm1698_vm0 = vweird.f32 %v4049_v3  ;;  %vm2123_vm1 = vcmp.lt.s32.totalorder %v4167_v0, 0  ;;  %v3089_v57 = vadd.s32 4294967294, %v2189_v17  ;;  %vm1700_vm2 = vcmp.lt.s32.totalorder %v4362_v49, 2 }
 0x1fd   :  { %v4378_v12 = vmul.u32.u64.low %v2375_v5, %v2374_v37  ;;  %v4379_v27 = vmul.u32.u64.high %v2375_v5, %v2374_v37, %v4378_v12  ;;  %v2366_v2 = vsel %vm2360_vm14, %v2363_v6, %v2365_v24  ;;  %v2224_v4 = vand.u32 2147483647, %v4326_v21 }
 0x1fe   :  { %v2234_v16 = vadd.s32 1, %v3091_v52  ;;  %vm1701_vm3 = vcmp.eq.s32.totalorder %v4362_v49, 0  ;;  %vm1704_vm4 = vcmp.eq.s32.totalorder %v4362_v49, 2  ;;  %v2177_v1 = vadd.s32 %v4297_v51, %v4318_v61 }
 0x1ff   :  { %vm3090_vm5 = vcmp.lt.s32.totalorder %v3089_v57, 0  ;;  %v2207_v29 = vsub.s32 4, %v4347_v43  ;;  %v2385_v34 = vadd.s32 1, %v4373_v59  ;;  %v2382_v8 = vmul.u32 %v2375_v5, %v2366_v2 }
 0x200   :  { %v3291_v47 = vpop.eup %3290  ;;  %v2192_v56 = vsel %vm3090_vm5, 0, %v3089_v57  ;;  %vm2235_vm6 = vcmp.gt.s32.totalorder %v2234_v16, 0  ;;  %vm2384_vm7 = vc.u32 %v4379_v27, %v4372_v41  ;;  %v2231_v10 = vand.u32 8388607, %v2224_v4 }
 0x201   :  { %v3293_v32 = vpop.eup %3292  ;;  %v1705_v11 = vxor.u32 2147483648, %v3291_v47  ;;  %v2193_v7 = vsub.s32 32, %v2192_v56  ;;  %v2197_v25 = vsub.s32 4294967266, %v2192_v56  ;;  %v2194_v31 = vshll.u32 %v4364_v28, %v2192_v56 }
 0x202   :  { %v1702_v26 = vxor.u32 2147483648, %v3293_v32  ;;  %v2236_v51 = vsel %vm2235_vm6, %v2234_v16, 0  ;;  %v2386_v62 = vsel %vm2384_vm7, %v2385_v34, %v4373_v59  ;;  %v2208_v6 = vsel %vm2123_vm1, %v2207_v29, %v4347_v43 }
 0x203   :  { %v1706_v61 = vsel %vm1704_vm4, %v1705_v11, %v3293_v32  ;;  %v2195_v45 = vshrl.u32 %v2177_v1, %v2193_v7  ;;  %v2198_v35 = vadd.s32 127, %v2197_v25  ;;  %v2387_v5 = vadd.s32 %v2386_v62, %v2382_v8 }
 0x204   :  { %v1703_v60 = vsel %vm1701_vm3, %v3291_v47, %v1702_v26  ;;  %v2238_v55 = vand.u32 31, %v2236_v51  ;;  %vm4411_vm8 = vcmp.le.f32.partialorder %v2121_v33, 0.7853982  ;;  %v2232_v52 = vor.u32 8388608, %v2231_v10 }
 0x205   :  { %v1707_v28 = vsel %vm1700_vm2, %v1703_v60, %v1706_v61  ;;  %v2196_v18 = vor.u32 %v2195_v45, %v2194_v31  ;;  %v2199_v13 = vshll.u32 %v2198_v35, 23  ;;  %v2388_v15 = vadd.s32 536870912, %v2387_v5 }
 0x206   :  { %v1708_v20 = vsel %vm1698_vm0, nan, %v1707_v28  ;;  %v2239_v58 = vsub.s32 32, %v2238_v55  ;;  %v2210_v22 = vsel %vm4411_vm8, 0, %v2208_v6  ;;  %v2237_v12 = vshrl.u32 %v2236_v51, 5 }
 0x207   :  { %v2956_v17 = vmul.f32 0.044194173, %v1708_v20  ;;  %v2200_v49 = vor.u32 4788187, %v2199_v13  ;;  %v4417_v48 = vshrl.u32 %v2388_v15, 30  ;;  %v2203_v59 = vcvt.s32.f32 %v2196_v18 }
 0x208   :  { %v2242_v43 = vshrl.u32 %v3462_v40, %v2239_v58  ;;  %v2245_v3 = vshrl.u32 %v3463_v42, %v2239_v58  ;;  %v2248_v57 = vshrl.u32 %v3464_v44, %v2239_v58  ;;  %v2241_v2 = vshll.u32 %v3461_v36, %v2238_v55 }
 0x209   :  { %2980 = vst [vmem:[#allocation8 + $0x58] sm:$0xff] %v2956_v17  ;;  %v2201_v37 = vand.u32 2147483647, %v2200_v49  ;;  %v2390_v33 = vshll.u32 %v4417_v48, 30  ;;  %v2244_v16 = vshll.u32 %v3462_v40, %v2238_v55  ;;  %v2247_v47 = vshll.u32 %v3463_v42, %v2238_v55 }
 0x20a   :  { %v2250_v56 = vshll.u32 %v3464_v44, %v2238_v55  ;;  %v2251_v29 = vshrl.u32 %v3465_v46, %v2239_v58  ;;  %v2243_v32 = vor.u32 %v2242_v43, %v2241_v2  ;;  %v2254_v7 = vshrl.u32 %v3466_v54, %v2239_v58 }
 0x20b   :  { %v2204_v1 = vmul.f32 %v2203_v59, %v2201_v37  ;;  %v4428_v34 = vsub.s32 %v2387_v5, %v2390_v33  ;;  %v2246_v11 = vor.u32 %v2245_v3, %v2244_v16  ;;  %v2249_v8 = vor.u32 %v2248_v57, %v2247_v47  ;;  %v4471_v47 = vpop.f32.mrb[8].mxu1 }
 0x20c   :  { %v2252_v26 = vor.u32 %v2251_v29, %v2250_v56  ;;  %v2253_v31 = vshll.u32 %v3465_v46, %v2238_v55  ;;  %v2240_v61 = vshrl.u32 %v3461_v36, %v2239_v58  ;;  %v4434_v45 = vshll.u32 %v2232_v52, 8 }
 0x20d   :  { %v2205_v25 = vxor.u32 2147483648, %v2204_v1  ;;  %v2393_v51 = vsub.s32 0, %v4428_v34  ;;  %v4438_v35 = vadd.f32 %v3960_v19, %v3591_v30  ;;  %vm2256_vm9 = vcmp.lt.s32.totalorder %v2237_v12, 1 }
 0x20e   :  { %v2255_v60 = vor.u32 %v2254_v7, %v2253_v31  ;;  %vm2257_vm10 = vcmp.lt.s32.totalorder %v2237_v12, 2  ;;  %vm2259_vm12 = vcmp.lt.s32.totalorder %v2237_v12, 4  ;;  %v2264_v55 = vsel %vm2256_vm9, %v2243_v32, %v2246_v11 }
 0x20f   :  { %v2206_v62 = vsel %vm2123_vm1, %v2205_v25, %v2204_v1  ;;  %v3096_v10 = vmin.u32 %v2393_v51, %v4428_v34  ;;  %vm2258_vm11 = vcmp.lt.s32.totalorder %v2237_v12, 3  ;;  %v2261_v28 = vsel %vm2259_vm12, %v2249_v8, 2102212464 }
 0x210   :  { %v2209_v5 = vsel %vm4411_vm8, %v4167_v0, %v2206_v62  ;;  %v2265_v30 = vsel %vm2259_vm12, %v2252_v26, 920167782  ;;  %vm2329_vm13 = vcmp.lt.s32.totalorder %v4264_v63, 0  ;;  %v2260_v18 = vsel %vm2256_vm9, %v2240_v61, %v2243_v32  ;;  %v4486_v62 = vld [vmem:[#allocation7] sm:$0xff] }
 0x211   :  { %3294 = vcosq.f32 %v2209_v5  ;;  %v2395_v19 = vclz %v3096_v10  ;;  %v2266_v13 = vsel %vm2258_vm11, %v2249_v8, %v2265_v30  ;;  %v2262_v6 = vsel %vm2258_vm11, %v2246_v11, %v2261_v28 }
 0x212   :  { %3296 = vsinq.f32 %v2209_v5  ;;  %v2267_v20 = vsel %vm2257_vm10, %v2264_v55, %v2266_v13  ;;  %v2268_v15 = vsel %vm2256_vm9, %v2246_v11, %v2249_v8  ;;  %v2269_v58 = vsel %vm2259_vm12, %v2255_v60, 1326507024 }
 0x213   :  { %v3097_v17 = vadd.s32 4294967294, %v2395_v19  ;;  %v2270_v24 = vsel %vm2258_vm11, %v2252_v26, %v2269_v58  ;;  %v4452_v49 = vmul.u32.u64.low %v4434_v45, %v2267_v20  ;;  %v4453_v43 = vmul.u32.u64.high %v4434_v45, %v2267_v20, %v4452_v49 }
 0x214   :  { %v2214_v3 = vand.u32 3, %v2210_v22  ;;  %vm4458_vm14 = vcmp.le.f32.partialorder %v2327_v23, 0.7853982  ;;  %v2271_v59 = vsel %vm2257_vm10, %v2268_v15, %v2270_v24  ;;  %v2433_v52 = vand.u32 2139095040, %v4438_v35 }
 0x215   :  { %vm3098_vm15 = vcmp.lt.s32.totalorder %v3097_v17, 0  ;;  %v2263_v57 = vsel %vm2257_vm10, %v2260_v18, %v2262_v6  ;;  %v4466_v33 = vmul.u32.u64.low %v4434_v45, %v2271_v59  ;;  %v4467_v2 = vmul.u32.u64.high %v4434_v45, %v2271_v59, %v4466_v33 }
 0x216   :  { %v2398_v16 = vsel %vm3098_vm15, 0, %v3097_v17  ;;  %v2413_v22 = vsub.s32 4, %v4417_v48  ;;  %v2434_v1 = vshrl.u32 %v2433_v52, 23  ;;  %v109_v23 = vsub.s32 4, %v3551_v53 }
 0x217   :  { %vm2213_vm0 = vweird.f32 %v4167_v0  ;;  %v2383_v56 = vadd.s32 %v4372_v41, %v4379_v27  ;;  %v2399_v29 = vsub.s32 32, %v2398_v16  ;;  %v2403_v12 = vsub.s32 4294967266, %v2398_v16 }
 0x218   :  { %v2282_v32 = vadd.s32 1, %v4453_v43  ;;  %vm2215_vm1 = vcmp.lt.s32.totalorder %v2214_v3, 2  ;;  %v2279_v11 = vmul.u32 %v4434_v45, %v2263_v57  ;;  %v2430_v7 = vand.u32 2147483647, %v4438_v35 }
 0x219   :  { %v3099_v25 = vadd.s32 4294967169, %v2434_v1  ;;  %v2400_v8 = vshll.u32 %v4428_v34, %v2398_v16  ;;  %v2401_v26 = vshrl.u32 %v2383_v56, %v2399_v29  ;;  %v2404_v31 = vadd.s32 127, %v2403_v12 }
 0x21a   :  { %vm2281_vm2 = vc.u32 %v4467_v2, %v4452_v49  ;;  %v2414_v41 = vsel %vm2329_vm13, %v2413_v22, %v4417_v48  ;;  %v4489_v45 = vrot.slane %v4486_v62, %v109_v23  ;;  %vm2216_vm3 = vcmp.eq.s32.totalorder %v2214_v3, 0 }
 0x21b   :  { %v3295_v51 = vpop.eup %3294  ;;  %v2283_v27 = vsel %vm2281_vm2, %v2282_v32, %v4453_v43  ;;  %v2440_v61 = vadd.s32 1, %v3099_v25  ;;  %v2402_v5 = vor.u32 %v2401_v26, %v2400_v8  ;;  %v2405_v10 = vshll.u32 %v2404_v31, 23 }
 0x21c   :  { %v3297_v60 = vpop.eup %3296  ;;  %v2220_v34 = vxor.u32 2147483648, %v3295_v51  ;;  %v2284_v55 = vadd.s32 %v2283_v27, %v2279_v11  ;;  %vm2219_vm4 = vcmp.eq.s32.totalorder %v2214_v3, 2  ;;  %v2416_v48 = vsel %vm4458_vm14, 0, %v2414_v41 }
 0x21d   :  { %v2217_v28 = vxor.u32 2147483648, %v3297_v60  ;;  %vm2441_vm5 = vcmp.gt.s32.totalorder %v2440_v61, 0  ;;  %v2406_v19 = vor.u32 4788187, %v2405_v10  ;;  %v2437_v6 = vand.u32 8388607, %v2430_v7 }
 0x21e   :  { %v2221_v30 = vsel %vm2219_vm4, %v2220_v34, %v3297_v60  ;;  %v2285_v18 = vadd.s32 536870912, %v2284_v55  ;;  %v2442_v20 = vsel %vm2441_vm5, %v2440_v61, 0  ;;  %v4497_v15 = vadd.f32 %v4058_v9, %v4489_v45 }
 0x21f   :  { %v2218_v13 = vsel %vm2216_vm3, %v3295_v51, %v2217_v28  ;;  %v2407_v17 = vand.u32 2147483647, %v2406_v19  ;;  %v2409_v24 = vcvt.s32.f32 %v2402_v5  ;;  %v2444_v52 = vand.u32 31, %v2442_v20 }
 0x220   :  { %v2222_v58 = vsel %vm2215_vm1, %v2218_v13, %v2221_v30  ;;  %v4500_v43 = vshrl.u32 %v2285_v18, 30  ;;  %v4505_v22 = vand.u32 3, %v2416_v48  ;;  %v2438_v1 = vor.u32 8388608, %v2437_v6 }
 0x221   :  { %v2223_v59 = vsel %vm2213_vm0, nan, %v2222_v58  ;;  %v2410_v33 = vmul.f32 %v2409_v24, %v2407_v17  ;;  %v2445_v23 = vsub.s32 32, %v2444_v52  ;;  %v2280_v3 = vadd.s32 %v4452_v49, %v4467_v2 }
 0x222   :  { %v2961_v57 = vmul.f32 0.044194173, %v2223_v59  ;;  %v2287_v16 = vshll.u32 %v4500_v43, 30  ;;  %v888_v29 = vand.u32 2139095040, %v4497_v15  ;;  %v4512_v0 = vshrl.u32 %v2442_v20, 5 }
 0x223   :  { %v2411_v9 = vxor.u32 2147483648, %v2410_v33  ;;  %v2447_v12 = vshll.u32 %v3461_v36, %v2444_v52  ;;  %v2448_v32 = vshrl.u32 %v3462_v40, %v2445_v23  ;;  %v2451_v11 = vshrl.u32 %v3463_v42, %v2445_v23 }
 0x224   :  { %2985 = vst [vmem:[#allocation8 + $0x80] sm:$0xff] %v2961_v57  ;;  %v4509_v56 = vsub.s32 %v2284_v55, %v2287_v16  ;;  %v2450_v26 = vshll.u32 %v3462_v40, %v2444_v52  ;;  %v2454_v49 = vshrl.u32 %v3464_v44, %v2445_v23  ;;  %v2453_v31 = vshll.u32 %v3463_v42, %v2444_v52 }
 0x225   :  { %v2412_v25 = vsel %vm2329_vm13, %v2411_v9, %v2410_v33  ;;  %v2456_v51 = vshll.u32 %v3464_v44, %v2444_v52  ;;  %v2457_v41 = vshrl.u32 %v3465_v46, %v2445_v23  ;;  %v2449_v61 = vor.u32 %v2448_v32, %v2447_v12 }
 0x226   :  { %v2290_v8 = vsub.s32 0, %v4509_v56  ;;  %v2415_v2 = vsel %vm4458_vm14, %v4264_v63, %v2412_v25  ;;  %v2452_v60 = vor.u32 %v2451_v11, %v2450_v26  ;;  %v2455_v34 = vor.u32 %v2454_v49, %v2453_v31  ;;  %v4574_v49 = vpop.f32.mrb[9].mxu0 }
 0x227   :  { %3298 = vcosq.f32 %v2415_v2  ;;  %v2458_v5 = vor.u32 %v2457_v41, %v2456_v51  ;;  %v4529_v10 = vshll.u32 %v2438_v1, 8  ;;  %v2459_v37 = vshll.u32 %v3465_v46, %v2444_v52 }
 0x228   :  { %v3092_v27 = vmin.u32 %v2290_v8, %v4509_v56  ;;  %3300 = vsinq.f32 %v2415_v2  ;;  %v2460_v28 = vshrl.u32 %v3466_v54, %v2445_v23  ;;  %v889_v30 = vshrl.u32 %v888_v29, 23 }
 0x229   :  { %v2446_v19 = vshrl.u32 %v3461_v36, %v2445_v23  ;;  %vm2462_vm6 = vcmp.lt.s32.totalorder %v4512_v0, 1  ;;  %vm2463_vm7 = vcmp.lt.s32.totalorder %v4512_v0, 2  ;;  %v885_v48 = vand.u32 2147483647, %v4497_v15 }
 0x22a   :  { %v2292_v55 = vclz %v3092_v27  ;;  %v2461_v13 = vor.u32 %v2460_v28, %v2459_v37  ;;  %vm2465_vm8 = vcmp.lt.s32.totalorder %v4512_v0, 4  ;;  %v2470_v6 = vsel %vm2462_vm6, %v2449_v61, %v2452_v60 }
 0x22b   :  { %vm2422_vm9 = vcmp.eq.s32.totalorder %v4505_v22, 0  ;;  %vm2464_vm10 = vcmp.lt.s32.totalorder %v4512_v0, 3  ;;  %v2467_v20 = vsel %vm2465_vm8, %v2455_v34, 2102212464  ;;  %v2471_v58 = vsel %vm2465_vm8, %v2458_v5, 920167782 }
 0x22c   :  { %v3093_v18 = vadd.s32 4294967294, %v2292_v55  ;;  %v2474_v17 = vsel %vm2462_vm6, %v2452_v60, %v2455_v34  ;;  %vm2421_vm12 = vcmp.lt.s32.totalorder %v4505_v22, 2  ;;  %vm2226_vm11 = vcmp.lt.s32.totalorder %v4326_v21, 0 }
 0x22d   :  { %v2472_v24 = vsel %vm2464_vm10, %v2455_v34, %v2471_v58  ;;  %v2475_v59 = vsel %vm2465_vm8, %v2461_v13, 1326507024  ;;  %v3039_v52 = vadd.s32 4294967169, %v889_v30  ;;  %vm2419_vm14 = vweird.f32 %v4264_v63 }
 0x22e   :  { %vm3094_vm13 = vcmp.lt.s32.totalorder %v3093_v18, 0  ;;  %v2466_v33 = vsel %vm2462_vm6, %v2446_v19, %v2449_v61  ;;  %v2473_v16 = vsel %vm2463_vm7, %v2470_v6, %v2472_v24  ;;  %v2476_v1 = vsel %vm2464_vm10, %v2458_v5, %v2475_v59 }
 0x22f   :  { %v2295_v57 = vsel %vm3094_vm13, 0, %v3093_v18  ;;  %v2468_v29 = vsel %vm2464_vm10, %v2452_v60, %v2467_v20  ;;  %v2477_v12 = vsel %vm2463_vm7, %v2474_v17, %v2476_v1  ;;  %vm4561_vm15 = vcmp.le.f32.partialorder %v2224_v4, 0.7853982 }
 0x230   :  { %v2296_v23 = vsub.s32 32, %v2295_v57  ;;  %v2300_v9 = vsub.s32 4294967266, %v2295_v57  ;;  %v4566_v11 = vmul.u32.u64.low %v4529_v10, %v2477_v12  ;;  %v4567_v25 = vmul.u32.u64.high %v4529_v10, %v2477_v12, %v4566_v11 }
 0x231   :  { %v4570_v8 = vmul.u32.u64.low %v4529_v10, %v2473_v16  ;;  %v4571_v26 = vmul.u32.u64.high %v4529_v10, %v2473_v16, %v4570_v8  ;;  %v3299_v2 = vpop.eup %3298  ;;  %v2297_v31 = vshll.u32 %v4509_v56, %v2295_v57  ;;  %v895_v4 = vadd.s32 1, %v3039_v52 }
 0x232   :  { %v2298_v51 = vshrl.u32 %v2280_v3, %v2296_v23  ;;  %v2301_v41 = vadd.s32 127, %v2300_v9  ;;  %v3301_v27 = vpop.eup %3300  ;;  %vm2425_vm0 = vcmp.eq.s32.totalorder %v4505_v22, 2  ;;  %v2426_v61 = vxor.u32 2147483648, %v3299_v2 }
 0x233   :  { %v2310_v60 = vsub.s32 4, %v4500_v43  ;;  %v2469_v34 = vsel %vm2463_vm7, %v2466_v33, %v2468_v29  ;;  %v2423_v5 = vxor.u32 2147483648, %v3301_v27  ;;  %vm896_vm1 = vcmp.gt.s32.totalorder %v895_v4, 0 }
 0x234   :  { %v2299_v55 = vor.u32 %v2298_v51, %v2297_v31  ;;  %v2302_v37 = vshll.u32 %v2301_v41, 23  ;;  %v2427_v28 = vsel %vm2425_vm0, %v2426_v61, %v3301_v27  ;;  %vm2487_vm2 = vc.u32 %v4567_v25, %v4570_v8 }
 0x235   :  { %v2488_v3 = vadd.s32 1, %v4571_v26  ;;  %v892_v56 = vand.u32 8388607, %v885_v48  ;;  %v2424_v30 = vsel %vm2422_vm9, %v3299_v2, %v2423_v5  ;;  %v2485_v0 = vmul.u32 %v4529_v10, %v2469_v34 }
 0x236   :  { %v2303_v19 = vor.u32 4788187, %v2302_v37  ;;  %v897_v18 = vsel %vm896_vm1, %v895_v4, 0  ;;  %v2428_v13 = vsel %vm2421_vm12, %v2424_v30, %v2427_v28  ;;  %v2311_v6 = vsel %vm2226_vm11, %v2310_v60, %v4500_v43 }
 0x237   :  { %v2489_v20 = vsel %vm2487_vm2, %v2488_v3, %v4571_v26  ;;  %v899_v58 = vand.u32 31, %v897_v18  ;;  %v2429_v17 = vsel %vm2419_vm14, nan, %v2428_v13  ;;  %v2306_v59 = vcvt.s32.f32 %v2299_v55 }
 0x238   :  { %v2304_v24 = vand.u32 2147483647, %v2303_v19  ;;  %v2490_v52 = vadd.s32 %v2489_v20, %v2485_v0  ;;  %v2963_v57 = vmul.f32 0.044194173, %v2429_v17  ;;  %v893_v33 = vor.u32 8388608, %v892_v56 }
 0x239   :  { %v900_v10 = vsub.s32 32, %v899_v58  ;;  %v117_v16 = vsub.s32 6, %v3551_v53  ;;  %v2313_v1 = vsel %vm4561_vm15, 0, %v2311_v6  ;;  %v4600_v43 = vshrl.u32 %v897_v18, 5 }
 0x23a   :  { %v2307_v22 = vmul.f32 %v2306_v59, %v2304_v24  ;;  %v2491_v23 = vadd.s32 536870912, %v2490_v52  ;;  %2987 = vst [vmem:[#allocation8 + $0x90] sm:$0xff] %v2963_v57  ;;  %v902_v9 = vshll.u32 %v3461_v36, %v899_v58  ;;  %v908_v2 = vshll.u32 %v3463_v42, %v899_v58 }
 0x23b   :  { %v903_v63 = vshrl.u32 %v3462_v40, %v900_v10  ;;  %v906_v29 = vshrl.u32 %v3463_v42, %v900_v10  ;;  %v909_v12 = vshrl.u32 %v3464_v44, %v900_v10  ;;  %v912_v31 = vshrl.u32 %v3465_v46, %v900_v10 }
 0x23c   :  { %v2308_v11 = vxor.u32 2147483648, %v2307_v22  ;;  %v4606_v26 = vshrl.u32 %v2491_v23, 30  ;;  %v905_v51 = vshll.u32 %v3462_v40, %v899_v58  ;;  %v911_v41 = vshll.u32 %v3464_v44, %v899_v58 }
 0x23d   :  { %v914_v4 = vshll.u32 %v3465_v46, %v899_v58  ;;  %v915_v27 = vshrl.u32 %v3466_v54, %v900_v10  ;;  %v904_v34 = vor.u32 %v903_v63, %v902_v9  ;;  %v910_v5 = vor.u32 %v909_v12, %v908_v2 }
 0x23e   :  { %v2309_v61 = vsel %vm2226_vm11, %v2308_v11, %v2307_v22  ;;  %v2493_v60 = vshll.u32 %v4606_v26, 30  ;;  %v907_v37 = vor.u32 %v906_v29, %v905_v51  ;;  %v913_v28 = vor.u32 %v912_v31, %v911_v41 }
 0x23f   :  { %v2312_v55 = vsel %vm4561_vm15, %v4326_v21, %v2309_v61  ;;  %v916_v3 = vor.u32 %v915_v27, %v914_v4  ;;  %v4623_v30 = vrot.slane %v4486_v62, %v117_v16  ;;  %v113_v19 = vsub.s32 5, %v3551_v53 }
 0x240   :  { %3302 = vcosq.f32 %v2312_v55  ;;  %v4620_v56 = vsub.s32 %v2490_v52, %v2493_v60  ;;  %v2317_v0 = vand.u32 3, %v2313_v1  ;;  %vm920_vm3 = vcmp.lt.s32.totalorder %v4600_v43, 4 }
 0x241   :  { %3304 = vsinq.f32 %v2312_v55  ;;  %v4627_v18 = vshll.u32 %v893_v33, 8  ;;  %v901_v13 = vshrl.u32 %v3461_v36, %v900_v10  ;;  %vm917_vm4 = vcmp.lt.s32.totalorder %v4600_v43, 1 }
 0x242   :  { %v2496_v32 = vsub.s32 0, %v4620_v56  ;;  %v922_v6 = vsel %vm920_vm3, %v910_v5, 2102212464  ;;  %v925_v20 = vsel %vm917_vm4, %v904_v34, %v907_v37  ;;  %v926_v58 = vsel %vm920_vm3, %v913_v28, 920167782 }
 0x243   :  { %v929_v17 = vsel %vm917_vm4, %v907_v37, %v910_v5  ;;  %v930_v24 = vsel %vm920_vm3, %v916_v3, 1326507024  ;;  %v2516_v52 = vsub.s32 4, %v4606_v26  ;;  %vm919_vm5 = vcmp.lt.s32.totalorder %v4600_v43, 3 }
 0x244   :  { %v3100_v59 = vmin.u32 %v2496_v32, %v4620_v56  ;;  %v4637_v57 = vadd.f32 %v4121_v38, %v4623_v30  ;;  %vm918_vm6 = vcmp.lt.s32.totalorder %v4600_v43, 2  ;;  %v921_v33 = vsel %vm917_vm4, %v901_v13, %v904_v34 }
 0x245   :  { %v927_v10 = vsel %vm919_vm5, %v910_v5, %v926_v58  ;;  %v931_v16 = vsel %vm919_vm5, %v913_v28, %v930_v24  ;;  %v923_v1 = vsel %vm919_vm5, %v907_v37, %v922_v6  ;;  %vm2316_vm7 = vweird.f32 %v4326_v21  ;;  %v4667_v37 = vpop.f32.mrb[9].mxu1 }
 0x246   :  { %v2498_v22 = vclz %v3100_v59  ;;  %v928_v23 = vsel %vm918_vm6, %v925_v20, %v927_v10  ;;  %v932_v9 = vsel %vm918_vm6, %v929_v17, %v931_v16  ;;  %vm2432_vm8 = vcmp.lt.s32.totalorder %v4438_v35, 0 }
 0x247   :  { %v4645_v63 = vmul.u32.u64.low %v4627_v18, %v932_v9  ;;  %v4646_v29 = vmul.u32.u64.high %v4627_v18, %v932_v9, %v4645_v63  ;;  %v4649_v38 = vmul.u32.u64.low %v4627_v18, %v928_v23  ;;  %v4650_v12 = vmul.u32.u64.high %v4627_v18, %v928_v23, %v4649_v38 }
 0x248   :  { %v3101_v11 = vadd.s32 4294967294, %v2498_v22  ;;  %v1094_v2 = vand.u32 2139095040, %v4637_v57  ;;  %vm2318_vm9 = vcmp.lt.s32.totalorder %v2317_v0, 2  ;;  %vm2319_vm10 = vcmp.eq.s32.totalorder %v2317_v0, 0 }
 0x249   :  { %vm2322_vm12 = vcmp.eq.s32.totalorder %v2317_v0, 2  ;;  %v4657_v31 = vrot.slane %v4486_v62, %v113_v19  ;;  %v2486_v41 = vadd.s32 %v4570_v8, %v4567_v25  ;;  %v924_v4 = vsel %vm918_vm6, %v921_v33, %v923_v1 }
 0x24a   :  { %v3303_v51 = vpop.eup %3302  ;;  %vm3102_vm11 = vcmp.lt.s32.totalorder %v3101_v11, 0  ;;  %v1095_v27 = vshrl.u32 %v1094_v2, 23  ;;  %v2517_v5 = vsel %vm2432_vm8, %v2516_v52, %v4606_v26  ;;  %v1091_v55 = vand.u32 2147483647, %v4637_v57 }
 0x24b   :  { %v3305_v61 = vpop.eup %3304  ;;  %v2323_v60 = vxor.u32 2147483648, %v3303_v51  ;;  %v2501_v34 = vsel %vm3102_vm11, 0, %v3101_v11  ;;  %vm942_vm13 = vc.u32 %v4646_v29, %v4649_v38  ;;  %v940_v8 = vmul.u32 %v4627_v18, %v924_v4 }
 0x24c   :  { %v2320_v28 = vxor.u32 2147483648, %v3305_v61  ;;  %v2502_v3 = vsub.s32 32, %v2501_v34  ;;  %v2506_v19 = vsub.s32 4294967266, %v2501_v34  ;;  %v943_v43 = vadd.s32 1, %v4650_v12 }
 0x24d   :  { %v2324_v25 = vsel %vm2322_vm12, %v2323_v60, %v3305_v61  ;;  %v3047_v32 = vadd.s32 4294967169, %v1095_v27  ;;  %v2503_v26 = vshll.u32 %v4620_v56, %v2501_v34  ;;  %vm4679_vm14 = vcmp.le.f32.partialorder %v2430_v7, 0.7853982 }
 0x24e   :  { %v2321_v13 = vsel %vm2319_vm10, %v3303_v51, %v2320_v28  ;;  %v2504_v6 = vshrl.u32 %v2486_v41, %v2502_v3  ;;  %v2507_v20 = vadd.s32 127, %v2506_v19  ;;  %v944_v24 = vsel %vm942_vm13, %v943_v43, %v4650_v12 }
 0x24f   :  { %v2325_v58 = vsel %vm2318_vm9, %v2321_v13, %v2324_v25  ;;  %v1101_v18 = vadd.s32 1, %v3047_v32  ;;  %v945_v10 = vadd.s32 %v944_v24, %v940_v8  ;;  %v2519_v0 = vsel %vm4679_vm14, 0, %v2517_v5 }
 0x250   :  { %v2326_v59 = vsel %vm2316_vm7, nan, %v2325_v58  ;;  %v2505_v52 = vor.u32 %v2504_v6, %v2503_v26  ;;  %v2508_v33 = vshll.u32 %v2507_v20, 23  ;;  %v1098_v16 = vand.u32 8388607, %v1091_v55 }
 0x251   :  { %v2962_v56 = vmul.f32 0.044194173, %v2326_v59  ;;  %vm1102_vm15 = vcmp.gt.s32.totalorder %v1101_v18, 0  ;;  %v946_v22 = vadd.s32 536870912, %v945_v10  ;;  %v4692_v23 = vadd.f32 %v4248_v50, %v4657_v31 }
 0x252   :  { %v2509_v7 = vor.u32 4788187, %v2508_v33  ;;  %v1103_v1 = vsel %vm1102_vm15, %v1101_v18, 0  ;;  %v2512_v63 = vcvt.s32.f32 %v2505_v52  ;;  %v4696_v11 = vand.u32 3, %v2519_v0 }
 0x253   :  { %2986 = vst [vmem:[#allocation8 + $0x88] sm:$0xff] %v2962_v56  ;;  %v1105_v21 = vand.u32 31, %v1103_v1  ;;  %v4694_v12 = vshrl.u32 %v946_v22, 30  ;;  %v1099_v2 = vor.u32 8388608, %v1098_v16  ;;  %v121_v41 = vsub.s32 7, %v3551_v53 }
 0x254   :  { %v2510_v9 = vand.u32 2147483647, %v2509_v7  ;;  %v991_v50 = vand.u32 2139095040, %v4692_v23  ;;  %v1104_v43 = vshrl.u32 %v1103_v1, 5  ;;  %vm887_vm0 = vcmp.lt.s32.totalorder %v4497_v15, 0 }
 0x255   :  { %v1106_v51 = vsub.s32 32, %v1105_v21  ;;  %v948_v27 = vshll.u32 %v4694_v12, 30  ;;  %v1108_v61 = vshll.u32 %v3461_v36, %v1105_v21  ;;  %v1111_v34 = vshll.u32 %v3462_v40, %v1105_v21 }
 0x256   :  { %v2513_v4 = vmul.f32 %v2512_v63, %v2510_v9  ;;  %v1114_v25 = vshll.u32 %v3463_v42, %v1105_v21  ;;  %v1117_v13 = vshll.u32 %v3464_v44, %v1105_v21  ;;  %v4711_v26 = vshll.u32 %v1099_v2, 8 }
 0x257   :  { %v1109_v60 = vshrl.u32 %v3462_v40, %v1106_v51  ;;  %v1112_v5 = vshrl.u32 %v3463_v42, %v1106_v51  ;;  %v1115_v28 = vshrl.u32 %v3464_v44, %v1106_v51  ;;  %v4706_v19 = vsub.s32 %v945_v10, %v948_v27 }
 0x258   :  { %v2514_v3 = vxor.u32 2147483648, %v2513_v4  ;;  %v1118_v8 = vshrl.u32 %v3465_v46, %v1106_v51  ;;  %v1120_v52 = vshll.u32 %v3465_v46, %v1105_v21  ;;  %v1121_v33 = vshrl.u32 %v3466_v54, %v1106_v51 }
 0x259   :  { %v1110_v32 = vor.u32 %v1109_v60, %v1108_v61  ;;  %v951_v20 = vsub.s32 0, %v4706_v19  ;;  %v1113_v58 = vor.u32 %v1112_v5, %v1111_v34  ;;  %v1116_v24 = vor.u32 %v1115_v28, %v1114_v25  ;;  %v4727_v34 = vpop.f32.mrb[10].mxu0 }
 0x25a   :  { %v2515_v6 = vsel %vm2432_vm8, %v2514_v3, %v2513_v4  ;;  %v1119_v59 = vor.u32 %v1118_v8, %v1117_v13  ;;  %v971_v56 = vsub.s32 4, %v4694_v12  ;;  %v992_v0 = vshrl.u32 %v991_v50, 23 }
 0x25b   :  { %v2518_v18 = vsel %vm4679_vm14, %v4438_v35, %v2515_v6  ;;  %v3040_v10 = vmin.u32 %v951_v20, %v4706_v19  ;;  %v1107_v16 = vshrl.u32 %v3461_v36, %v1106_v51  ;;  %v1122_v7 = vor.u32 %v1121_v33, %v1120_v52 }
 0x25c   :  { %3306 = vcosq.f32 %v2518_v18  ;;  %vm1123_vm1 = vcmp.lt.s32.totalorder %v1104_v43, 1  ;;  %vm1124_vm2 = vcmp.lt.s32.totalorder %v1104_v43, 2  ;;  %vm1125_vm3 = vcmp.lt.s32.totalorder %v1104_v43, 3 }
 0x25d   :  { %3308 = vsinq.f32 %v2518_v18  ;;  %v953_v17 = vclz %v3040_v10  ;;  %vm1126_vm4 = vcmp.lt.s32.totalorder %v1104_v43, 4  ;;  %v1131_v1 = vsel %vm1123_vm1, %v1110_v32, %v1113_v58 }
 0x25e   :  { %v1128_v22 = vsel %vm1126_vm4, %v1116_v24, 2102212464  ;;  %v1132_v21 = vsel %vm1126_vm4, %v1119_v59, 920167782  ;;  %v1135_v9 = vsel %vm1123_vm1, %v1113_v58, %v1116_v24  ;;  %v1127_v2 = vsel %vm1123_vm1, %v1107_v16, %v1110_v32 }
 0x25f   :  { %v3041_v63 = vadd.s32 4294967294, %v953_v17  ;;  %v1133_v4 = vsel %vm1125_vm3, %v1116_v24, %v1132_v21  ;;  %v1136_v27 = vsel %vm1126_vm4, %v1122_v7, 1326507024  ;;  %vm2525_vm5 = vcmp.eq.s32.totalorder %v4696_v11, 0 }
 0x260   :  { %v1129_v61 = vsel %vm1125_vm3, %v1113_v58, %v1128_v22  ;;  %v1134_v50 = vsel %vm1124_vm2, %v1131_v1, %v1133_v4  ;;  %v1137_v51 = vsel %vm1125_vm3, %v1119_v59, %v1136_v27  ;;  %v3043_v60 = vadd.s32 4294967169, %v992_v0 }
 0x261   :  { %vm4731_vm6 = vcmp.le.f32.partialorder %v885_v48, 0.7853982  ;;  %vm3042_vm7 = vcmp.lt.s32.totalorder %v3041_v63, 0  ;;  %v1138_v28 = vsel %vm1124_vm2, %v1135_v9, %v1137_v51  ;;  %vm2522_vm8 = vweird.f32 %v4438_v35 }
 0x262   :  { %v4737_v3 = vmul.u32.u64.low %v4711_v26, %v1134_v50  ;;  %v4738_v25 = vmul.u32.u64.high %v4711_v26, %v1134_v50, %v4737_v3  ;;  %vm2528_vm9 = vcmp.eq.s32.totalorder %v4696_v11, 2  ;;  %v956_v8 = vsel %vm3042_vm7, 0, %v3041_v63 }
 0x263   :  { %v4744_v32 = vmul.u32.u64.low %v4711_v26, %v1138_v28  ;;  %v4745_v13 = vmul.u32.u64.high %v4711_v26, %v1138_v28, %v4744_v32  ;;  %v941_v48 = vadd.s32 %v4649_v38, %v4646_v29  ;;  %v957_v6 = vsub.s32 32, %v956_v8 }
 0x264   :  { %v961_v20 = vsub.s32 4294967266, %v956_v8  ;;  %v1130_v58 = vsel %vm1124_vm2, %v1127_v2, %v1129_v61  ;;  %v972_v24 = vsel %vm887_vm0, %v971_v56, %v4694_v12  ;;  %v988_v18 = vand.u32 2147483647, %v4692_v23 }
 0x265   :  { %v998_v59 = vadd.s32 1, %v3043_v60  ;;  %v4757_v52 = vrot.slane %v4486_v62, %v121_v41  ;;  %v958_v10 = vshll.u32 %v4706_v19, %v956_v8  ;;  %v959_v29 = vshrl.u32 %v941_v48, %v957_v6 }
 0x266   :  { %v3307_v33 = vpop.eup %3306  ;;  %v962_v38 = vadd.s32 127, %v961_v20  ;;  %v1149_v43 = vadd.s32 1, %v4738_v25  ;;  %v1146_v7 = vmul.u32 %v4711_v26, %v1130_v58  ;;  %vm1148_vm10 = vc.u32 %v4745_v13, %v4737_v3 }
 0x267   :  { %v3309_v0 = vpop.eup %3308  ;;  %v2529_v16 = vxor.u32 2147483648, %v3307_v33  ;;  %vm999_vm12 = vcmp.gt.s32.totalorder %v998_v59, 0  ;;  %v960_v53 = vor.u32 %v959_v29, %v958_v10  ;;  %v995_v17 = vand.u32 8388607, %v988_v18 }
 0x268   :  { %v2526_v12 = vxor.u32 2147483648, %v3309_v0  ;;  %v963_v56 = vshll.u32 %v962_v38, 23  ;;  %v1150_v62 = vsel %vm1148_vm10, %v1149_v43, %v4738_v25  ;;  %v1000_v22 = vsel %vm999_vm12, %v998_v59, 0 }
 0x269   :  { %v2530_v41 = vsel %vm2528_vm9, %v2529_v16, %v3309_v0  ;;  %v1151_v19 = vadd.s32 %v1150_v62, %v1146_v7  ;;  %vm2524_vm11 = vcmp.lt.s32.totalorder %v4696_v11, 2  ;;  %v4774_v21 = vadd.f32 %v4310_v39, %v4757_v52 }
 0x26a   :  { %v2527_v26 = vsel %vm2525_vm5, %v3307_v33, %v2526_v12  ;;  %v964_v1 = vor.u32 4788187, %v963_v56  ;;  %v974_v63 = vsel %vm4731_vm6, 0, %v972_v24  ;;  %v1002_v4 = vand.u32 31, %v1000_v22 }
 0x26b   :  { %v2531_v9 = vsel %vm2524_vm11, %v2527_v26, %v2530_v41  ;;  %v1152_v2 = vadd.s32 536870912, %v1151_v19  ;;  %v967_v50 = vcvt.s32.f32 %v960_v53  ;;  %v996_v11 = vor.u32 8388608, %v995_v17 }
 0x26c   :  { %v2532_v27 = vsel %vm2522_vm8, nan, %v2531_v9  ;;  %v965_v61 = vand.u32 2147483647, %v964_v1  ;;  %v1003_v28 = vsub.s32 32, %v1002_v4  ;;  %v4782_v8 = vand.u32 3, %v974_v63 }
 0x26d   :  { %v2964_v51 = vmul.f32 0.044194173, %v2532_v27  ;;  %v4780_v60 = vshrl.u32 %v1152_v2, 30  ;;  %v4784_v39 = vshrl.u32 %v1000_v22, 5  ;;  %v1197_v32 = vand.u32 2139095040, %v4774_v21 }
 0x26e   :  { %v968_v25 = vmul.f32 %v967_v50, %v965_v61  ;;  %v1005_v35 = vshll.u32 %v3461_v36, %v1002_v4  ;;  %v1006_v6 = vshrl.u32 %v3462_v40, %v1003_v28  ;;  %v1011_v20 = vshll.u32 %v3463_v42, %v1002_v4 }
 0x26f   :  { %2988 = vst [vmem:[#allocation8 + $0x98] sm:$0xff] %v2964_v51  ;;  %v1154_v48 = vshll.u32 %v4780_v60, 30  ;;  %v1009_v24 = vshrl.u32 %v3463_v42, %v1003_v28  ;;  %v1012_v59 = vshrl.u32 %v3464_v44, %v1003_v28  ;;  %v1015_v33 = vshrl.u32 %v3465_v46, %v1003_v28 }
 0x270   :  { %v969_v58 = vxor.u32 2147483648, %v968_v25  ;;  %v1008_v29 = vshll.u32 %v3462_v40, %v1002_v4  ;;  %v1014_v38 = vshll.u32 %v3464_v44, %v1002_v4  ;;  %v4798_v43 = vshll.u32 %v996_v11, 8 }
 0x271   :  { %v4794_v10 = vsub.s32 %v1151_v19, %v1154_v48  ;;  %v1007_v16 = vor.u32 %v1006_v6, %v1005_v35  ;;  %v1013_v7 = vor.u32 %v1012_v59, %v1011_v20  ;;  %v1198_v12 = vshrl.u32 %v1197_v32, 23 }
 0x272   :  { %v970_v0 = vsel %vm887_vm0, %v969_v58, %v968_v25  ;;  %v1010_v62 = vor.u32 %v1009_v24, %v1008_v29  ;;  %v1016_v41 = vor.u32 %v1015_v33, %v1014_v38  ;;  %v1017_v19 = vshll.u32 %v3465_v46, %v1002_v4  ;;  %v4838_v29 = vpop.f32.mrb[10].mxu1 }
 0x273   :  { %v973_v53 = vsel %vm4731_vm6, %v4497_v15, %v970_v0  ;;  %v1157_v56 = vsub.s32 0, %v4794_v10  ;;  %v1018_v17 = vshrl.u32 %v3466_v54, %v1003_v28  ;;  %vm1020_vm13 = vcmp.lt.s32.totalorder %v4784_v39, 1 }
 0x274   :  { %3310 = vcosq.f32 %v973_v53  ;;  %vm1093_vm14 = vcmp.lt.s32.totalorder %v4637_v57, 0  ;;  %vm1021_vm15 = vcmp.lt.s32.totalorder %v4784_v39, 2  ;;  %vm1023_vm0 = vcmp.lt.s32.totalorder %v4784_v39, 4 }
 0x275   :  { %3312 = vsinq.f32 %v973_v53  ;;  %v3048_v22 = vmin.u32 %v1157_v56, %v4794_v10  ;;  %v1177_v5 = vsub.s32 4, %v4780_v60  ;;  %v1004_v26 = vshrl.u32 %v3461_v36, %v1003_v28 }
 0x276   :  { %v1019_v1 = vor.u32 %v1018_v17, %v1017_v19  ;;  %v1025_v9 = vsel %vm1023_vm0, %v1013_v7, 2102212464  ;;  %vm1022_vm1 = vcmp.lt.s32.totalorder %v4784_v39, 3  ;;  %v1028_v2 = vsel %vm1020_vm13, %v1007_v16, %v1010_v62 }
 0x277   :  { %v1159_v63 = vclz %v3048_v22  ;;  %v1029_v4 = vsel %vm1023_vm0, %v1016_v41, 920167782  ;;  %v1024_v27 = vsel %vm1020_vm13, %v1004_v26, %v1007_v16  ;;  %v1032_v50 = vsel %vm1020_vm13, %v1010_v62, %v1013_v7 }
 0x278   :  { %v1030_v61 = vsel %vm1022_vm1, %v1013_v7, %v1029_v4  ;;  %v1033_v51 = vsel %vm1023_vm0, %v1019_v1, 1326507024  ;;  %v1026_v25 = vsel %vm1022_vm1, %v1010_v62, %v1025_v9  ;;  %v3051_v20 = vadd.s32 4294967169, %v1198_v12 }
 0x279   :  { %v3049_v11 = vadd.s32 4294967294, %v1159_v63  ;;  %v1031_v28 = vsel %vm1021_vm15, %v1028_v2, %v1030_v61  ;;  %v1034_v32 = vsel %vm1022_vm1, %v1016_v41, %v1033_v51  ;;  %vm979_vm2 = vcmp.lt.s32.totalorder %v4782_v8, 2 }
 0x27a   :  { %v1035_v48 = vsel %vm1021_vm15, %v1032_v50, %v1034_v32  ;;  %v4827_v35 = vmul.u32.u64.low %v4798_v43, %v1031_v28  ;;  %v4828_v6 = vmul.u32.u64.high %v4798_v43, %v1031_v28, %v4827_v35  ;;  %vm980_vm4 = vcmp.eq.s32.totalorder %v4782_v8, 0 }
 0x27b   :  { %vm3050_vm3 = vcmp.lt.s32.totalorder %v3049_v11, 0  ;;  %v4833_v58 = vmul.u32.u64.low %v4798_v43, %v1035_v48  ;;  %v4834_v24 = vmul.u32.u64.high %v4798_v43, %v1035_v48, %v4833_v58  ;;  %vm983_vm5 = vcmp.eq.s32.totalorder %v4782_v8, 2 }
 0x27c   :  { %v1162_v59 = vsel %vm3050_vm3, 0, %v3049_v11  ;;  %v1204_v33 = vadd.s32 1, %v3051_v20  ;;  %v1147_v38 = vadd.s32 %v4737_v3, %v4745_v13  ;;  %v1027_v7 = vsel %vm1021_vm15, %v1024_v27, %v1026_v25 }
 0x27d   :  { %v1163_v0 = vsub.s32 32, %v1162_v59  ;;  %v1167_v16 = vsub.s32 4294967266, %v1162_v59  ;;  %v1178_v53 = vsel %vm1093_vm14, %v1177_v5, %v4780_v60  ;;  %v1046_v56 = vadd.s32 1, %v4828_v6 }
 0x27e   :  { %v3311_v12 = vpop.eup %3310  ;;  %v1194_v62 = vand.u32 2147483647, %v4774_v21  ;;  %vm1205_vm6 = vcmp.gt.s32.totalorder %v1204_v33, 0  ;;  %v1164_v17 = vshll.u32 %v4794_v10, %v1162_v59  ;;  %v1043_v39 = vmul.u32 %v4798_v43, %v1027_v7 }
 0x27f   :  { %v3313_v41 = vpop.eup %3312  ;;  %v984_v19 = vxor.u32 2147483648, %v3311_v12  ;;  %v1165_v3 = vshrl.u32 %v1147_v38, %v1163_v0  ;;  %v1168_v13 = vadd.s32 127, %v1167_v16  ;;  %vm1045_vm7 = vc.u32 %v4834_v24, %v4827_v35 }
 0x280   :  { %v981_v22 = vxor.u32 2147483648, %v3313_v41  ;;  %v1206_v26 = vsel %vm1205_vm6, %v1204_v33, 0  ;;  %v1047_v9 = vsel %vm1045_vm7, %v1046_v56, %v4828_v6  ;;  %v1201_v2 = vand.u32 8388607, %v1194_v62 }
 0x281   :  { %v985_v60 = vsel %vm983_vm5, %v984_v19, %v3313_v41  ;;  %v1166_v5 = vor.u32 %v1165_v3, %v1164_v17  ;;  %v1169_v1 = vshll.u32 %v1168_v13, 23  ;;  %v1048_v10 = vadd.s32 %v1047_v9, %v1043_v39 }
 0x282   :  { %v982_v63 = vsel %vm980_vm4, %v3311_v12, %v981_v22  ;;  %v1208_v4 = vand.u32 31, %v1206_v26  ;;  %vm977_vm8 = vweird.f32 %v4497_v15  ;;  %vm4865_vm9 = vcmp.le.f32.partialorder %v1091_v55, 0.7853982 }
 0x283   :  { %v986_v43 = vsel %vm979_vm2, %v982_v63, %v985_v60  ;;  %v1170_v61 = vor.u32 4788187, %v1169_v1  ;;  %v1049_v51 = vadd.s32 536870912, %v1048_v10  ;;  %v4871_v25 = vadd.f32 %v4390_v14, %v4489_v45 }
 0x284   :  { %v987_v50 = vsel %vm977_vm8, nan, %v986_v43  ;;  %v1209_v11 = vsub.s32 32, %v1208_v4  ;;  %v1173_v15 = vcvt.s32.f32 %v1166_v5  ;;  %v1180_v8 = vsel %vm4865_vm9, 0, %v1178_v53 }
 0x285   :  { %v2949_v28 = vmul.f32 0.044194173, %v987_v50  ;;  %v1171_v32 = vand.u32 2147483647, %v1170_v61  ;;  %v4875_v48 = vshrl.u32 %v1049_v51, 30  ;;  %v1202_v55 = vor.u32 8388608, %v1201_v2 }
 0x286   :  { %v1212_v6 = vshrl.u32 %v3462_v40, %v1209_v11  ;;  %v1215_v20 = vshrl.u32 %v3463_v42, %v1209_v11  ;;  %v1211_v59 = vshll.u32 %v3461_v36, %v1208_v4  ;;  %v1218_v14 = vshrl.u32 %v3464_v44, %v1209_v11 }
 0x287   :  { %2973 = vst [vmem:[#allocation8 + $0x20] sm:$0xff] %v2949_v28  ;;  %v1174_v58 = vmul.f32 %v1173_v15, %v1171_v32  ;;  %v1221_v33 = vshrl.u32 %v3465_v46, %v1209_v11  ;;  %v4882_v38 = vand.u32 3, %v1180_v8  ;;  %v1051_v0 = vshll.u32 %v4875_v48, 30 }
 0x288   :  { %v1207_v16 = vshrl.u32 %v1206_v26, 5  ;;  %v1214_v7 = vshll.u32 %v3462_v40, %v1208_v4  ;;  %v1213_v53 = vor.u32 %v1212_v6, %v1211_v59  ;;  %v1217_v56 = vshll.u32 %v3463_v42, %v1208_v4 }
 0x289   :  { %v1175_v12 = vxor.u32 2147483648, %v1174_v58  ;;  %v1220_v41 = vshll.u32 %v3464_v44, %v1208_v4  ;;  %v4888_v19 = vsub.s32 %v1048_v10, %v1051_v0  ;;  %v1223_v3 = vshll.u32 %v3465_v46, %v1208_v4 }
 0x28a   :  { %v1216_v17 = vor.u32 %v1215_v20, %v1214_v7  ;;  %v1224_v13 = vshrl.u32 %v3466_v54, %v1209_v11  ;;  %v1219_v39 = vor.u32 %v1218_v14, %v1217_v56  ;;  %v1242_v60 = vshll.u32 %v1202_v55, 8 }
 0x28b   :  { %v1176_v22 = vsel %vm1093_vm14, %v1175_v12, %v1174_v58  ;;  %v1222_v26 = vor.u32 %v1221_v33, %v1220_v41  ;;  %v1054_v1 = vsub.s32 0, %v4888_v19  ;;  %v1712_v63 = vand.u32 2139095040, %v4871_v25 }
 0x28c   :  { %v1179_v5 = vsel %vm4865_vm9, %v4637_v57, %v1176_v22  ;;  %v1225_v9 = vor.u32 %v1224_v13, %v1223_v3  ;;  %v1210_v10 = vshrl.u32 %v3461_v36, %v1209_v11  ;;  %vm1226_vm10 = vcmp.lt.s32.totalorder %v1207_v16, 1 }
 0x28d   :  { %3314 = vcosq.f32 %v1179_v5  ;;  %vm1227_vm12 = vcmp.lt.s32.totalorder %v1207_v16, 2  ;;  %v3044_v2 = vmin.u32 %v1054_v1, %v4888_v19  ;;  %vm1229_vm11 = vcmp.lt.s32.totalorder %v1207_v16, 4 }
 0x28e   :  { %3316 = vsinq.f32 %v1179_v5  ;;  %v1234_v4 = vsel %vm1226_vm10, %v1213_v53, %v1216_v17  ;;  %vm1228_vm13 = vcmp.lt.s32.totalorder %v1207_v16, 3  ;;  %v1231_v43 = vsel %vm1229_vm11, %v1219_v39, 2102212464 }
 0x28f   :  { %v1235_v61 = vsel %vm1229_vm11, %v1222_v26, 920167782  ;;  %v1238_v27 = vsel %vm1226_vm10, %v1216_v17, %v1219_v39  ;;  %vm990_vm14 = vcmp.lt.s32.totalorder %v4692_v23, 0  ;;  %v1056_v50 = vclz %v3044_v2 }
 0x290   :  { %v1230_v51 = vsel %vm1226_vm10, %v1210_v10, %v1213_v53  ;;  %v1236_v28 = vsel %vm1228_vm13, %v1219_v39, %v1235_v61  ;;  %v1239_v32 = vsel %vm1229_vm11, %v1225_v9, 1326507024  ;;  %v1232_v15 = vsel %vm1228_vm13, %v1216_v17, %v1231_v43  ;;  %v4922_v17 = vpop.f32.mrb[11].mxu0 }
 0x291   :  { %v1237_v11 = vsel %vm1227_vm12, %v1234_v4, %v1236_v28  ;;  %v1240_v8 = vsel %vm1228_vm13, %v1222_v26, %v1239_v32  ;;  %v1713_v55 = vshrl.u32 %v1712_v63, 23  ;;  %v3045_v6 = vadd.s32 4294967294, %v1056_v50 }
 0x292   :  { %v1241_v20 = vsel %vm1227_vm12, %v1238_v27, %v1240_v8  ;;  %v4904_v58 = vmul.u32.u64.low %v1242_v60, %v1237_v11  ;;  %v4905_v59 = vmul.u32.u64.high %v1242_v60, %v1237_v11, %v4904_v58  ;;  %vm4910_vm15 = vcmp.le.f32.partialorder %v988_v18, 0.7853982 }
 0x293   :  { %v4914_v33 = vmul.u32.u64.low %v1242_v60, %v1241_v20  ;;  %v4915_v0 = vmul.u32.u64.high %v1242_v60, %v1241_v20, %v4914_v33  ;;  %v3071_v7 = vadd.s32 4294967169, %v1713_v55  ;;  %vm1186_vm0 = vcmp.eq.s32.totalorder %v4882_v38, 0 }
 0x294   :  { %vm1189_vm1 = vcmp.eq.s32.totalorder %v4882_v38, 2  ;;  %vm3046_vm2 = vcmp.lt.s32.totalorder %v3045_v6, 0  ;;  %v1233_v12 = vsel %vm1227_vm12, %v1230_v51, %v1232_v15  ;;  %v1074_v56 = vsub.s32 4, %v4875_v48 }
 0x295   :  { %v1059_v53 = vsel %vm3046_vm2, 0, %v3045_v6  ;;  %v1709_v41 = vand.u32 2147483647, %v4871_v25  ;;  %v1719_v18 = vadd.s32 1, %v3071_v7  ;;  %v1044_v3 = vadd.s32 %v4827_v35, %v4834_v24 }
 0x296   :  { %v1060_v13 = vsub.s32 32, %v1059_v53  ;;  %v1064_v22 = vsub.s32 4294967266, %v1059_v53  ;;  %v1252_v39 = vadd.s32 1, %v4905_v59  ;;  %v1061_v5 = vshll.u32 %v4888_v19, %v1059_v53 }
 0x297   :  { %v3315_v26 = vpop.eup %3314  ;;  %v1249_v16 = vmul.u32 %v1242_v60, %v1233_v12  ;;  %vm1251_vm3 = vc.u32 %v4915_v0, %v4904_v58  ;;  %vm1720_vm4 = vcmp.gt.s32.totalorder %v1719_v18, 0  ;;  %v1075_v35 = vsel %vm990_vm14, %v1074_v56, %v4875_v48 }
 0x298   :  { %v3317_v1 = vpop.eup %3316  ;;  %v1190_v9 = vxor.u32 2147483648, %v3315_v26  ;;  %v1062_v63 = vshrl.u32 %v1044_v3, %v1060_v13  ;;  %v1065_v10 = vadd.s32 127, %v1064_v22  ;;  %v1253_v2 = vsel %vm1251_vm3, %v1252_v39, %v4905_v59 }
 0x299   :  { %v1187_v4 = vxor.u32 2147483648, %v3317_v1  ;;  %v1254_v24 = vadd.s32 %v1253_v2, %v1249_v16  ;;  %v1721_v43 = vsel %vm1720_vm4, %v1719_v18, 0  ;;  %v1716_v27 = vand.u32 8388607, %v1709_v41 }
 0x29a   :  { %v1191_v19 = vsel %vm1189_vm1, %v1190_v9, %v3317_v1  ;;  %v1063_v60 = vor.u32 %v1062_v63, %v1061_v5  ;;  %v1066_v61 = vshll.u32 %v1065_v10, 23  ;;  %vm1185_vm5 = vcmp.lt.s32.totalorder %v4882_v38, 2 }
 0x29b   :  { %v1188_v50 = vsel %vm1186_vm0, %v3315_v26, %v1187_v4  ;;  %v1255_v51 = vadd.s32 536870912, %v1254_v24  ;;  %v1723_v28 = vand.u32 31, %v1721_v43  ;;  %vm1183_vm6 = vweird.f32 %v4637_v57 }
 0x29c   :  { %v1192_v48 = vsel %vm1185_vm5, %v1188_v50, %v1191_v19  ;;  %v1067_v32 = vor.u32 4788187, %v1066_v61  ;;  %v1077_v15 = vsel %vm4910_vm15, 0, %v1075_v35  ;;  %v4948_v6 = vadd.f32 %v4471_v47, %v4623_v30 }
 0x29d   :  { %v1193_v11 = vsel %vm1183_vm6, nan, %v1192_v48  ;;  %v4944_v8 = vshrl.u32 %v1255_v51, 30  ;;  %v1724_v55 = vsub.s32 32, %v1723_v28  ;;  %v1070_v59 = vcvt.s32.f32 %v1063_v60 }
 0x29e   :  { %v2951_v20 = vmul.f32 0.044194173, %v1193_v11  ;;  %v1068_v38 = vand.u32 2147483647, %v1067_v32  ;;  %v1717_v33 = vor.u32 8388608, %v1716_v27  ;;  %v4950_v7 = vand.u32 3, %v1077_v15 }
 0x29f   :  { %v1257_v57 = vshll.u32 %v4944_v8, 30  ;;  %v1722_v12 = vshrl.u32 %v1721_v43, 5  ;;  %v1727_v53 = vshrl.u32 %v3462_v40, %v1724_v55  ;;  %v1726_v18 = vshll.u32 %v3461_v36, %v1723_v28 }
 0x2a0   :  { %2975 = vst [vmem:[#allocation8 + $0x30] sm:$0xff] %v2951_v20  ;;  %v1071_v56 = vmul.f32 %v1070_v59, %v1068_v38  ;;  %v1730_v3 = vshrl.u32 %v3463_v42, %v1724_v55  ;;  %v1733_v47 = vshrl.u32 %v3464_v44, %v1724_v55  ;;  %v1729_v22 = vshll.u32 %v3462_v40, %v1723_v28 }
 0x2a1   :  { %v4957_v13 = vsub.s32 %v1254_v24, %v1257_v57  ;;  %v1732_v39 = vshll.u32 %v3463_v42, %v1723_v28  ;;  %v1736_v26 = vshrl.u32 %v3465_v46, %v1724_v55  ;;  %v1735_v16 = vshll.u32 %v3464_v44, %v1723_v28 }
 0x2a2   :  { %v1072_v5 = vxor.u32 2147483648, %v1071_v56  ;;  %v4963_v1 = vshll.u32 %v1717_v33, 8  ;;  %v1918_v9 = vand.u32 2139095040, %v4948_v6  ;;  %v1728_v10 = vor.u32 %v1727_v53, %v1726_v18  ;;  %v4978_v33 = vpop.f32.mrb[11].mxu1 }
 0x2a3   :  { %v1260_v63 = vsub.s32 0, %v4957_v13  ;;  %v1731_v2 = vor.u32 %v1730_v3, %v1729_v22  ;;  %v1734_v4 = vor.u32 %v1733_v47, %v1732_v39  ;;  %v1737_v24 = vor.u32 %v1736_v26, %v1735_v16 }
 0x2a4   :  { %v1073_v35 = vsel %vm990_vm14, %v1072_v5, %v1071_v56  ;;  %v1738_v43 = vshll.u32 %v3465_v46, %v1723_v28  ;;  %v1739_v19 = vshrl.u32 %v3466_v54, %v1724_v55  ;;  %v1280_v27 = vsub.s32 4, %v4944_v8 }
 0x2a5   :  { %v1076_v60 = vsel %vm4910_vm15, %v4692_v23, %v1073_v35  ;;  %v3052_v61 = vmin.u32 %v1260_v63, %v4957_v13  ;;  %vm1741_vm7 = vcmp.lt.s32.totalorder %v1722_v12, 1  ;;  %v1725_v50 = vshrl.u32 %v3461_v36, %v1724_v55 }
 0x2a6   :  { %3318 = vcosq.f32 %v1076_v60  ;;  %v1740_v51 = vor.u32 %v1739_v19, %v1738_v43  ;;  %vm1744_vm8 = vcmp.lt.s32.totalorder %v1722_v12, 4  ;;  %vm1196_vm9 = vcmp.lt.s32.totalorder %v4774_v21, 0 }
 0x2a7   :  { %3320 = vsinq.f32 %v1076_v60  ;;  %v1262_v28 = vclz %v3052_v61  ;;  %vm1742_vm10 = vcmp.lt.s32.totalorder %v1722_v12, 2  ;;  %v1746_v48 = vsel %vm1744_vm8, %v1734_v4, 2102212464 }
 0x2a8   :  { %vm1743_vm12 = vcmp.lt.s32.totalorder %v1722_v12, 3  ;;  %v1749_v32 = vsel %vm1741_vm7, %v1728_v10, %v1731_v2  ;;  %v1750_v14 = vsel %vm1744_vm8, %v1737_v24, 920167782  ;;  %v1753_v15 = vsel %vm1741_vm7, %v1731_v2, %v1734_v4 }
 0x2a9   :  { %v3053_v11 = vadd.s32 4294967294, %v1262_v28  ;;  %v1745_v20 = vsel %vm1741_vm7, %v1725_v50, %v1728_v10  ;;  %v1751_v38 = vsel %vm1743_vm12, %v1734_v4, %v1750_v14  ;;  %v1754_v59 = vsel %vm1744_vm8, %v1740_v51, 1326507024 }
 0x2aa   :  { %v1747_v57 = vsel %vm1743_vm12, %v1731_v2, %v1746_v48  ;;  %v1752_v55 = vsel %vm1742_vm10, %v1749_v32, %v1751_v38  ;;  %v1755_v53 = vsel %vm1743_vm12, %v1737_v24, %v1754_v59  ;;  %v1919_v56 = vshrl.u32 %v1918_v9, 23 }
 0x2ab   :  { %vm3054_vm11 = vcmp.lt.s32.totalorder %v3053_v11, 0  ;;  %v1756_v18 = vsel %vm1742_vm10, %v1753_v15, %v1755_v53  ;;  %v4983_v3 = vmul.u32.u64.low %v4963_v1, %v1752_v55  ;;  %v4984_v47 = vmul.u32.u64.high %v4963_v1, %v1752_v55, %v4983_v3 }
 0x2ac   :  { %v1265_v22 = vsel %vm3054_vm11, 0, %v3053_v11  ;;  %v4988_v39 = vmul.u32.u64.low %v4963_v1, %v1756_v18  ;;  %v4989_v26 = vmul.u32.u64.high %v4963_v1, %v1756_v18, %v4988_v39  ;;  %v3079_v5 = vadd.s32 4294967169, %v1919_v56 }
 0x2ad   :  { %v1250_v16 = vadd.s32 %v4904_v58, %v4915_v0  ;;  %v1266_v63 = vsub.s32 32, %v1265_v22  ;;  %v1270_v10 = vsub.s32 4294967266, %v1265_v22  ;;  %v1748_v9 = vsel %vm1742_vm10, %v1745_v20, %v1747_v57 }
 0x2ae   :  { %vm1083_vm13 = vcmp.eq.s32.totalorder %v4950_v7, 0  ;;  %vm4997_vm14 = vcmp.le.f32.partialorder %v1194_v62, 0.7853982  ;;  %v1915_v4 = vand.u32 2147483647, %v4948_v6  ;;  %v1925_v35 = vadd.s32 1, %v3079_v5 }
 0x2af   :  { %v1267_v24 = vshll.u32 %v4957_v13, %v1265_v22  ;;  %v1268_v43 = vshrl.u32 %v1250_v16, %v1266_v63  ;;  %v1271_v19 = vadd.s32 127, %v1270_v10  ;;  %v1767_v58 = vadd.s32 1, %v4984_v47 }
 0x2b0   :  { %v3319_v0 = vpop.eup %3318  ;;  %v1281_v12 = vsel %vm1196_vm9, %v1280_v27, %v4944_v8  ;;  %v1764_v60 = vmul.u32 %v4963_v1, %v1748_v9  ;;  %vm1766_vm15 = vc.u32 %v4989_v26, %v4983_v3  ;;  %vm1926_vm0 = vcmp.gt.s32.totalorder %v1925_v35, 0 }
 0x2b1   :  { %v3321_v62 = vpop.eup %3320  ;;  %v1087_v61 = vxor.u32 2147483648, %v3319_v0  ;;  %v1269_v50 = vor.u32 %v1268_v43, %v1267_v24  ;;  %v1272_v51 = vshll.u32 %v1271_v19, 23  ;;  %v1768_v13 = vsel %vm1766_vm15, %v1767_v58, %v4984_v47 }
 0x2b2   :  { %v1084_v28 = vxor.u32 2147483648, %v3321_v62  ;;  %vm1086_vm1 = vcmp.eq.s32.totalorder %v4950_v7, 2  ;;  %v1769_v48 = vadd.s32 %v1768_v13, %v1764_v60  ;;  %v1927_v32 = vsel %vm1926_vm0, %v1925_v35, 0 }
 0x2b3   :  { %v1088_v14 = vsel %vm1086_vm1, %v1087_v61, %v3321_v62  ;;  %v1273_v15 = vor.u32 4788187, %v1272_v51  ;;  %v1283_v8 = vsel %vm4997_vm14, 0, %v1281_v12  ;;  %v1922_v1 = vand.u32 8388607, %v1915_v4 }
 0x2b4   :  { %vm1082_vm2 = vcmp.lt.s32.totalorder %v4950_v7, 2  ;;  %v1085_v27 = vsel %vm1083_vm13, %v3319_v0, %v1084_v28  ;;  %v1770_v11 = vadd.s32 536870912, %v1769_v48  ;;  %v1929_v20 = vand.u32 31, %v1927_v32 }
 0x2b5   :  { %vm1080_vm3 = vweird.f32 %v4692_v23  ;;  %v1089_v38 = vsel %vm1082_vm2, %v1085_v27, %v1088_v14  ;;  %v1274_v59 = vand.u32 2147483647, %v1273_v15  ;;  %v1276_v57 = vcvt.s32.f32 %v1269_v50 }
 0x2b6   :  { %v1090_v55 = vsel %vm1080_vm3, nan, %v1089_v38  ;;  %v5020_v53 = vand.u32 3, %v1283_v8  ;;  %v5022_v56 = vshrl.u32 %v1770_v11, 30  ;;  %v1930_v18 = vsub.s32 32, %v1929_v20 }
 0x2b7   :  { %v2950_v47 = vmul.f32 0.044194173, %v1090_v55  ;;  %v1277_v22 = vmul.f32 %v1276_v57, %v1274_v59  ;;  %v1923_v39 = vor.u32 8388608, %v1922_v1  ;;  %v5026_v7 = vadd.f32 %v4574_v49, %v4657_v31 }
 0x2b8   :  { %v1772_v5 = vshll.u32 %v5022_v56, 30  ;;  %v5029_v16 = vshrl.u32 %v1927_v32, 5  ;;  %v1932_v23 = vshll.u32 %v3461_v36, %v1929_v20  ;;  %v1933_v63 = vshrl.u32 %v3462_v40, %v1930_v18 }
 0x2b9   :  { %2974 = vst [vmem:[#allocation8 + $0x28] sm:$0xff] %v2950_v47  ;;  %v1278_v10 = vxor.u32 2147483648, %v1277_v22  ;;  %v1935_v9 = vshll.u32 %v3462_v40, %v1929_v20  ;;  %v1936_v35 = vshrl.u32 %v3463_v42, %v1930_v18  ;;  %v1939_v24 = vshrl.u32 %v3464_v44, %v1930_v18 }
 0x2ba   :  { %v5036_v43 = vsub.s32 %v1769_v48, %v1772_v5  ;;  %v1938_v49 = vshll.u32 %v3463_v42, %v1929_v20  ;;  %v1941_v19 = vshll.u32 %v3464_v44, %v1929_v20  ;;  %v1942_v58 = vshrl.u32 %v3465_v46, %v1930_v18 }
 0x2bb   :  { %v1279_v0 = vsel %vm1196_vm9, %v1278_v10, %v1277_v22  ;;  %v1934_v12 = vor.u32 %v1933_v63, %v1932_v23  ;;  %v1937_v60 = vor.u32 %v1936_v35, %v1935_v9  ;;  %v1812_v62 = vand.u32 2147483647, %v5026_v7 }
 0x2bc   :  { %v1282_v61 = vsel %vm4997_vm14, %v4774_v21, %v1279_v0  ;;  %v1775_v50 = vsub.s32 0, %v5036_v43  ;;  %v1940_v51 = vor.u32 %v1939_v24, %v1938_v49  ;;  %v1943_v13 = vor.u32 %v1942_v58, %v1941_v19 }
 0x2bd   :  { %3322 = vcosq.f32 %v1282_v61  ;;  %v1944_v28 = vshll.u32 %v3465_v46, %v1929_v20  ;;  %v1945_v48 = vshrl.u32 %v3466_v54, %v1930_v18  ;;  %v1963_v32 = vshll.u32 %v1923_v39, 8 }
 0x2be   :  { %3324 = vsinq.f32 %v1282_v61  ;;  %vm1711_vm4 = vcmp.lt.s32.totalorder %v4871_v25, 0  ;;  %v3072_v14 = vmin.u32 %v1775_v50, %v5036_v43  ;;  %vm1947_vm5 = vcmp.lt.s32.totalorder %v5029_v16, 1 }
 0x2bf   :  { %vm1948_vm6 = vcmp.lt.s32.totalorder %v5029_v16, 2  ;;  %v1931_v2 = vshrl.u32 %v3461_v36, %v1930_v18  ;;  %v1946_v15 = vor.u32 %v1945_v48, %v1944_v28  ;;  %vm1949_vm7 = vcmp.lt.s32.totalorder %v5029_v16, 3 }
 0x2c0   :  { %vm1950_vm8 = vcmp.lt.s32.totalorder %v5029_v16, 4  ;;  %v1777_v8 = vclz %v3072_v14  ;;  %v1955_v27 = vsel %vm1947_vm5, %v1934_v12, %v1937_v60  ;;  %v1795_v20 = vsub.s32 4, %v5022_v56 }
 0x2c1   :  { %v1952_v1 = vsel %vm1950_vm8, %v1940_v51, 2102212464  ;;  %v1956_v11 = vsel %vm1950_vm8, %v1943_v13, 920167782  ;;  %v1959_v59 = vsel %vm1947_vm5, %v1937_v60, %v1940_v51  ;;  %v1960_v57 = vsel %vm1950_vm8, %v1946_v15, 1326507024 }
 0x2c2   :  { %v1957_v38 = vsel %vm1949_vm7, %v1940_v51, %v1956_v11  ;;  %v3073_v55 = vadd.s32 4294967294, %v1777_v8  ;;  %v1951_v47 = vsel %vm1947_vm5, %v1931_v2, %v1934_v12  ;;  %v1961_v18 = vsel %vm1949_vm7, %v1943_v13, %v1960_v57 }
 0x2c3   :  { %v1958_v22 = vsel %vm1948_vm6, %v1955_v27, %v1957_v38  ;;  %vm5062_vm9 = vcmp.le.f32.partialorder %v1709_v41, 0.7853982  ;;  %v1953_v5 = vsel %vm1949_vm7, %v1937_v60, %v1952_v1  ;;  %v1962_v23 = vsel %vm1948_vm6, %v1959_v59, %v1961_v18 }
 0x2c4   :  { %v5068_v63 = vmul.u32.u64.low %v1963_v32, %v1958_v22  ;;  %v5069_v10 = vmul.u32.u64.high %v1963_v32, %v1958_v22, %v5068_v63  ;;  %vm1286_vm10 = vweird.f32 %v4774_v21  ;;  %vm1289_vm12 = vcmp.eq.s32.totalorder %v5020_v53, 0 }
 0x2c5   :  { %vm3074_vm11 = vcmp.lt.s32.totalorder %v3073_v55, 0  ;;  %v5074_v9 = vmul.u32.u64.low %v1963_v32, %v1962_v23  ;;  %v5075_v35 = vmul.u32.u64.high %v1963_v32, %v1962_v23, %v5074_v9  ;;  %vm1292_vm13 = vcmp.eq.s32.totalorder %v5020_v53, 2 }
 0x2c6   :  { %v1780_v41 = vsel %vm3074_vm11, 0, %v3073_v55  ;;  %v1815_v24 = vand.u32 2139095040, %v5026_v7  ;;  %v5081_v49 = vadd.f32 %v4667_v37, %v4757_v52  ;;  %v1765_v19 = vadd.s32 %v4983_v3, %v4989_v26 }
 0x2c7   :  { %v1781_v58 = vsub.s32 32, %v1780_v41  ;;  %v1785_v0 = vsub.s32 4294967266, %v1780_v41  ;;  %v1954_v12 = vsel %vm1948_vm6, %v1951_v47, %v1953_v5  ;;  %v3323_v60 = vpop.eup %3322  ;;  %v1796_v61 = vsel %vm1711_vm4, %v1795_v20, %v5022_v56 }
 0x2c8   :  { %v1973_v50 = vadd.s32 1, %v5069_v10  ;;  %v1816_v51 = vshrl.u32 %v1815_v24, 23  ;;  %v1819_v37 = vand.u32 8388607, %v1812_v62  ;;  %v3325_v13 = vpop.eup %3324  ;;  %v1293_v28 = vxor.u32 2147483648, %v3323_v60 }
 0x2c9   :  { %v1782_v3 = vshll.u32 %v5036_v43, %v1780_v41  ;;  %v1783_v26 = vshrl.u32 %v1765_v19, %v1781_v58  ;;  %v1786_v48 = vadd.s32 127, %v1785_v0  ;;  %v1290_v14 = vxor.u32 2147483648, %v3325_v13 }
 0x2ca   :  { %v1970_v16 = vmul.u32 %v1963_v32, %v1954_v12  ;;  %vm1972_vm14 = vc.u32 %v5075_v35, %v5068_v63  ;;  %v3075_v2 = vadd.s32 4294967169, %v1816_v51  ;;  %v1294_v56 = vsel %vm1292_vm13, %v1293_v28, %v3325_v13 }
 0x2cb   :  { %v1784_v15 = vor.u32 %v1783_v26, %v1782_v3  ;;  %v1787_v8 = vshll.u32 %v1786_v48, 23  ;;  %v1974_v1 = vsel %vm1972_vm14, %v1973_v50, %v5069_v10  ;;  %vm1288_vm15 = vcmp.lt.s32.totalorder %v5020_v53, 2 }
 0x2cc   :  { %v1291_v43 = vsel %vm1289_vm12, %v3323_v60, %v1290_v14  ;;  %v1975_v27 = vadd.s32 %v1974_v1, %v1970_v16  ;;  %v1822_v11 = vadd.s32 1, %v3075_v2  ;;  %v1798_v38 = vsel %vm5062_vm9, 0, %v1796_v61 }
 0x2cd   :  { %v1295_v20 = vsel %vm1288_vm15, %v1291_v43, %v1294_v56  ;;  %v1788_v32 = vor.u32 4788187, %v1787_v8  ;;  %v1820_v59 = vor.u32 8388608, %v1819_v37  ;;  %v1791_v55 = vcvt.s32.f32 %v1784_v15 }
 0x2ce   :  { %v1296_v57 = vsel %vm1286_vm10, nan, %v1295_v20  ;;  %v1976_v47 = vadd.s32 536870912, %v1975_v27  ;;  %vm1823_vm0 = vcmp.gt.s32.totalorder %v1822_v11, 0  ;;  %v2021_v53 = vand.u32 2139095040, %v5081_v49 }
 0x2cf   :  { %v2952_v22 = vmul.f32 0.044194173, %v1296_v57  ;;  %v1789_v18 = vand.u32 2147483647, %v1788_v32  ;;  %v1824_v5 = vsel %vm1823_vm0, %v1822_v11, 0  ;;  %v5109_v41 = vand.u32 3, %v1798_v38 }
 0x2d0   :  { %v5107_v23 = vshrl.u32 %v1976_v47, 30  ;;  %v1826_v10 = vand.u32 31, %v1824_v5  ;;  %v5112_v58 = vshll.u32 %v1820_v59, 8  ;;  %v2018_v0 = vand.u32 2147483647, %v5081_v49 }
 0x2d1   :  { %2976 = vst [vmem:[#allocation8 + $0x38] sm:$0xff] %v2952_v22  ;;  %v1792_v9 = vmul.f32 %v1791_v55, %v1789_v18  ;;  %v2022_v12 = vshrl.u32 %v2021_v53, 23  ;;  %v1825_v61 = vshrl.u32 %v1824_v5, 5  ;;  %vm1804_vm5 = vcmp.eq.s32.totalorder %v5109_v41, 0 }
 0x2d2   :  { %v1978_v24 = vshll.u32 %v5107_v23, 30  ;;  %v1827_v19 = vsub.s32 32, %v1826_v10  ;;  %v1829_v50 = vshll.u32 %v3461_v36, %v1826_v10  ;;  %v1832_v13 = vshll.u32 %v3462_v40, %v1826_v10 }
 0x2d3   :  { %v1793_v21 = vxor.u32 2147483648, %v1792_v9  ;;  %v1835_v14 = vshll.u32 %v3463_v42, %v1826_v10  ;;  %v1838_v16 = vshll.u32 %v3464_v44, %v1826_v10  ;;  %v3083_v43 = vadd.s32 4294967169, %v2022_v12 }
 0x2d4   :  { %v5115_v60 = vsub.s32 %v1975_v27, %v1978_v24  ;;  %v1830_v51 = vshrl.u32 %v3462_v40, %v1827_v19  ;;  %v1833_v28 = vshrl.u32 %v3463_v42, %v1827_v19  ;;  %v1836_v3 = vshrl.u32 %v3464_v44, %v1827_v19 }
 0x2d5   :  { %v1794_v37 = vsel %vm1711_vm4, %v1793_v21, %v1792_v9  ;;  %v1839_v15 = vshrl.u32 %v3465_v46, %v1827_v19  ;;  %v1828_v27 = vshrl.u32 %v3461_v36, %v1827_v19  ;;  %v1841_v11 = vshll.u32 %v3465_v46, %v1826_v10 }
 0x2d6   :  { %v1797_v26 = vsel %vm5062_vm9, %v4871_v25, %v1794_v37  ;;  %v1981_v48 = vsub.s32 0, %v5115_v60  ;;  %v1831_v2 = vor.u32 %v1830_v51, %v1829_v50  ;;  %v1834_v56 = vor.u32 %v1833_v28, %v1832_v13 }
 0x2d7   :  { %3326 = vcosq.f32 %v1797_v26  ;;  %v1837_v1 = vor.u32 %v1836_v3, %v1835_v14  ;;  %v1840_v39 = vor.u32 %v1839_v15, %v1838_v16  ;;  %v1842_v20 = vshrl.u32 %v3466_v54, %v1827_v19 }
 0x2d8   :  { %3328 = vsinq.f32 %v1797_v26  ;;  %v3080_v8 = vmin.u32 %v1981_v48, %v5115_v60  ;;  %vm1844_vm1 = vcmp.lt.s32.totalorder %v1825_v61, 1  ;;  %vm1845_vm2 = vcmp.lt.s32.totalorder %v1825_v61, 2 }
 0x2d9   :  { %vm1846_vm3 = vcmp.lt.s32.totalorder %v1825_v61, 3  ;;  %v1843_v38 = vor.u32 %v1842_v20, %v1841_v11  ;;  %vm1847_vm4 = vcmp.lt.s32.totalorder %v1825_v61, 4  ;;  %v1848_v59 = vsel %vm1844_vm1, %v1828_v27, %v1831_v2 }
 0x2da   :  { %v1983_v32 = vclz %v3080_v8  ;;  %v1852_v57 = vsel %vm1844_vm1, %v1831_v2, %v1834_v56  ;;  %v1849_v47 = vsel %vm1847_vm4, %v1837_v1, 2102212464  ;;  %v1853_v22 = vsel %vm1847_vm4, %v1840_v39, 920167782 }
 0x2db   :  { %v1856_v18 = vsel %vm1844_vm1, %v1834_v56, %v1837_v1  ;;  %vm1803_vm6 = vcmp.lt.s32.totalorder %v5109_v41, 2  ;;  %vm1917_vm7 = vcmp.lt.s32.totalorder %v4948_v6, 0  ;;  %v1850_v5 = vsel %vm1846_vm3, %v1834_v56, %v1849_v47 }
 0x2dc   :  { %v3081_v55 = vadd.s32 4294967294, %v1983_v32  ;;  %v1854_v53 = vsel %vm1846_vm3, %v1837_v1, %v1853_v22  ;;  %v1857_v10 = vsel %vm1847_vm4, %v1843_v38, 1326507024  ;;  %v2028_v9 = vadd.s32 1, %v3083_v43 }
 0x2dd   :  { %vm1801_vm8 = vweird.f32 %v4871_v25  ;;  %v1971_v24 = vadd.s32 %v5068_v63, %v5075_v35  ;;  %v1855_v19 = vsel %vm1845_vm2, %v1852_v57, %v1854_v53  ;;  %v1858_v21 = vsel %vm1846_vm3, %v1840_v39, %v1857_v10 }
 0x2de   :  { %vm3082_vm9 = vcmp.lt.s32.totalorder %v3081_v55, 0  ;;  %v1859_v50 = vsel %vm1845_vm2, %v1856_v18, %v1858_v21  ;;  %v5147_v51 = vmul.u32.u64.low %v5112_v58, %v1855_v19  ;;  %v5148_v37 = vmul.u32.u64.high %v5112_v58, %v1855_v19, %v5147_v51 }
 0x2df   :  { %v1986_v12 = vsel %vm3082_vm9, 0, %v3081_v55  ;;  %v2001_v3 = vsub.s32 4, %v5107_v23  ;;  %v1851_v26 = vsel %vm1845_vm2, %v1848_v59, %v1850_v5  ;;  %vm2029_vm10 = vcmp.gt.s32.totalorder %v2028_v9, 0 }
 0x2e0   :  { %v1987_v13 = vsub.s32 32, %v1986_v12  ;;  %v1991_v28 = vsub.s32 4294967266, %v1986_v12  ;;  %v1988_v35 = vshll.u32 %v5115_v60, %v1986_v12  ;;  %v2030_v8 = vsel %vm2029_vm10, %v2028_v9, 0 }
 0x2e1   :  { %v3327_v63 = vpop.eup %3326  ;;  %v5155_v48 = vmul.u32.u64.low %v5112_v58, %v1859_v50  ;;  %v5156_v14 = vmul.u32.u64.high %v5112_v58, %v1859_v50, %v5155_v48  ;;  %vm1807_vm12 = vcmp.eq.s32.totalorder %v5109_v41, 2  ;;  %v1870_v43 = vadd.s32 1, %v5148_v37 }
 0x2e2   :  { %v3329_v16 = vpop.eup %3328  ;;  %v1808_v2 = vxor.u32 2147483648, %v3327_v63  ;;  %v1989_v56 = vshrl.u32 %v1971_v24, %v1987_v13  ;;  %v1992_v15 = vadd.s32 127, %v1991_v28  ;;  %v2032_v61 = vand.u32 31, %v2030_v8 }
 0x2e3   :  { %v1805_v1 = vxor.u32 2147483648, %v3329_v16  ;;  %v2025_v60 = vand.u32 8388607, %v2018_v0  ;;  %v1867_v32 = vmul.u32 %v5112_v58, %v1851_v26  ;;  %vm1869_vm11 = vc.u32 %v5156_v14, %v5147_v51 }
 0x2e4   :  { %v1809_v27 = vsel %vm1807_vm12, %v1808_v2, %v3329_v16  ;;  %v1990_v39 = vor.u32 %v1989_v56, %v1988_v35  ;;  %v1993_v11 = vshll.u32 %v1992_v15, 23  ;;  %v2033_v38 = vsub.s32 32, %v2032_v61 }
 0x2e5   :  { %v1806_v20 = vsel %vm1804_vm5, %v3327_v63, %v1805_v1  ;;  %v2002_v55 = vsel %vm1917_vm7, %v2001_v3, %v5107_v23  ;;  %v1871_v47 = vsel %vm1869_vm11, %v1870_v43, %v5148_v37  ;;  %vm5177_vm13 = vcmp.le.f32.partialorder %v1915_v4, 0.7853982 }
 0x2e6   :  { %v1810_v59 = vsel %vm1803_vm6, %v1806_v20, %v1809_v27  ;;  %v1994_v57 = vor.u32 4788187, %v1993_v11  ;;  %v1872_v18 = vadd.s32 %v1871_v47, %v1867_v32  ;;  %v1997_v53 = vcvt.s32.f32 %v1990_v39 }
 0x2e7   :  { %v1811_v22 = vsel %vm1801_vm8, nan, %v1810_v59  ;;  %v2026_v10 = vor.u32 8388608, %v2025_v60  ;;  %v2004_v9 = vsel %vm5177_vm13, 0, %v2002_v55  ;;  %v2036_v24 = vshrl.u32 %v3462_v40, %v2033_v38 }
 0x2e8   :  { %v2957_v5 = vmul.f32 0.044194173, %v1811_v22  ;;  %v1995_v41 = vand.u32 2147483647, %v1994_v57  ;;  %v1873_v23 = vadd.s32 536870912, %v1872_v18  ;;  %v2042_v25 = vshrl.u32 %v3464_v44, %v2033_v38 }
 0x2e9   :  { %v2031_v21 = vshrl.u32 %v2030_v8, 5  ;;  %v2039_v4 = vshrl.u32 %v3463_v42, %v2033_v38  ;;  %v2045_v12 = vshrl.u32 %v3465_v46, %v2033_v38  ;;  %v2035_v37 = vshll.u32 %v3461_v36, %v2032_v61 }
 0x2ea   :  { %2981 = vst [vmem:[#allocation8 + $0x60] sm:$0xff] %v2957_v5  ;;  %v1998_v19 = vmul.f32 %v1997_v53, %v1995_v41  ;;  %v1874_v50 = vshrl.u32 %v1873_v23, 30  ;;  %v2038_v13 = vshll.u32 %v3462_v40, %v2032_v61  ;;  %v2041_v28 = vshll.u32 %v3463_v42, %v2032_v61 }
 0x2eb   :  { %v2044_v26 = vshll.u32 %v3464_v44, %v2032_v61  ;;  %v2047_v63 = vshll.u32 %v3465_v46, %v2032_v61  ;;  %v2048_v35 = vshrl.u32 %v3466_v54, %v2033_v38  ;;  %v2037_v16 = vor.u32 %v2036_v24, %v2035_v37 }
 0x2ec   :  { %v1999_v3 = vxor.u32 2147483648, %v1998_v19  ;;  %v1875_v48 = vshll.u32 %v1874_v50, 30  ;;  %v2043_v2 = vor.u32 %v2042_v25, %v2041_v28  ;;  %v2040_v15 = vor.u32 %v2039_v4, %v2038_v13 }
 0x2ed   :  { %v2046_v8 = vor.u32 %v2045_v12, %v2044_v26  ;;  %v2049_v1 = vor.u32 %v2048_v35, %v2047_v63  ;;  %v5198_v27 = vand.u32 3, %v2004_v9  ;;  %v5204_v61 = vadd.f32 %v4727_v34, %v4489_v45 }
 0x2ee   :  { %v2000_v56 = vsel %vm1917_vm7, %v1999_v3, %v1998_v19  ;;  %v5200_v39 = vsub.s32 %v1872_v18, %v1875_v48  ;;  %v2034_v11 = vshrl.u32 %v3461_v36, %v2033_v38  ;;  %vm2053_vm14 = vcmp.lt.s32.totalorder %v2031_v21, 4 }
 0x2ef   :  { %v2003_v43 = vsel %vm5177_vm13, %v4948_v6, %v2000_v56  ;;  %v2066_v60 = vshll.u32 %v2026_v10, 8  ;;  %vm2050_vm15 = vcmp.lt.s32.totalorder %v2031_v21, 1  ;;  %v2055_v32 = vsel %vm2053_vm14, %v2043_v2, 2102212464 }
 0x2f0   :  { %3330 = vcosq.f32 %v2003_v43  ;;  %v1878_v20 = vsub.s32 0, %v5200_v39  ;;  %v2058_v59 = vsel %vm2050_vm15, %v2037_v16, %v2040_v15  ;;  %v2059_v57 = vsel %vm2053_vm14, %v2046_v8, 920167782 }
 0x2f1   :  { %3332 = vsinq.f32 %v2003_v43  ;;  %v2062_v55 = vsel %vm2050_vm15, %v2040_v15, %v2043_v2  ;;  %v2063_v47 = vsel %vm2053_vm14, %v2049_v1, 1326507024  ;;  %v1898_v58 = vsub.s32 4, %v1874_v50 }
 0x2f2   :  { %v3076_v22 = vmin.u32 %v1878_v20, %v5200_v39  ;;  %vm2051_vm0 = vcmp.lt.s32.totalorder %v2031_v21, 2  ;;  %vm2052_vm1 = vcmp.lt.s32.totalorder %v2031_v21, 3  ;;  %v2054_v45 = vsel %vm2050_vm15, %v2034_v11, %v2037_v16 }
 0x2f3   :  { %v2056_v34 = vsel %vm2052_vm1, %v2040_v15, %v2055_v32  ;;  %v2060_v18 = vsel %vm2052_vm1, %v2043_v2, %v2059_v57  ;;  %v2064_v38 = vsel %vm2052_vm1, %v2046_v8, %v2063_v47  ;;  %v2536_v10 = vand.u32 2139095040, %v5204_v61 }
 0x2f4   :  { %v1880_v5 = vclz %v3076_v22  ;;  %v2061_v41 = vsel %vm2051_vm0, %v2058_v59, %v2060_v18  ;;  %v2065_v53 = vsel %vm2051_vm0, %v2062_v55, %v2064_v38  ;;  %v2057_v4 = vsel %vm2051_vm0, %v2054_v45, %v2056_v34 }
 0x2f5   :  { %v5210_v9 = vmul.u32.u64.low %v2066_v60, %v2065_v53  ;;  %v5211_v23 = vmul.u32.u64.high %v2066_v60, %v2065_v53, %v5210_v9  ;;  %v5213_v24 = vmul.u32.u64.low %v2066_v60, %v2061_v41  ;;  %v5214_v25 = vmul.u32.u64.high %v2066_v60, %v2061_v41, %v5213_v24 }
 0x2f6   :  { %v3077_v19 = vadd.s32 4294967294, %v1880_v5  ;;  %v2533_v12 = vand.u32 2147483647, %v5204_v61  ;;  %v2537_v21 = vshrl.u32 %v2536_v10, 23  ;;  %vm2007_vm2 = vweird.f32 %v4948_v6 }
 0x2f7   :  { %vm2010_vm3 = vcmp.eq.s32.totalorder %v5198_v27, 0  ;;  %vm2013_vm4 = vcmp.eq.s32.totalorder %v5198_v27, 2  ;;  %vm1814_vm5 = vcmp.lt.s32.totalorder %v5026_v7, 0  ;;  %v1868_v37 = vadd.s32 %v5147_v51, %v5156_v14 }
 0x2f8   :  { %vm3078_vm6 = vcmp.lt.s32.totalorder %v3077_v19, 0  ;;  %v1899_v13 = vsel %vm1814_vm5, %v1898_v58, %v1874_v50  ;;  %v3103_v28 = vadd.s32 4294967169, %v2537_v21  ;;  %v2073_v63 = vmul.u32 %v2066_v60, %v2057_v4 }
 0x2f9   :  { %v1883_v26 = vsel %vm3078_vm6, 0, %v3077_v19  ;;  %vm2075_vm7 = vc.u32 %v5211_v23, %v5213_v24  ;;  %v2076_v35 = vadd.s32 1, %v5214_v25  ;;  %v2540_v15 = vand.u32 8388607, %v2533_v12 }
 0x2fa   :  { %v3331_v3 = vpop.eup %3330  ;;  %v1884_v2 = vsub.s32 32, %v1883_v26  ;;  %v1888_v56 = vsub.s32 4294967266, %v1883_v26  ;;  %v1885_v14 = vshll.u32 %v5200_v39, %v1883_v26  ;;  %v2543_v8 = vadd.s32 1, %v3103_v28 }
 0x2fb   :  { %v3333_v48 = vpop.eup %3332  ;;  %v2014_v16 = vxor.u32 2147483648, %v3331_v3  ;;  %v2077_v50 = vsel %vm2075_vm7, %v2076_v35, %v5214_v25  ;;  %vm2009_vm8 = vcmp.lt.s32.totalorder %v5198_v27, 2  ;;  %vm5238_vm9 = vcmp.le.f32.partialorder %v1812_v62, 0.7853982 }
 0x2fc   :  { %v2011_v51 = vxor.u32 2147483648, %v3333_v48  ;;  %v1886_v43 = vshrl.u32 %v1868_v37, %v1884_v2  ;;  %v1889_v11 = vadd.s32 127, %v1888_v56  ;;  %v2078_v60 = vadd.s32 %v2077_v50, %v2073_v63 }
 0x2fd   :  { %v2015_v1 = vsel %vm2013_vm4, %v2014_v16, %v3333_v48  ;;  %vm2544_vm10 = vcmp.gt.s32.totalorder %v2543_v8, 0  ;;  %v1901_v22 = vsel %vm5238_vm9, 0, %v1899_v13  ;;  %v5248_v27 = vadd.f32 %v4838_v29, %v4623_v30 }
 0x2fe   :  { %v2012_v20 = vsel %vm2010_vm3, %v3331_v3, %v2011_v51  ;;  %v1887_v59 = vor.u32 %v1886_v43, %v1885_v14  ;;  %v1890_v57 = vshll.u32 %v1889_v11, 23  ;;  %v2079_v55 = vadd.s32 536870912, %v2078_v60 }
 0x2ff   :  { %v2016_v39 = vsel %vm2009_vm8, %v2012_v20, %v2015_v1  ;;  %v2545_v58 = vsel %vm2544_vm10, %v2543_v8, 0  ;;  %v2541_v18 = vor.u32 8388608, %v2540_v15  ;;  %v5253_v53 = vand.u32 3, %v1901_v22 }
 0x300   :  { %v2017_v47 = vsel %vm2007_vm2, nan, %v2016_v39  ;;  %v1891_v45 = vor.u32 4788187, %v1890_v57  ;;  %v5250_v34 = vshrl.u32 %v2079_v55, 30  ;;  %v2547_v38 = vand.u32 31, %v2545_v58 }
 0x301   :  { %v2959_v62 = vmul.f32 0.044194173, %v2017_v47  ;;  %v1894_v41 = vcvt.s32.f32 %v1887_v59  ;;  %v2074_v10 = vadd.s32 %v5213_v24, %v5211_v23  ;;  %v5258_v30 = vshll.u32 %v2541_v18, 8 }
 0x302   :  { %v1892_v5 = vand.u32 2147483647, %v1891_v45  ;;  %v2081_v6 = vshll.u32 %v5250_v34, 30  ;;  %v2548_v9 = vsub.s32 32, %v2547_v38  ;;  %v2742_v29 = vand.u32 2139095040, %v5248_v27 }
 0x303   :  { %2983 = vst [vmem:[#allocation8 + $0x70] sm:$0xff] %v2959_v62  ;;  %v2546_v4 = vshrl.u32 %v2545_v58, 5  ;;  %v2739_v13 = vand.u32 2147483647, %v5248_v27  ;;  %v2550_v23 = vshll.u32 %v3461_v36, %v2547_v38  ;;  %v2553_v26 = vshll.u32 %v3462_v40, %v2547_v38 }
 0x304   :  { %v1895_v25 = vmul.f32 %v1894_v41, %v1892_v5  ;;  %v5256_v19 = vsub.s32 %v2078_v60, %v2081_v6  ;;  %v2551_v21 = vshrl.u32 %v3462_v40, %v2548_v9  ;;  %v2554_v37 = vshrl.u32 %v3463_v42, %v2548_v9 }
 0x305   :  { %v2557_v24 = vshrl.u32 %v3464_v44, %v2548_v9  ;;  %v2556_v63 = vshll.u32 %v3463_v42, %v2547_v38  ;;  %v2559_v35 = vshll.u32 %v3464_v44, %v2547_v38  ;;  %v2560_v48 = vshrl.u32 %v3465_v46, %v2548_v9 }
 0x306   :  { %v1896_v28 = vxor.u32 2147483648, %v1895_v25  ;;  %v2084_v3 = vsub.s32 0, %v5256_v19  ;;  %v2552_v56 = vor.u32 %v2551_v21, %v2550_v23  ;;  %v2743_v15 = vshrl.u32 %v2742_v29, 23 }
 0x307   :  { %v2555_v14 = vor.u32 %v2554_v37, %v2553_v26  ;;  %v2558_v50 = vor.u32 %v2557_v24, %v2556_v63  ;;  %v2561_v8 = vor.u32 %v2560_v48, %v2559_v35  ;;  %v2562_v43 = vshll.u32 %v3465_v46, %v2547_v38 }
 0x308   :  { %v1897_v16 = vsel %vm1814_vm5, %v1896_v28, %v1895_v25  ;;  %v3084_v2 = vmin.u32 %v2084_v3, %v5256_v19  ;;  %v2563_v11 = vshrl.u32 %v3466_v54, %v2548_v9  ;;  %vm2020_vm12 = vcmp.lt.s32.totalorder %v5081_v49, 0 }
 0x309   :  { %v1900_v51 = vsel %vm5238_vm9, %v5026_v7, %v1897_v16  ;;  %v2104_v60 = vsub.s32 4, %v5250_v34  ;;  %v2549_v20 = vshrl.u32 %v3461_v36, %v2548_v9  ;;  %vm2565_vm11 = vcmp.lt.s32.totalorder %v2546_v4, 1 }
 0x30a   :  { %3334 = vcosq.f32 %v1900_v51  ;;  %v2086_v1 = vclz %v3084_v2  ;;  %v2564_v32 = vor.u32 %v2563_v11, %v2562_v43  ;;  %vm2567_vm13 = vcmp.lt.s32.totalorder %v2546_v4, 3 }
 0x30b   :  { %3336 = vsinq.f32 %v1900_v51  ;;  %vm2568_vm14 = vcmp.lt.s32.totalorder %v2546_v4, 4  ;;  %v2573_v57 = vsel %vm2565_vm11, %v2552_v56, %v2555_v14  ;;  %v2577_v47 = vsel %vm2565_vm11, %v2555_v14, %v2558_v50 }
 0x30c   :  { %v3085_v39 = vadd.s32 4294967294, %v2086_v1  ;;  %v2570_v59 = vsel %vm2568_vm14, %v2558_v50, 2102212464  ;;  %v2574_v55 = vsel %vm2568_vm14, %v2561_v8, 920167782  ;;  %vm2566_vm1 = vcmp.lt.s32.totalorder %v2546_v4, 2 }
 0x30d   :  { %vm5284_vm15 = vcmp.le.f32.partialorder %v2018_v0, 0.7853982  ;;  %v2575_v58 = vsel %vm2567_vm13, %v2558_v50, %v2574_v55  ;;  %v2578_v62 = vsel %vm2568_vm14, %v2564_v32, 1326507024  ;;  %v2569_v18 = vsel %vm2565_vm11, %v2549_v20, %v2552_v56 }
 0x30e   :  { %vm3086_vm0 = vcmp.lt.s32.totalorder %v3085_v39, 0  ;;  %v2576_v38 = vsel %vm2566_vm1, %v2573_v57, %v2575_v58  ;;  %v2579_v5 = vsel %vm2567_vm13, %v2561_v8, %v2578_v62  ;;  %vm1906_vm2 = vcmp.lt.s32.totalorder %v5253_v53, 2 }
 0x30f   :  { %v2089_v45 = vsel %vm3086_vm0, 0, %v3085_v39  ;;  %v2571_v0 = vsel %vm2567_vm13, %v2555_v14, %v2570_v59  ;;  %v2580_v9 = vsel %vm2566_vm1, %v2577_v47, %v2579_v5  ;;  %v3111_v24 = vadd.s32 4294967169, %v2743_v15 }
 0x310   :  { %v2090_v41 = vsub.s32 32, %v2089_v45  ;;  %v2094_v6 = vsub.s32 4294967266, %v2089_v45  ;;  %v5295_v25 = vmul.u32.u64.low %v5258_v30, %v2580_v9  ;;  %v5296_v29 = vmul.u32.u64.high %v5258_v30, %v2580_v9, %v5295_v25 }
 0x311   :  { %v5299_v21 = vmul.u32.u64.low %v5258_v30, %v2576_v38  ;;  %v5300_v37 = vmul.u32.u64.high %v5258_v30, %v2576_v38, %v5299_v21  ;;  %v2091_v28 = vshll.u32 %v5256_v19, %v2089_v45  ;;  %vm1907_vm3 = vcmp.eq.s32.totalorder %v5253_v53, 0 }
 0x312   :  { %v2092_v3 = vshrl.u32 %v2074_v10, %v2090_v41  ;;  %v2095_v23 = vadd.s32 127, %v2094_v6  ;;  %vm1910_vm4 = vcmp.eq.s32.totalorder %v5253_v53, 2  ;;  %v2572_v26 = vsel %vm2566_vm1, %v2569_v18, %v2571_v0 }
 0x313   :  { %v5309_v63 = vadd.f32 %v4922_v17, %v4657_v31  ;;  %v2105_v19 = vsel %vm2020_vm12, %v2104_v60, %v5250_v34  ;;  %v2749_v10 = vadd.s32 1, %v3111_v24  ;;  %vm2590_vm5 = vc.u32 %v5296_v29, %v5299_v21 }
 0x314   :  { %v3335_v35 = vpop.eup %3334  ;;  %v2093_v48 = vor.u32 %v2092_v3, %v2091_v28  ;;  %v2096_v16 = vshll.u32 %v2095_v23, 23  ;;  %v2591_v4 = vadd.s32 1, %v5300_v37  ;;  %v2746_v15 = vand.u32 8388607, %v2739_v13 }
 0x315   :  { %v3337_v2 = vpop.eup %3336  ;;  %v1911_v56 = vxor.u32 2147483648, %v3335_v35  ;;  %v2588_v51 = vmul.u32 %v5258_v30, %v2572_v26  ;;  %vm2750_vm6 = vcmp.gt.s32.totalorder %v2749_v10, 0  ;;  %v2107_v34 = vsel %vm5284_vm15, 0, %v2105_v19 }
 0x316   :  { %v1908_v31 = vxor.u32 2147483648, %v3337_v2  ;;  %v2097_v17 = vor.u32 4788187, %v2096_v16  ;;  %v2592_v50 = vsel %vm2590_vm5, %v2591_v4, %v5300_v37  ;;  %v2751_v8 = vsel %vm2750_vm6, %v2749_v10, 0 }
 0x317   :  { %v1912_v14 = vsel %vm1910_vm4, %v1911_v56, %v3337_v2  ;;  %v2100_v11 = vcvt.s32.f32 %v2093_v48  ;;  %v2593_v60 = vadd.s32 %v2592_v50, %v2588_v51  ;;  %vm1904_vm7 = vweird.f32 %v5026_v7 }
 0x318   :  { %v1909_v1 = vsel %vm1907_vm3, %v3335_v35, %v1908_v31  ;;  %v2098_v43 = vand.u32 2147483647, %v2097_v17  ;;  %v2753_v20 = vand.u32 31, %v2751_v8  ;;  %v5330_v55 = vand.u32 3, %v2107_v34 }
 0x319   :  { %v1913_v30 = vsel %vm1906_vm2, %v1909_v1, %v1912_v14  ;;  %v2594_v59 = vadd.s32 536870912, %v2593_v60  ;;  %v2747_v47 = vor.u32 8388608, %v2746_v15  ;;  %v2639_v38 = vand.u32 2139095040, %v5309_v63 }
 0x31a   :  { %v1914_v39 = vsel %vm1904_vm7, nan, %v1913_v30  ;;  %v2101_v32 = vmul.f32 %v2100_v11, %v2098_v43  ;;  %v2754_v58 = vsub.s32 32, %v2753_v20  ;;  %v2756_v18 = vshll.u32 %v3461_v36, %v2753_v20 }
 0x31b   :  { %v2958_v57 = vmul.f32 0.044194173, %v1914_v39  ;;  %v5332_v45 = vshrl.u32 %v2594_v59, 30  ;;  %v2759_v53 = vshll.u32 %v3462_v40, %v2753_v20  ;;  %v2762_v9 = vshll.u32 %v3463_v42, %v2753_v20 }
 0x31c   :  { %v2102_v62 = vxor.u32 2147483648, %v2101_v32  ;;  %v2757_v7 = vshrl.u32 %v3462_v40, %v2754_v58  ;;  %v2760_v5 = vshrl.u32 %v3463_v42, %v2754_v58  ;;  %v2763_v41 = vshrl.u32 %v3464_v44, %v2754_v58 }
 0x31d   :  { %2982 = vst [vmem:[#allocation8 + $0x68] sm:$0xff] %v2958_v57  ;;  %v2596_v0 = vshll.u32 %v5332_v45, 30  ;;  %v2766_v25 = vshrl.u32 %v3465_v46, %v2754_v58  ;;  %v2752_v28 = vshrl.u32 %v2751_v8, 5  ;;  %v2765_v23 = vshll.u32 %v3464_v44, %v2753_v20 }
 0x31e   :  { %v2103_v6 = vsel %vm2020_vm12, %v2102_v62, %v2101_v32  ;;  %v2758_v3 = vor.u32 %v2757_v7, %v2756_v18  ;;  %v2761_v26 = vor.u32 %v2760_v5, %v2759_v53  ;;  %v2764_v35 = vor.u32 %v2763_v41, %v2762_v9 }
 0x31f   :  { %v2106_v37 = vsel %vm5284_vm15, %v5081_v49, %v2103_v6  ;;  %v5349_v24 = vsub.s32 %v2593_v60, %v2596_v0  ;;  %v2767_v48 = vor.u32 %v2766_v25, %v2765_v23  ;;  %v2768_v16 = vshll.u32 %v3465_v46, %v2753_v20 }
 0x320   :  { %3338 = vcosq.f32 %v2106_v37  ;;  %v2769_v19 = vshrl.u32 %v3466_v54, %v2754_v58  ;;  %v2755_v22 = vshrl.u32 %v3461_v36, %v2754_v58  ;;  %v2787_v2 = vshll.u32 %v2747_v47, 8 }
 0x321   :  { %3340 = vsinq.f32 %v2106_v37  ;;  %v2599_v10 = vsub.s32 0, %v5349_v24  ;;  %v2640_v56 = vshrl.u32 %v2639_v38, 23  ;;  %vm2771_vm8 = vcmp.lt.s32.totalorder %v2752_v28, 1 }
 0x322   :  { %v2770_v4 = vor.u32 %v2769_v19, %v2768_v16  ;;  %vm2772_vm9 = vcmp.lt.s32.totalorder %v2752_v28, 2  ;;  %vm2773_vm10 = vcmp.lt.s32.totalorder %v2752_v28, 3  ;;  %vm2774_vm12 = vcmp.lt.s32.totalorder %v2752_v28, 4 }
 0x323   :  { %v3104_v15 = vmin.u32 %v2599_v10, %v5349_v24  ;;  %v2775_v31 = vsel %vm2771_vm8, %v2755_v22, %v2758_v3  ;;  %v2779_v17 = vsel %vm2771_vm8, %v2758_v3, %v2761_v26  ;;  %v2776_v51 = vsel %vm2774_vm12, %v2764_v35, 2102212464 }
 0x324   :  { %v2780_v14 = vsel %vm2774_vm12, %v2767_v48, 920167782  ;;  %v2783_v34 = vsel %vm2771_vm8, %v2761_v26, %v2764_v35  ;;  %v2784_v50 = vsel %vm2774_vm12, %v2770_v4, 1326507024  ;;  %v2777_v1 = vsel %vm2773_vm10, %v2761_v26, %v2776_v51 }
 0x325   :  { %v2601_v8 = vclz %v3104_v15  ;;  %v2781_v43 = vsel %vm2773_vm10, %v2764_v35, %v2780_v14  ;;  %v2785_v11 = vsel %vm2773_vm10, %v2767_v48, %v2784_v50  ;;  %vm2110_vm11 = vweird.f32 %v5081_v49 }
 0x326   :  { %v2782_v60 = vsel %vm2772_vm9, %v2779_v17, %v2781_v43  ;;  %v2786_v30 = vsel %vm2772_vm9, %v2783_v34, %v2785_v11  ;;  %v3107_v20 = vadd.s32 4294967169, %v2640_v56  ;;  %vm2112_vm13 = vcmp.lt.s32.totalorder %v5330_v55, 2 }
 0x327   :  { %v3105_v39 = vadd.s32 4294967294, %v2601_v8  ;;  %v5360_v32 = vmul.u32.u64.low %v2787_v2, %v2786_v30  ;;  %v5361_v59 = vmul.u32.u64.high %v2787_v2, %v2786_v30, %v5360_v32  ;;  %v2778_v57 = vsel %vm2772_vm9, %v2775_v31, %v2777_v1 }
 0x328   :  { %v5364_v47 = vmul.u32.u64.low %v2787_v2, %v2782_v60  ;;  %v5365_v58 = vmul.u32.u64.high %v2787_v2, %v2782_v60, %v5364_v47  ;;  %v2646_v62 = vadd.s32 1, %v3107_v20  ;;  %vm2113_vm14 = vcmp.eq.s32.totalorder %v5330_v55, 0 }
 0x329   :  { %vm2116_vm15 = vcmp.eq.s32.totalorder %v5330_v55, 2  ;;  %vm3106_vm0 = vcmp.lt.s32.totalorder %v3105_v39, 0  ;;  %v2636_v38 = vand.u32 2147483647, %v5309_v63  ;;  %v2589_v5 = vadd.s32 %v5299_v21, %v5296_v29 }
 0x32a   :  { %v3339_v18 = vpop.eup %3338  ;;  %v2604_v41 = vsel %vm3106_vm0, 0, %v3105_v39  ;;  %vm2647_vm1 = vcmp.gt.s32.totalorder %v2646_v62, 0  ;;  %v2794_v25 = vmul.u32 %v2787_v2, %v2778_v57  ;;  %vm2796_vm2 = vc.u32 %v5361_v59, %v5364_v47 }
 0x32b   :  { %v3341_v7 = vpop.eup %3340  ;;  %v2117_v53 = vxor.u32 2147483648, %v3339_v18  ;;  %v2605_v0 = vsub.s32 32, %v2604_v41  ;;  %v2609_v9 = vsub.s32 4294967266, %v2604_v41  ;;  %v2606_v28 = vshll.u32 %v5349_v24, %v2604_v41 }
 0x32c   :  { %v2114_v6 = vxor.u32 2147483648, %v3341_v7  ;;  %v2797_v3 = vadd.s32 1, %v5365_v58  ;;  %v2648_v29 = vsel %vm2647_vm1, %v2646_v62, 0  ;;  %v2643_v16 = vand.u32 8388607, %v2636_v38 }
 0x32d   :  { %v2118_v37 = vsel %vm2116_vm15, %v2117_v53, %v3341_v7  ;;  %v2607_v26 = vshrl.u32 %v2589_v5, %v2605_v0  ;;  %v2610_v35 = vadd.s32 127, %v2609_v9  ;;  %v2650_v24 = vand.u32 31, %v2648_v29 }
 0x32e   :  { %v2115_v23 = vsel %vm2113_vm14, %v3339_v18, %v2114_v6  ;;  %v2798_v48 = vsel %vm2796_vm2, %v2797_v3, %v5365_v58  ;;  %vm5388_vm3 = vcmp.le.f32.partialorder %v2533_v12, 0.7853982  ;;  %v2619_v31 = vsub.s32 4, %v5332_v45 }
 0x32f   :  { %v2119_v21 = vsel %vm2112_vm13, %v2115_v23, %v2118_v37  ;;  %v2608_v10 = vor.u32 %v2607_v26, %v2606_v28  ;;  %v2611_v22 = vshll.u32 %v2610_v35, 23  ;;  %v2799_v2 = vadd.s32 %v2798_v48, %v2794_v25 }
 0x330   :  { %v2120_v19 = vsel %vm2110_vm11, nan, %v2119_v21  ;;  %v2651_v4 = vsub.s32 32, %v2650_v24  ;;  %v5395_v51 = vadd.f32 %v4978_v33, %v4757_v52  ;;  %v2644_v14 = vor.u32 8388608, %v2643_v16 }
 0x331   :  { %v2960_v56 = vmul.f32 0.044194173, %v2120_v19  ;;  %v2612_v55 = vor.u32 4788187, %v2611_v22  ;;  %v2800_v17 = vadd.s32 536870912, %v2799_v2  ;;  %v2615_v49 = vcvt.s32.f32 %v2608_v10 }
 0x332   :  { %v2654_v34 = vshrl.u32 %v3462_v40, %v2651_v4  ;;  %v2657_v50 = vshrl.u32 %v3463_v42, %v2651_v4  ;;  %v2660_v1 = vshrl.u32 %v3464_v44, %v2651_v4  ;;  %v2663_v43 = vshrl.u32 %v3465_v46, %v2651_v4 }
 0x333   :  { %2984 = vst [vmem:[#allocation8 + $0x78] sm:$0xff] %v2960_v56  ;;  %v2613_v8 = vand.u32 2147483647, %v2612_v55  ;;  %v5399_v12 = vshrl.u32 %v2800_v17, 30  ;;  %v2649_v11 = vshrl.u32 %v2648_v29, 5  ;;  %v2653_v60 = vshll.u32 %v3461_v36, %v2650_v24 }
 0x334   :  { %v2656_v52 = vshll.u32 %v3462_v40, %v2650_v24  ;;  %v2662_v33 = vshll.u32 %v3464_v44, %v2650_v24  ;;  %vm2535_vm4 = vcmp.lt.s32.totalorder %v5204_v61, 0  ;;  %v2659_v39 = vshll.u32 %v3463_v42, %v2650_v24 }
 0x335   :  { %v2616_v30 = vmul.f32 %v2615_v49, %v2613_v8  ;;  %v2802_v20 = vshll.u32 %v5399_v12, 30  ;;  %v2655_v32 = vor.u32 %v2654_v34, %v2653_v60  ;;  %v2666_v62 = vshrl.u32 %v3466_v54, %v2651_v4 }
 0x336   :  { %v2658_v57 = vor.u32 %v2657_v50, %v2656_v52  ;;  %v2664_v58 = vor.u32 %v2663_v43, %v2662_v33  ;;  %v2661_v53 = vor.u32 %v2660_v1, %v2659_v39  ;;  %v2665_v5 = vshll.u32 %v3465_v46, %v2650_v24 }
 0x337   :  { %v2617_v18 = vxor.u32 2147483648, %v2616_v30  ;;  %v5410_v7 = vsub.s32 %v2799_v2, %v2802_v20  ;;  %v2620_v41 = vsel %vm2535_vm4, %v2619_v31, %v5332_v45  ;;  %vm2668_vm5 = vcmp.lt.s32.totalorder %v2649_v11, 1 }
 0x338   :  { %v2684_v6 = vshll.u32 %v2644_v14, 8  ;;  %v2845_v0 = vand.u32 2139095040, %v5395_v51  ;;  %v2667_v37 = vor.u32 %v2666_v62, %v2665_v5  ;;  %vm2671_vm6 = vcmp.lt.s32.totalorder %v2649_v11, 4 }
 0x339   :  { %v2618_v9 = vsel %vm2535_vm4, %v2617_v18, %v2616_v30  ;;  %v2805_v25 = vsub.s32 0, %v5410_v7  ;;  %v2652_v3 = vshrl.u32 %v3461_v36, %v2651_v4  ;;  %v2676_v23 = vsel %vm2668_vm5, %v2655_v32, %v2658_v57 }
 0x33a   :  { %v2621_v28 = vsel %vm5388_vm3, %v5204_v61, %v2618_v9  ;;  %v2677_v45 = vsel %vm2671_vm6, %v2664_v58, 920167782  ;;  %vm2670_vm7 = vcmp.lt.s32.totalorder %v2649_v11, 3  ;;  %v2673_v35 = vsel %vm2671_vm6, %v2661_v53, 2102212464 }
 0x33b   :  { %3342 = vcosq.f32 %v2621_v28  ;;  %v3112_v26 = vmin.u32 %v2805_v25, %v5410_v7  ;;  %vm2669_vm8 = vcmp.lt.s32.totalorder %v2649_v11, 2  ;;  %v2678_v29 = vsel %vm2670_vm7, %v2661_v53, %v2677_v45 }
 0x33c   :  { %3344 = vsinq.f32 %v2621_v28  ;;  %v2680_v21 = vsel %vm2668_vm5, %v2658_v57, %v2661_v53  ;;  %v2672_v16 = vsel %vm2668_vm5, %v2652_v3, %v2655_v32  ;;  %v2679_v24 = vsel %vm2669_vm8, %v2676_v23, %v2678_v29 }
 0x33d   :  { %v2807_v48 = vclz %v3112_v26  ;;  %v2681_v19 = vsel %vm2671_vm6, %v2667_v37, 1326507024  ;;  %v2674_v10 = vsel %vm2670_vm7, %v2658_v57, %v2673_v35  ;;  %v2622_v4 = vsel %vm5388_vm3, 0, %v2620_v41 }
 0x33e   :  { %v2682_v22 = vsel %vm2670_vm7, %v2664_v58, %v2681_v19  ;;  %v5432_v2 = vmul.u32.u64.low %v2684_v6, %v2679_v24  ;;  %v5433_v56 = vmul.u32.u64.high %v2684_v6, %v2679_v24, %v5432_v2  ;;  %v2846_v17 = vshrl.u32 %v2845_v0, 23 }
 0x33f   :  { %v3113_v55 = vadd.s32 4294967294, %v2807_v48  ;;  %v2683_v31 = vsel %vm2669_vm8, %v2680_v21, %v2682_v22  ;;  %v2675_v34 = vsel %vm2669_vm8, %v2672_v16, %v2674_v10  ;;  %vm2625_vm10 = vweird.f32 %v5204_v61 }
 0x340   :  { %v5439_v49 = vmul.u32.u64.low %v2684_v6, %v2683_v31  ;;  %v5440_v14 = vmul.u32.u64.high %v2684_v6, %v2683_v31, %v5439_v49  ;;  %v3115_v50 = vadd.s32 4294967169, %v2846_v17  ;;  %v2626_v8 = vand.u32 3, %v2622_v4 }
 0x341   :  { %vm3114_vm9 = vcmp.lt.s32.totalorder %v3113_v55, 0  ;;  %v2694_v43 = vadd.s32 1, %v5433_v56  ;;  %v2795_v15 = vadd.s32 %v5364_v47, %v5361_v59  ;;  %v2691_v20 = vmul.u32 %v2684_v6, %v2675_v34 }
 0x342   :  { %v2810_v1 = vsel %vm3114_vm9, 0, %v3113_v55  ;;  %v2852_v33 = vadd.s32 1, %v3115_v50  ;;  %vm2693_vm12 = vc.u32 %v5440_v14, %v5432_v2  ;;  %v2842_v11 = vand.u32 2147483647, %v5395_v51 }
 0x343   :  { %v2811_v60 = vsub.s32 32, %v2810_v1  ;;  %v2815_v52 = vsub.s32 4294967266, %v2810_v1  ;;  %v2812_v30 = vshll.u32 %v5410_v7, %v2810_v1  ;;  %v2695_v58 = vsel %vm2693_vm12, %v2694_v43, %v5433_v56 }
 0x344   :  { %vm2853_vm11 = vcmp.gt.s32.totalorder %v2852_v33, 0  ;;  %vm2628_vm13 = vcmp.eq.s32.totalorder %v2626_v8, 0  ;;  %v2696_v47 = vadd.s32 %v2695_v58, %v2691_v20  ;;  %vm2631_vm14 = vcmp.eq.s32.totalorder %v2626_v8, 2 }
 0x345   :  { %v3343_v39 = vpop.eup %3342  ;;  %v2813_v32 = vshrl.u32 %v2795_v15, %v2811_v60  ;;  %v2816_v57 = vadd.s32 127, %v2815_v52  ;;  %v2854_v18 = vsel %vm2853_vm11, %v2852_v33, 0  ;;  %v2849_v0 = vand.u32 8388607, %v2842_v11 }
 0x346   :  { %v3345_v62 = vpop.eup %3344  ;;  %v2632_v59 = vxor.u32 2147483648, %v3343_v39  ;;  %v2697_v6 = vadd.s32 536870912, %v2696_v47  ;;  %v2856_v9 = vand.u32 31, %v2854_v18  ;;  %vm2627_vm15 = vcmp.lt.s32.totalorder %v2626_v8, 2 }
 0x347   :  { %v2629_v53 = vxor.u32 2147483648, %v3345_v62  ;;  %v2814_v7 = vor.u32 %v2813_v32, %v2812_v30  ;;  %v2817_v5 = vshll.u32 %v2816_v57, 23  ;;  %vm2741_vm0 = vcmp.lt.s32.totalorder %v5248_v27, 0 }
 0x348   :  { %v2633_v41 = vsel %vm2631_vm14, %v2632_v59, %v3345_v62  ;;  %vm5457_vm1 = vcmp.le.f32.partialorder %v2739_v13, 0.7853982  ;;  %v5461_v23 = vshrl.u32 %v2697_v6, 30  ;;  %v2857_v45 = vsub.s32 32, %v2856_v9 }
 0x349   :  { %v2630_v25 = vsel %vm2628_vm13, %v3343_v39, %v2629_v53  ;;  %v2818_v37 = vor.u32 4788187, %v2817_v5  ;;  %v2821_v29 = vcvt.s32.f32 %v2814_v7  ;;  %v2825_v21 = vsub.s32 4, %v5399_v12 }
 0x34a   :  { %v2634_v28 = vsel %vm2627_vm15, %v2630_v25, %v2633_v41  ;;  %v2699_v16 = vshll.u32 %v5461_v23, 30  ;;  %v2850_v24 = vor.u32 8388608, %v2849_v0  ;;  %v2859_v19 = vshll.u32 %v3461_v36, %v2856_v9 }
 0x34b   :  { %v2635_v26 = vsel %vm2625_vm10, nan, %v2634_v28  ;;  %v2819_v35 = vand.u32 2147483647, %v2818_v37  ;;  %v2860_v10 = vshrl.u32 %v3462_v40, %v2857_v45  ;;  %v2863_v22 = vshrl.u32 %v3463_v42, %v2857_v45 }
 0x34c   :  { %v2965_v48 = vmul.f32 0.044194173, %v2635_v26  ;;  %v2866_v56 = vshrl.u32 %v3464_v44, %v2857_v45  ;;  %v2700_v61 = vsub.s32 %v2696_v47, %v2699_v16  ;;  %v2862_v4 = vshll.u32 %v3462_v40, %v2856_v9 }
 0x34d   :  { %v2822_v13 = vmul.f32 %v2821_v29, %v2819_v35  ;;  %v2865_v55 = vshll.u32 %v3463_v42, %v2856_v9  ;;  %v2869_v31 = vshrl.u32 %v3465_v46, %v2857_v45  ;;  %v2826_v49 = vsel %vm2741_vm0, %v2825_v21, %v5399_v12 }
 0x34e   :  { %2989 = vst [vmem:[#allocation8 + $0xa0] sm:$0xff] %v2965_v48  ;;  %v2855_v34 = vshrl.u32 %v2854_v18, 5  ;;  %v2868_v50 = vshll.u32 %v3464_v44, %v2856_v9  ;;  %v2702_v8 = vsub.s32 0, %v2700_v61  ;;  %v2861_v1 = vor.u32 %v2860_v10, %v2859_v19 }
 0x34f   :  { %v2823_v17 = vxor.u32 2147483648, %v2822_v13  ;;  %v2864_v43 = vor.u32 %v2863_v22, %v2862_v4  ;;  %v2867_v15 = vor.u32 %v2866_v56, %v2865_v55  ;;  %v2871_v42 = vshll.u32 %v3465_v46, %v2856_v9 }
 0x350   :  { %v2870_v40 = vor.u32 %v2869_v31, %v2868_v50  ;;  %v2872_v52 = vshrl.u32 %v3466_v54, %v2857_v45  ;;  %v2828_v12 = vsel %vm5457_vm1, 0, %v2826_v49  ;;  %v3108_v44 = vmin.u32 %v2702_v8, %v2700_v61 }
 0x351   :  { %v2824_v60 = vsel %vm2741_vm0, %v2823_v17, %v2822_v13  ;;  %v2890_v30 = vshll.u32 %v2850_v24, 8  ;;  %v2858_v20 = vshrl.u32 %v3461_v36, %v2857_v45  ;;  %vm2874_vm2 = vcmp.lt.s32.totalorder %v2855_v34, 1 }
 0x352   :  { %v2827_v33 = vsel %vm5457_vm1, %v5248_v27, %v2824_v60  ;;  %v2873_v39 = vor.u32 %v2872_v52, %v2871_v42  ;;  %v2704_v32 = vclz %v3108_v44  ;;  %vm2876_vm3 = vcmp.lt.s32.totalorder %v2855_v34, 3 }
 0x353   :  { %3346 = vcosq.f32 %v2827_v33  ;;  %vm2877_vm4 = vcmp.lt.s32.totalorder %v2855_v34, 4  ;;  %v2882_v54 = vsel %vm2874_vm2, %v2861_v1, %v2864_v43  ;;  %v2886_v58 = vsel %vm2874_vm2, %v2864_v43, %v2867_v15 }
 0x354   :  { %3348 = vsinq.f32 %v2827_v33  ;;  %v2879_v46 = vsel %vm2877_vm4, %v2867_v15, 2102212464  ;;  %v2883_v57 = vsel %vm2877_vm4, %v2870_v40, 920167782  ;;  %v3109_v62 = vadd.s32 4294967294, %v2704_v32 }
 0x355   :  { %vm2875_vm5 = vcmp.lt.s32.totalorder %v2855_v34, 2  ;;  %v2884_v59 = vsel %vm2876_vm3, %v2867_v15, %v2883_v57  ;;  %v2887_v47 = vsel %vm2877_vm4, %v2873_v39, 1326507024  ;;  %v2878_v18 = vsel %vm2874_vm2, %v2858_v20, %v2861_v1 }
 0x356   :  { %v2880_v53 = vsel %vm2876_vm3, %v2864_v43, %v2879_v46  ;;  %v2885_v7 = vsel %vm2875_vm5, %v2882_v54, %v2884_v59  ;;  %v2888_v5 = vsel %vm2876_vm3, %v2870_v40, %v2887_v47  ;;  %vm3110_vm6 = vcmp.lt.s32.totalorder %v3109_v62, 0 }
 0x357   :  { %v2889_v36 = vsel %vm2875_vm5, %v2886_v58, %v2888_v5  ;;  %v5488_v41 = vmul.u32.u64.low %v2890_v30, %v2885_v7  ;;  %v5489_v6 = vmul.u32.u64.high %v2890_v30, %v2885_v7, %v5488_v41  ;;  %v2707_v0 = vsel %vm3110_vm6, 0, %v3109_v62 }
 0x358   :  { %v5491_v9 = vmul.u32.u64.low %v2890_v30, %v2889_v36  ;;  %v5492_v25 = vmul.u32.u64.high %v2890_v30, %v2889_v36, %v5491_v9  ;;  %v2692_v37 = vadd.s32 %v5432_v2, %v5440_v14  ;;  %v2708_v28 = vsub.s32 32, %v2707_v0 }
 0x359   :  { %v2712_v3 = vsub.s32 4294967266, %v2707_v0  ;;  %v2881_v45 = vsel %vm2875_vm5, %v2878_v18, %v2880_v53  ;;  %v2832_v26 = vand.u32 3, %v2828_v12  ;;  %v2709_v35 = vshll.u32 %v2700_v61, %v2707_v0 }
 0x35a   :  { %v2710_v29 = vshrl.u32 %v2692_v37, %v2708_v28  ;;  %v2900_v48 = vadd.s32 1, %v5489_v6  ;;  %v2897_v24 = vmul.u32 %v2890_v30, %v2881_v45  ;;  %vm2899_vm7 = vc.u32 %v5492_v25, %v5488_v41 }
 0x35b   :  { %v2713_v21 = vadd.s32 127, %v2712_v3  ;;  %vm2837_vm8 = vcmp.eq.s32.totalorder %v2832_v26, 2  ;;  %vm2834_vm9 = vcmp.eq.s32.totalorder %v2832_v26, 0  ;;  %vm2833_vm10 = vcmp.lt.s32.totalorder %v2832_v26, 2 }
 0x35c   :  { %v2711_v10 = vor.u32 %v2710_v29, %v2709_v35  ;;  %v2901_v56 = vsel %vm2899_vm7, %v2900_v48, %v5489_v6  ;;  %vm2831_vm12 = vweird.f32 %v5248_v27  ;;  %vm2638_vm11 = vcmp.lt.s32.totalorder %v5309_v63, 0 }
 0x35d   :  { %v3347_v16 = vpop.eup %3346  ;;  %v2714_v22 = vshll.u32 %v2713_v21, 23  ;;  %v2902_v14 = vadd.s32 %v2901_v56, %v2897_v24  ;;  %vm2637_vm13 = vcmp.le.f32.partialorder %v2636_v38, 0.7853982  ;;  %v2722_v52 = vsub.s32 4, %v5461_v23 }
 0x35e   :  { %v3349_v19 = vpop.eup %3348  ;;  %v2838_v13 = vxor.u32 2147483648, %v3347_v16  ;;  %v2718_v34 = vcvt.s32.f32 %v2711_v10  ;;  %v2898_v54 = vadd.s32 %v5488_v41, %v5492_v25  ;;  %vm2728_vm2 = vweird.f32 %v5309_v63 }
 0x35f   :  { %v2835_v2 = vxor.u32 2147483648, %v3349_v19  ;;  %v2715_v61 = vor.u32 4788187, %v2714_v22  ;;  %v2903_v31 = vadd.s32 536870912, %v2902_v14  ;;  %v2723_v44 = vsel %vm2638_vm11, %v2722_v52, %v5461_v23 }
 0x360   :  { %v2839_v4 = vsel %vm2837_vm8, %v2838_v13, %v3349_v19  ;;  %v2725_v20 = vsel %vm2637_vm13, 0, %v2723_v44  ;;  %vm2844_vm3 = vcmp.lt.s32.totalorder %v5395_v51, 0  ;;  %vm2843_vm4 = vcmp.le.f32.partialorder %v2842_v11, 0.7853982 }
 0x361   :  { %v2836_v55 = vsel %vm2834_vm9, %v3347_v16, %v2835_v2  ;;  %v2716_v49 = vand.u32 2147483647, %v2715_v61  ;;  %v2904_v8 = vshrl.u32 %v2903_v31, 30  ;;  %v2729_v32 = vand.u32 3, %v2725_v20 }
 0x362   :  { %v2840_v17 = vsel %vm2833_vm10, %v2836_v55, %v2839_v4  ;;  %vm2934_vm8 = vweird.f32 %v5395_v51 }
 0x363   :  { %v2841_v50 = vsel %vm2831_vm12, nan, %v2840_v17  ;;  %v2719_v43 = vmul.f32 %v2718_v34, %v2716_v49  ;;  %v2905_v15 = vshll.u32 %v2904_v8, 30  ;;  %vm2734_vm15 = vcmp.eq.s32.totalorder %v2729_v32, 2 }
 0x364   :  { %v2967_v1 = vmul.f32 0.044194173, %v2841_v50  ;;  %vm2731_vm0 = vcmp.eq.s32.totalorder %v2729_v32, 0  ;;  %vm2730_vm1 = vcmp.lt.s32.totalorder %v2729_v32, 2  ;;  %v2928_v35 = vsub.s32 4, %v2904_v8 }
 0x365   :  { %v2720_v60 = vxor.u32 2147483648, %v2719_v43  ;;  %v2906_v40 = vsub.s32 %v2902_v14, %v2905_v15 }
 0x366   :  { %2991 = vst [vmem:[#allocation8 + $0xb0] sm:$0xff] %v2967_v1 }
 0x367   :  { %v2721_v42 = vsel %vm2638_vm11, %v2720_v60, %v2719_v43  ;;  %v2908_v33 = vsub.s32 0, %v2906_v40 }
 0x368   :  { %v2724_v27 = vsel %vm2637_vm13, %v5309_v63, %v2721_v42  ;;  %v2929_v63 = vsel %vm2844_vm3, %v2928_v35, %v2904_v8 }
 0x369   :  { %3350 = vcosq.f32 %v2724_v27  ;;  %v3116_v12 = vmin.u32 %v2908_v33, %v2906_v40  ;;  %v2931_v21 = vsel %vm2843_vm4, 0, %v2929_v63 }
 0x36a   :  { %3352 = vsinq.f32 %v2724_v27  ;;  %v2935_v48 = vand.u32 3, %v2931_v21 }
 0x36b   :  { %v2910_v30 = vclz %v3116_v12 }
 0x36c   :  { %vm2940_vm5 = vcmp.eq.s32.totalorder %v2935_v48, 2  ;;  %vm2937_vm6 = vcmp.eq.s32.totalorder %v2935_v48, 0  ;;  %vm2936_vm7 = vcmp.lt.s32.totalorder %v2935_v48, 2 }
 0x36d   :  { %v3117_v39 = vadd.s32 4294967294, %v2910_v30 }
 0x36f   :  { %vm3118_vm14 = vcmp.lt.s32.totalorder %v3117_v39, 0 }
 0x370   :  { %v2913_v46 = vsel %vm3118_vm14, 0, %v3117_v39 }
 0x371   :  { %v2914_v38 = vsub.s32 32, %v2913_v46  ;;  %v2918_v57 = vsub.s32 4294967266, %v2913_v46  ;;  %v2915_v47 = vshll.u32 %v2906_v40, %v2913_v46 }
 0x373   :  { %v3351_v58 = vpop.eup %3350  ;;  %v2916_v18 = vshrl.u32 %v2898_v54, %v2914_v38  ;;  %v2919_v53 = vadd.s32 127, %v2918_v57 }
 0x374   :  { %v3353_v62 = vpop.eup %3352  ;;  %v2735_v59 = vxor.u32 2147483648, %v3351_v58 }
 0x375   :  { %v2732_v7 = vxor.u32 2147483648, %v3353_v62  ;;  %v2917_v5 = vor.u32 %v2916_v18, %v2915_v47  ;;  %v2920_v36 = vshll.u32 %v2919_v53, 23 }
 0x376   :  { %v2736_v23 = vsel %vm2734_vm15, %v2735_v59, %v3353_v62 }
 0x377   :  { %v2733_v6 = vsel %vm2731_vm0, %v3351_v58, %v2732_v7  ;;  %v2921_v41 = vor.u32 4788187, %v2920_v36  ;;  %v2924_v28 = vcvt.s32.f32 %v2917_v5 }
 0x378   :  { %v2737_v0 = vsel %vm2730_vm1, %v2733_v6, %v2736_v23 }
 0x379   :  { %v2738_v9 = vsel %vm2728_vm2, nan, %v2737_v0  ;;  %v2922_v37 = vand.u32 2147483647, %v2921_v41 }
 0x37a   :  { %v2966_v25 = vmul.f32 0.044194173, %v2738_v9 }
 0x37b   :  { %v2925_v3 = vmul.f32 %v2924_v28, %v2922_v37 }
 0x37c   :  { %2990 = vst [vmem:[#allocation8 + $0xa8] sm:$0xff] %v2966_v25 }
 0x37d   :  { %v2926_v45 = vxor.u32 2147483648, %v2925_v3 }
 0x37f   :  { %v2927_v26 = vsel %vm2844_vm3, %v2926_v45, %v2925_v3 }
 0x380   :  { %v2930_v29 = vsel %vm2843_vm4, %v5395_v51, %v2927_v26 }
 0x381   :  { %3354 = vcosq.f32 %v2930_v29 }
 0x382   :  { %3356 = vsinq.f32 %v2930_v29 }
 0x38b   :  { %v3355_v16 = vpop.eup %3354 }
 0x38c   :  { %v3357_v24 = vpop.eup %3356  ;;  %v2941_v19 = vxor.u32 2147483648, %v3355_v16 }
 0x38d   :  { %v2938_v13 = vxor.u32 2147483648, %v3357_v24 }
 0x38e   :  { %v2942_v10 = vsel %vm2940_vm5, %v2941_v19, %v3357_v24 }
 0x38f   :  { %v2939_v22 = vsel %vm2937_vm6, %v3355_v16, %v2938_v13 }
 0x390   :  { %v2943_v11 = vsel %vm2936_vm7, %v2939_v22, %v2942_v10 }
 0x391   :  { %v2944_v56 = vsel %vm2934_vm8, nan, %v2943_v11 }
 0x392   :  { %v2968_v2 = vmul.f32 0.044194173, %v2944_v56 }
 0x394   :  { %2992 = vst [vmem:[#allocation8 + $0xb8] sm:$0xff] %v2968_v2 }
 0x395   :  { %3436 = shalt.err (!%p3433_p0)
}
 0x396   :  { %s3437_s29 = scalar_lea.hbm %s5531_s3, 3072 }
 0x397   :  { %p3438_p1 = scmp.ne.s32.totalorder %s5531_s3, %s3437_s29  ;;  %p3441_p2 = scmp.lt.u32.totalorder %s3437_s29, %s5531_s3 }
 0x399   :  { %p3443_p3 = pnand %p3441_p2, %p3438_p1 }
 0x39b   :  { %3446 = shalt.err (!%p3443_p3)
}
 0x39c   :  { %3004 = dma.vmem_to_hbm [thread:$0]  %s2999_s25, 3072, %s5531_s3, [#allocation4], %s3454_s22, %s3454_s22, %s3455_s23  }
 0x39d   :  { %3451 = dma.done.wait [#allocation4], 3072  }
 0x39e   :  { %3452 = vsyncadd [#allocation4], 4294964224 }
 0x39f   :  { %3008 = vsyncpa [#allocation3], 1 }
 0x3a0   :  { %3009 = vsyncpa [#allocation6], 1 }
 0x3a1   :  { %3010 = vsyncpa [#allocation4], 1 }

</bundles_post_ra>
